<compile_context>
chip_gen: v7x
topology: tpu7x:2x2x1
jax: 0.10.0
libtpu: 0.0.40
codegen_flags: <defaults>
</compile_context>

<pallas_src>
import jax
import jax.numpy as jnp
from jax.experimental import pallas as pl
from jax.experimental.pallas import tpu as pltpu


def _round_up(x, m):
    return ((x + m - 1) // m) * m


# --------------------------------------------------------------------------- #
# 1x1x1 conv: plain matmul + bias (used on the low-res tensor, pre-upsample). #
# --------------------------------------------------------------------------- #

def _matmul_bias_kernel(a_ref, w_ref, b_ref, o_ref):
    acc = jnp.dot(a_ref[...], w_ref[...], preferred_element_type=jnp.float32)
    o_ref[...] = (acc + b_ref[...]).astype(o_ref.dtype)


def matmul_bias(a, w, b, *, tm=512):
    """o = a @ w + b on (M, K) rows; rows padded up to a multiple-of-8 tile."""
    M, K = a.shape
    Kw, C = w.shape
    assert K == Kw
    bm = min(tm, _round_up(M, 8))
    Mp = _round_up(M, bm)
    if Mp != M:
        a = jnp.pad(a, ((0, Mp - M), (0, 0)))
    out = pl.pallas_call(
        _matmul_bias_kernel,
        out_shape=jax.ShapeDtypeStruct((Mp, C), jnp.float32),
        grid=(Mp // bm,),
        in_specs=[
            pl.BlockSpec((bm, K), lambda i: (i, 0)),
            pl.BlockSpec((K, C), lambda i: (0, 0)),
            pl.BlockSpec((1, C), lambda i: (0, 0)),
        ],
        out_specs=pl.BlockSpec((bm, C), lambda i: (i, 0)),
        compiler_params=pltpu.CompilerParams(dimension_semantics=("parallel",)),
        cost_estimate=pl.CostEstimate(
            flops=2 * Mp * K * C,
            transcendentals=0,
            bytes_accessed=4 * (Mp * K + K * C + Mp * C)),
    )(a, w, b.reshape(1, C))
    return out[:M]


# --------------------------------------------------------------------------- #
# Fused 3x3x3 conv (+ optional BN-apply/ReLU on the input, + BN stats out).   #
# --------------------------------------------------------------------------- #

def _make_conv_kernel(H, W, Cin, Cout, *, in_act):
    Hp, Wp = H + 2, W + 2

    def body(x0, x1, x2, w_ref, b_ref, s_ref, t_ref, y_ref, sum_ref, ssq_ref):
        d = pl.program_id(1)
        nD = pl.num_programs(1)
        slabs = (x0, x1, x2)

        if in_act:
            # Interior mask: halo positions of the padded slab must be zero
            # AFTER the fused BN-apply + ReLU (zero-padding of the *activated*
            # tensor), so re-zero them explicitly.
            ih = jax.lax.broadcasted_iota(jnp.int32, (Hp, Wp, 1), 0)
            iw = jax.lax.broadcasted_iota(jnp.int32, (Hp, Wp, 1), 1)
            interior = jnp.logical_and(
                jnp.logical_and(ih >= 1, ih <= H),
                jnp.logical_and(iw >= 1, iw <= W))
            s = jnp.reshape(s_ref[...], (1, 1, Cin))
            t = jnp.reshape(t_ref[...], (1, 1, Cin))

        acc = jnp.zeros((H * W, Cout), jnp.float32)
        for kd in range(3):
            x = slabs[kd][...]                                  # (Hp, Wp, Cin)
            if in_act:
                a = jnp.maximum(x * s + t, 0.0)                 # BN + ReLU
                depth_ok = jnp.logical_and(d + kd >= 1, d + kd <= nD)
                a = jnp.where(jnp.logical_and(interior, depth_ok), a, 0.0)
            else:
                a = x
            for kh in range(3):
                for kw in range(3):
                    patch = a[kh:kh + H, kw:kw + W, :].reshape(H * W, Cin)
                    wk = w_ref[kd * 9 + kh * 3 + kw]            # (Cin, Cout)
                    acc = acc + jnp.dot(patch, wk,
                                        preferred_element_type=jnp.float32)

        y = acc + b_ref[...]                                    # (H*W, Cout)
        # Per-depth-slice BatchNorm statistics of the (pre-BN) conv output.
        sum_ref[...] = jnp.sum(y, axis=0, keepdims=True)
        ssq_ref[...] = jnp.sum(y * y, axis=0, keepdims=True)
        y_ref[...] = y.reshape(H, W, Cout).astype(y_ref.dtype)

    if in_act:
        def kernel(x0, x1, x2, w_ref, b_ref, s_ref, t_ref, y_ref, sum_ref, ssq_ref):
            body(x0, x1, x2, w_ref, b_ref, s_ref, t_ref, y_ref, sum_ref, ssq_ref)
    else:
        def kernel(x0, x1, x2, w_ref, b_ref, y_ref, sum_ref, ssq_ref):
            body(x0, x1, x2, w_ref, b_ref, None, None, y_ref, sum_ref, ssq_ref)
    return kernel


def conv3x3x3_bn_stats(x_pad, w, b, *, scale=None, shift=None):
    """3x3x3 'same' conv on a zero-padded channels-last volume.

    x_pad: (N, D+2, H+2, W+2, Cin) f32.  If scale/shift are given, the kernel
    first applies relu(x*scale + shift) to the interior of the input (fused
    BatchNorm + ReLU from the previous layer) and re-zeroes the halo in-kernel
    (so the pad values of x_pad are never trusted).

    Returns (y, ch_sum, ch_sumsq):
      y        : (N, D, H, W, Cout) pre-BN conv output
      ch_sum   : (N, D, 1, Cout) per-depth-slice channel sums of y
      ch_sumsq : (N, D, 1, Cout) per-depth-slice channel sums of y*y
    """
    N, Dp, Hp, Wp, Cin = x_pad.shape
    D, H, W = Dp - 2, Hp - 2, Wp - 2
    Cout = w.shape[-1]
    in_act = scale is not None

    w27 = w.reshape(27, Cin, Cout).astype(jnp.float32)
    b2 = b.reshape(1, Cout).astype(jnp.float32)

    kernel = _make_conv_kernel(H, W, Cin, Cout, in_act=in_act)

    def slab_spec(off):
        # Depth-offset slabs 0/1/2 provide the depth halo; the H/W halo comes
        # with the (Hp, Wp, Cin) slab itself.
        return pl.BlockSpec((None, None, Hp, Wp, Cin),
                            lambda n, d, off=off: (n, d + off, 0, 0, 0))

    in_specs = [slab_spec(0), slab_spec(1), slab_spec(2),
                pl.BlockSpec((27, Cin, Cout), lambda n, d: (0, 0, 0)),
                pl.BlockSpec((1, Cout), lambda n, d: (0, 0))]
    inputs = [x_pad, x_pad, x_pad, w27, b2]
    if in_act:
        in_specs += [pl.BlockSpec((1, Cin), lambda n, d: (0, 0)),
                     pl.BlockSpec((1, Cin), lambda n, d: (0, 0))]
        inputs += [scale.reshape(1, Cin).astype(jnp.float32),
                   shift.reshape(1, Cin).astype(jnp.float32)]

    y_shape = jax.ShapeDtypeStruct((N, D, H, W, Cout), jnp.float32)
    y_spec = pl.BlockSpec((None, None, H, W, Cout), lambda n, d: (n, d, 0, 0, 0))
    stat_shape = jax.ShapeDtypeStruct((N, D, 1, Cout), jnp.float32)
    stat_spec = pl.BlockSpec((None, None, 1, Cout), lambda n, d: (n, d, 0, 0))

    flops = 2 * N * D * H * W * (27 * Cin) * Cout
    bytes_accessed = (4 * 3 * N * D * Hp * Wp * Cin      # three halo slabs
                      + 4 * N * D * H * W * Cout         # output
                      + 4 * 27 * Cin * Cout)             # weights

    y, s1, s2 = pl.pallas_call(
        kernel,
        out_shape=(y_shape, stat_shape, stat_shape),
        grid=(N, D),
        in_specs=in_specs,
        out_specs=(y_spec, stat_spec, stat_spec),
        compiler_params=pltpu.CompilerParams(
            dimension_semantics=("parallel", "parallel")),
        cost_estimate=pl.CostEstimate(flops=flops, transcendentals=0,
                                      bytes_accessed=bytes_accessed),
    )(*inputs)
    return y, s1, s2


# --------------------------------------------------------------------------- #
# Final BatchNorm-apply + ReLU, lane-dense elementwise kernel.                #
# --------------------------------------------------------------------------- #

def _scale_shift_relu_kernel(x_ref, s_ref, t_ref, o_ref):
    y = x_ref[...] * s_ref[...] + t_ref[...]
    o_ref[...] = jnp.maximum(y, 0.0).astype(o_ref.dtype)


def bn_relu_apply(x2d, scale, shift, *, tm=512):
    """relu(x*scale + shift) on (M, C) rows with per-channel scale/shift.

    When 128 % C == 0 the data is repacked to a lane-dense (rows, 128) layout
    (scale/shift tiled across lanes) so stores use all 128 lanes."""
    M, C = x2d.shape
    if 128 % C == 0 and (M * C) % 128 == 0:
        rep = 128 // C
        rows = (M * C) // 128
        xr = x2d.reshape(rows, 128)
        s = jnp.tile(scale.reshape(1, C), (1, rep))
        t = jnp.tile(shift.reshape(1, C), (1, rep))
    else:  # fallback: channel-minor layout (masked stores, still correct)
        rows = M
        xr = x2d
        s = scale.reshape(1, C)
        t = shift.reshape(1, C)
    L = xr.shape[1]
    bm = min(tm, _round_up(rows, 8))
    rows_p = _round_up(rows, bm)
    if rows_p != rows:
        xr = jnp.pad(xr, ((0, rows_p - rows), (0, 0)))
    out = pl.pallas_call(
        _scale_shift_relu_kernel,
        out_shape=jax.ShapeDtypeStruct((rows_p, L), jnp.float32),
        grid=(rows_p // bm,),
        in_specs=[pl.BlockSpec((bm, L), lambda i: (i, 0)),
                  pl.BlockSpec((1, L), lambda i: (0, 0)),
                  pl.BlockSpec((1, L), lambda i: (0, 0))],
        out_specs=pl.BlockSpec((bm, L), lambda i: (i, 0)),
        compiler_params=pltpu.CompilerParams(dimension_semantics=("parallel",)),
    )(xr, s, t)
    return out[:rows].reshape(M, C)


# ------------------------------- JAX glue ---------------------------------- #
# TODO(synk): the 2x trilinear upsample is interleave/gather glue; left to XLA
# rather than a Pallas kernel (it commutes with the 1x1x1 conv, see below).

def _upsample2x_linear_axis(x, axis):
    """nn.Upsample(scale=2, mode='*linear', align_corners=False) along one axis."""
    L = x.shape[axis]
    idx_m = jnp.clip(jnp.arange(L) - 1, 0, L - 1)
    idx_p = jnp.clip(jnp.arange(L) + 1, 0, L - 1)
    xm = jnp.take(x, idx_m, axis=axis)
    xp = jnp.take(x, idx_p, axis=axis)
    even = 0.25 * xm + 0.75 * x   # output 2k   -> src k - 0.25 (edge-clamped)
    odd = 0.75 * x + 0.25 * xp    # output 2k+1 -> src k + 0.25 (edge-clamped)
    y = jnp.stack([even, odd], axis=axis + 1)
    new_shape = list(x.shape)
    new_shape[axis] = 2 * L
    return y.reshape(new_shape)


def trilinear_upsample2x(x):
    """x: (N, D, H, W, C) -> (N, 2D, 2H, 2W, C); separable trilinear interp."""
    for ax in (1, 2, 3):
        x = _upsample2x_linear_axis(x, ax)
    return x


# ----------------------------- Module forward ------------------------------ #

def upconvblock3_forward(xh, xv, params, eps=1e-5):
    """xh: (N, out_ch, D, H, W), xv: (N, in_ch, D/2, H/2, W/2) (NCDHW).

    Returns (N, out_ch, D, H, W).  BatchNorm is in training mode (batch stats),
    matching a freshly-constructed nn.BatchNorm3d module.
    """
    N, Ch, D, H, W = xh.shape
    xh_l = jnp.transpose(xh, (0, 2, 3, 4, 1))   # NDHWC
    xv_l = jnp.transpose(xv, (0, 2, 3, 4, 1))   # NDHWC

    # --- UpConv2x2x2.  The 1x1x1 conv is per-voxel linear and the trilinear
    #     interpolation weights sum to 1, so conv and upsample commute: run
    #     the conv on the 8x smaller low-res tensor, then upsample. ---
    Nv, Dv, Hv, Wv, Cv = xv_l.shape
    Mv = Nv * Dv * Hv * Wv
    half = params["up_w"].shape[-1]
    xvp = matmul_bias(xv_l.reshape(Mv, Cv), params["up_w"], params["up_b"])
    xv_up = trilinear_upsample2x(xvp.reshape(Nv, Dv, Hv, Wv, half))  # (N,D,H,W,half)

    # --- concat + single zero-pad; conv1 consumes it directly (no im2col). ---
    x = jnp.concatenate([xh_l, xv_up], axis=-1)
    x_pad = jnp.pad(x, ((0, 0), (1, 1), (1, 1), (1, 1), (0, 0)))

    gamma, beta = params["bn_gamma"], params["bn_beta"]
    Cout = params["conv1_w"].shape[-1]
    M = N * D * H * W

    # --- conv1 (+ fused per-slice BN stats). ---
    y1, s1, q1 = conv3x3x3_bn_stats(x_pad, params["conv1_w"], params["conv1_b"])
    mean1 = jnp.sum(s1, axis=(0, 1, 2)) / M
    var1 = jnp.maximum(jnp.sum(q1, axis=(0, 1, 2)) / M - mean1 * mean1, 0.0)
    scale1 = gamma * jax.lax.rsqrt(var1 + eps)
    shift1 = beta - mean1 * scale1

    # --- conv2 with BN1-apply + ReLU fused into its input load path.  The pad
    #     values are never trusted: the kernel re-zeroes the halo after the
    #     fused activation, so a plain zero-pad of the pre-BN y1 is correct. ---
    y1_pad = jnp.pad(y1, ((0, 0), (1, 1), (1, 1), (1, 1), (0, 0)))
    y2, s2, q2 = conv3x3x3_bn_stats(
        y1_pad, params["conv2_w"], params["conv2_b"],
        scale=scale1, shift=shift1)
    mean2 = jnp.sum(s2, axis=(0, 1, 2)) / M
    var2 = jnp.maximum(jnp.sum(q2, axis=(0, 1, 2)) / M - mean2 * mean2, 0.0)
    scale2 = gamma * jax.lax.rsqrt(var2 + eps)
    shift2 = beta - mean2 * scale2

    # --- final BN2 + ReLU (shared gamma/beta, fresh batch stats), lane-dense.
    z = bn_relu_apply(y2.reshape(M, Cout), scale2, shift2)
    z = z.reshape(N, D, H, W, Cout)
    return jnp.transpose(z, (0, 4, 1, 2, 3))  # back to NCDHW


# ---------------------------------- main ------------------------------------ #

if __name__ == "__main__":
    key = jax.random.PRNGKey(0)
    ks = jax.random.split(key, 8)

    in_channels, out_channels = 4, 4          # UpConvBlock3(in_channels, out_channels)
    N, D, H, W = 2, 8, 8, 8                   # xh spatial; xv is half-resolution

    xh = jax.random.normal(ks[0], (N, out_channels, D, H, W), jnp.float32)
    xv = jax.random.normal(ks[1], (N, in_channels, D // 2, H // 2, W // 2), jnp.float32)

    half = in_channels // 2
    cin_block = half + out_channels
    params = {
        # UpConv2x2x2: Conv3d(in_channels, in_channels//2, 1x1x1, bias=True)
        "up_w": 0.1 * jax.random.normal(ks[2], (in_channels, half), jnp.float32),
        "up_b": 0.1 * jax.random.normal(ks[3], (half,), jnp.float32),
        # ConvBlock3.conv1: Conv3d(cin_block, out_channels, 3x3x3, pad=1, bias=True)
        "conv1_w": 0.1 * jax.random.normal(ks[4], (3, 3, 3, cin_block, out_channels), jnp.float32),
        "conv1_b": 0.1 * jax.random.normal(ks[5], (out_channels,), jnp.float32),
        # ConvBlock3.conv2: Conv3d(out_channels, out_channels, 3x3x3, pad=1, bias=True)
        "conv2_w": 0.1 * jax.random.normal(ks[6], (3, 3, 3, out_channels, out_channels), jnp.float32),
        "conv2_b": 0.1 * jax.random.normal(ks[7], (out_channels,), jnp.float32),
        # Shared BatchNorm3d(out_channels): default affine init
        "bn_gamma": jnp.ones((out_channels,), jnp.float32),
        "bn_beta": jnp.zeros((out_channels,), jnp.float32),
    }

    out = jax.jit(upconvblock3_forward)(xh, xv, params)
    out = jax.block_until_ready(out)

    assert out.shape == (N, out_channels, D, H, W), out.shape
    assert bool(jnp.all(jnp.isfinite(out)))
    print("KERNEL_OK")
</pallas_src>

<mosaic_0001>
module attributes {stable_mosaic.version = 11 : i64} {
  func.func @_matmul_bias_kernel(%arg0: i32, %arg1: memref<128x4xf32, #tpu.memory_space<vmem>>, %arg2: memref<4x2xf32, #tpu.memory_space<vmem>>, %arg3: memref<1x2xf32, #tpu.memory_space<vmem>>, %arg4: memref<128x2xf32, #tpu.memory_space<vmem>>) attributes {dimension_semantics = [#tpu.dimension_semantics<parallel>], iteration_bounds = array<i64: 1>, scalar_prefetch = 0 : i64, scratch_operands = 0 : i64, tpu.core_type = #tpu.core_type<tc>, window_params = [{transform_indices = @transform_0, window_bounds = array<i64: 128, 4>}, {pipeline_mode = #tpu.pipeline_mode<synchronous>, transform_indices = @transform_1, window_bounds = array<i64: 4, 2>}, {pipeline_mode = #tpu.pipeline_mode<synchronous>, transform_indices = @transform_2, window_bounds = array<i64: 1, 2>}, {transform_indices = @transform_3, window_bounds = array<i64: 128, 2>}]} {
    %c0 = arith.constant 0 : index
    %c0_0 = arith.constant 0 : index
    %0 = vector.load %arg1[%c0, %c0_0] : memref<128x4xf32, #tpu.memory_space<vmem>>, vector<128x4xf32>
    %c0_1 = arith.constant 0 : index
    %c0_2 = arith.constant 0 : index
    %1 = vector.load %arg2[%c0_1, %c0_2] : memref<4x2xf32, #tpu.memory_space<vmem>>, vector<4x2xf32>
    %cst = arith.constant dense<0.000000e+00> : vector<128x2xf32>
    %2 = tpu.matmul %0, %1, %cst {dimension_numbers = #tpu.dot_dimension_numbers<[1], [0], [0], [1], [0, 0, 1, 1], [], []>} : vector<128x4xf32>, vector<4x2xf32>, vector<128x2xf32> -> vector<128x2xf32>
    %c0_3 = arith.constant 0 : index
    %c0_4 = arith.constant 0 : index
    %3 = vector.load %arg3[%c0_3, %c0_4] : memref<1x2xf32, #tpu.memory_space<vmem>>, vector<1x2xf32>
    %4 = vector.broadcast %3 : vector<1x2xf32> to vector<128x2xf32>
    %5 = arith.addf %2, %4 : vector<128x2xf32>
    %c0_5 = arith.constant 0 : index
    %c0_6 = arith.constant 0 : index
    %6 = vector.load %arg4[%c0_5, %c0_6] : memref<128x2xf32, #tpu.memory_space<vmem>>, vector<128x2xf32>
    tpu.vector_store %arg4[%c0_5, %c0_6], %5 {strides = array<i32>} : memref<128x2xf32, #tpu.memory_space<vmem>>, vector<128x2xf32>,
    return
  }
  func.func @transform_0(%arg0: i32) -> (i32, i32) {
    %c0_i32 = arith.constant 0 : i32
    %c0_i32_0 = arith.constant 0 : i32
    return %arg0, %c0_i32 : i32, i32
  }
  func.func @transform_1(%arg0: i32) -> (i32, i32) {
    %c0_i32 = arith.constant 0 : i32
    %c0_i32_0 = arith.constant 0 : i32
    %c0_i32_1 = arith.constant 0 : i32
    return %c0_i32, %c0_i32_0 : i32, i32
  }
  func.func @transform_2(%arg0: i32) -> (i32, i32) {
    %c0_i32 = arith.constant 0 : i32
    %c0_i32_0 = arith.constant 0 : i32
    %c0_i32_1 = arith.constant 0 : i32
    return %c0_i32, %c0_i32_0 : i32, i32
  }
  func.func @transform_3(%arg0: i32) -> (i32, i32) {
    %c0_i32 = arith.constant 0 : i32
    %c0_i32_0 = arith.constant 0 : i32
    return %arg0, %c0_i32 : i32, i32
  }
}

module attributes {stable_mosaic.version = 11 : i64} {
  func.func @kernel(%arg0: i32, %arg1: i32, %arg2: memref<1x1x10x10x6xf32, #tpu.memory_space<vmem>>, %arg3: memref<1x1x10x10x6xf32, #tpu.memory_space<vmem>>, %arg4: memref<1x1x10x10x6xf32, #tpu.memory_space<vmem>>, %arg5: memref<27x6x4xf32, #tpu.memory_space<vmem>>, %arg6: memref<1x4xf32, #tpu.memory_space<vmem>>, %arg7: memref<1x1x8x8x4xf32, #tpu.memory_space<vmem>>, %arg8: memref<1x1x1x4xf32, #tpu.memory_space<vmem>>, %arg9: memref<1x1x1x4xf32, #tpu.memory_space<vmem>>) attributes {dimension_semantics = [#tpu.dimension_semantics<parallel>, #tpu.dimension_semantics<parallel>], iteration_bounds = array<i64: 2, 8>, scalar_prefetch = 0 : i64, scratch_operands = 0 : i64, tpu.core_type = #tpu.core_type<tc>, window_params = [{transform_indices = @transform_0, window_bounds = array<i64: 1, 1, 10, 10, 6>}, {transform_indices = @transform_1, window_bounds = array<i64: 1, 1, 10, 10, 6>}, {transform_indices = @transform_2, window_bounds = array<i64: 1, 1, 10, 10, 6>}, {pipeline_mode = #tpu.pipeline_mode<synchronous>, transform_indices = @transform_3, window_bounds = array<i64: 27, 6, 4>}, {pipeline_mode = #tpu.pipeline_mode<synchronous>, transform_indices = @transform_4, window_bounds = array<i64: 1, 4>}, {transform_indices = @transform_5, window_bounds = array<i64: 1, 1, 8, 8, 4>}, {transform_indices = @transform_6, window_bounds = array<i64: 1, 1, 1, 4>}, {transform_indices = @transform_7, window_bounds = array<i64: 1, 1, 1, 4>}]} {
    %cst = arith.constant 0.000000e+00 : f32
    %0 = vector.broadcast %cst : f32 to vector<64x4xf32>
    %c0 = arith.constant 0 : index
    %c0_0 = arith.constant 0 : index
    %c0_1 = arith.constant 0 : index
    %c0_2 = arith.constant 0 : index
    %c0_3 = arith.constant 0 : index
    %1 = vector.load %arg2[%c0, %c0_0, %c0_1, %c0_2, %c0_3] : memref<1x1x10x10x6xf32, #tpu.memory_space<vmem>>, vector<1x1x10x10x6xf32>
    %2 = vector.shape_cast %1 : vector<1x1x10x10x6xf32> to vector<10x10x6xf32>
    %3 = vector.extract_strided_slice %2 {offsets = [0, 0, 0], sizes = [8, 8, 6], strides = [1, 1, 1]} : vector<10x10x6xf32> to vector<8x8x6xf32>
    %4 = vector.shape_cast %3 : vector<8x8x6xf32> to vector<64x6xf32>
    %c0_4 = arith.constant 0 : index
    %c0_5 = arith.constant 0 : index
    %c0_6 = arith.constant 0 : index
    %5 = vector.load %arg5[%c0_4, %c0_5, %c0_6] : memref<27x6x4xf32, #tpu.memory_space<vmem>>, vector<1x6x4xf32>
    %6 = vector.shape_cast %5 : vector<1x6x4xf32> to vector<6x4xf32>
    %cst_7 = arith.constant dense<0.000000e+00> : vector<64x4xf32>
    %7 = tpu.matmul %4, %6, %cst_7 {dimension_numbers = #tpu.dot_dimension_numbers<[1], [0], [0], [1], [0, 0, 1, 1], [], []>} : vector<64x6xf32>, vector<6x4xf32>, vector<64x4xf32> -> vector<64x4xf32>
    %8 = arith.addf %0, %7 : vector<64x4xf32>
    %9 = vector.extract_strided_slice %2 {offsets = [0, 1, 0], sizes = [8, 8, 6], strides = [1, 1, 1]} : vector<10x10x6xf32> to vector<8x8x6xf32>
    %10 = vector.shape_cast %9 : vector<8x8x6xf32> to vector<64x6xf32>
    %c1 = arith.constant 1 : index
    %c0_8 = arith.constant 0 : index
    %c0_9 = arith.constant 0 : index
    %11 = vector.load %arg5[%c1, %c0_8, %c0_9] : memref<27x6x4xf32, #tpu.memory_space<vmem>>, vector<1x6x4xf32>
    %12 = vector.shape_cast %11 : vector<1x6x4xf32> to vector<6x4xf32>
    %cst_10 = arith.constant dense<0.000000e+00> : vector<64x4xf32>
    %13 = tpu.matmul %10, %12, %cst_10 {dimension_numbers = #tpu.dot_dimension_numbers<[1], [0], [0], [1], [0, 0, 1, 1], [], []>} : vector<64x6xf32>, vector<6x4xf32>, vector<64x4xf32> -> vector<64x4xf32>
    %14 = arith.addf %8, %13 : vector<64x4xf32>
    %15 = vector.extract_strided_slice %2 {offsets = [0, 2, 0], sizes = [8, 8, 6], strides = [1, 1, 1]} : vector<10x10x6xf32> to vector<8x8x6xf32>
    %16 = vector.shape_cast %15 : vector<8x8x6xf32> to vector<64x6xf32>
    %c2 = arith.constant 2 : index
    %c0_11 = arith.constant 0 : index
    %c0_12 = arith.constant 0 : index
    %17 = vector.load %arg5[%c2, %c0_11, %c0_12] : memref<27x6x4xf32, #tpu.memory_space<vmem>>, vector<1x6x4xf32>
    %18 = vector.shape_cast %17 : vector<1x6x4xf32> to vector<6x4xf32>
    %cst_13 = arith.constant dense<0.000000e+00> : vector<64x4xf32>
    %19 = tpu.matmul %16, %18, %cst_13 {dimension_numbers = #tpu.dot_dimension_numbers<[1], [0], [0], [1], [0, 0, 1, 1], [], []>} : vector<64x6xf32>, vector<6x4xf32>, vector<64x4xf32> -> vector<64x4xf32>
    %20 = arith.addf %14, %19 : vector<64x4xf32>
    %21 = vector.extract_strided_slice %2 {offsets = [1, 0, 0], sizes = [8, 8, 6], strides = [1, 1, 1]} : vector<10x10x6xf32> to vector<8x8x6xf32>
    %22 = vector.shape_cast %21 : vector<8x8x6xf32> to vector<64x6xf32>
    %c3 = arith.constant 3 : index
    %c0_14 = arith.constant 0 : index
    %c0_15 = arith.constant 0 : index
    %23 = vector.load %arg5[%c3, %c0_14, %c0_15] : memref<27x6x4xf32, #tpu.memory_space<vmem>>, vector<1x6x4xf32>
    %24 = vector.shape_cast %23 : vector<1x6x4xf32> to vector<6x4xf32>
    %cst_16 = arith.constant dense<0.000000e+00> : vector<64x4xf32>
    %25 = tpu.matmul %22, %24, %cst_16 {dimension_numbers = #tpu.dot_dimension_numbers<[1], [0], [0], [1], [0, 0, 1, 1], [], []>} : vector<64x6xf32>, vector<6x4xf32>, vector<64x4xf32> -> vector<64x4xf32>
    %26 = arith.addf %20, %25 : vector<64x4xf32>
    %27 = vector.extract_strided_slice %2 {offsets = [1, 1, 0], sizes = [8, 8, 6], strides = [1, 1, 1]} : vector<10x10x6xf32> to vector<8x8x6xf32>
    %28 = vector.shape_cast %27 : vector<8x8x6xf32> to vector<64x6xf32>
    %c4 = arith.constant 4 : index
    %c0_17 = arith.constant 0 : index
    %c0_18 = arith.constant 0 : index
    %29 = vector.load %arg5[%c4, %c0_17, %c0_18] : memref<27x6x4xf32, #tpu.memory_space<vmem>>, vector<1x6x4xf32>
    %30 = vector.shape_cast %29 : vector<1x6x4xf32> to vector<6x4xf32>
    %cst_19 = arith.constant dense<0.000000e+00> : vector<64x4xf32>
    %31 = tpu.matmul %28, %30, %cst_19 {dimension_numbers = #tpu.dot_dimension_numbers<[1], [0], [0], [1], [0, 0, 1, 1], [], []>} : vector<64x6xf32>, vector<6x4xf32>, vector<64x4xf32> -> vector<64x4xf32>
    %32 = arith.addf %26, %31 : vector<64x4xf32>
    %33 = vector.extract_strided_slice %2 {offsets = [1, 2, 0], sizes = [8, 8, 6], strides = [1, 1, 1]} : vector<10x10x6xf32> to vector<8x8x6xf32>
    %34 = vector.shape_cast %33 : vector<8x8x6xf32> to vector<64x6xf32>
    %c5 = arith.constant 5 : index
    %c0_20 = arith.constant 0 : index
    %c0_21 = arith.constant 0 : index
    %35 = vector.load %arg5[%c5, %c0_20, %c0_21] : memref<27x6x4xf32, #tpu.memory_space<vmem>>, vector<1x6x4xf32>
    %36 = vector.shape_cast %35 : vector<1x6x4xf32> to vector<6x4xf32>
    %cst_22 = arith.constant dense<0.000000e+00> : vector<64x4xf32>
    %37 = tpu.matmul %34, %36, %cst_22 {dimension_numbers = #tpu.dot_dimension_numbers<[1], [0], [0], [1], [0, 0, 1, 1], [], []>} : vector<64x6xf32>, vector<6x4xf32>, vector<64x4xf32> -> vector<64x4xf32>
    %38 = arith.addf %32, %37 : vector<64x4xf32>
    %39 = vector.extract_strided_slice %2 {offsets = [2, 0, 0], sizes = [8, 8, 6], strides = [1, 1, 1]} : vector<10x10x6xf32> to vector<8x8x6xf32>
    %40 = vector.shape_cast %39 : vector<8x8x6xf32> to vector<64x6xf32>
    %c6 = arith.constant 6 : index
    %c0_23 = arith.constant 0 : index
    %c0_24 = arith.constant 0 : index
    %41 = vector.load %arg5[%c6, %c0_23, %c0_24] : memref<27x6x4xf32, #tpu.memory_space<vmem>>, vector<1x6x4xf32>
    %42 = vector.shape_cast %41 : vector<1x6x4xf32> to vector<6x4xf32>
    %cst_25 = arith.constant dense<0.000000e+00> : vector<64x4xf32>
    %43 = tpu.matmul %40, %42, %cst_25 {dimension_numbers = #tpu.dot_dimension_numbers<[1], [0], [0], [1], [0, 0, 1, 1], [], []>} : vector<64x6xf32>, vector<6x4xf32>, vector<64x4xf32> -> vector<64x4xf32>
    %44 = arith.addf %38, %43 : vector<64x4xf32>
    %45 = vector.extract_strided_slice %2 {offsets = [2, 1, 0], sizes = [8, 8, 6], strides = [1, 1, 1]} : vector<10x10x6xf32> to vector<8x8x6xf32>
    %46 = vector.shape_cast %45 : vector<8x8x6xf32> to vector<64x6xf32>
    %c7 = arith.constant 7 : index
    %c0_26 = arith.constant 0 : index
    %c0_27 = arith.constant 0 : index
    %47 = vector.load %arg5[%c7, %c0_26, %c0_27] : memref<27x6x4xf32, #tpu.memory_space<vmem>>, vector<1x6x4xf32>
    %48 = vector.shape_cast %47 : vector<1x6x4xf32> to vector<6x4xf32>
    %cst_28 = arith.constant dense<0.000000e+00> : vector<64x4xf32>
    %49 = tpu.matmul %46, %48, %cst_28 {dimension_numbers = #tpu.dot_dimension_numbers<[1], [0], [0], [1], [0, 0, 1, 1], [], []>} : vector<64x6xf32>, vector<6x4xf32>, vector<64x4xf32> -> vector<64x4xf32>
    %50 = arith.addf %44, %49 : vector<64x4xf32>
    %51 = vector.extract_strided_slice %2 {offsets = [2, 2, 0], sizes = [8, 8, 6], strides = [1, 1, 1]} : vector<10x10x6xf32> to vector<8x8x6xf32>
    %52 = vector.shape_cast %51 : vector<8x8x6xf32> to vector<64x6xf32>
    %c8 = arith.constant 8 : index
    %c0_29 = arith.constant 0 : index
    %c0_30 = arith.constant 0 : index
    %53 = vector.load %arg5[%c8, %c0_29, %c0_30] : memref<27x6x4xf32, #tpu.memory_space<vmem>>, vector<1x6x4xf32>
    %54 = vector.shape_cast %53 : vector<1x6x4xf32> to vector<6x4xf32>
    %cst_31 = arith.constant dense<0.000000e+00> : vector<64x4xf32>
    %55 = tpu.matmul %52, %54, %cst_31 {dimension_numbers = #tpu.dot_dimension_numbers<[1], [0], [0], [1], [0, 0, 1, 1], [], []>} : vector<64x6xf32>, vector<6x4xf32>, vector<64x4xf32> -> vector<64x4xf32>
    %56 = arith.addf %50, %55 : vector<64x4xf32>
    %c0_32 = arith.constant 0 : index
    %c0_33 = arith.constant 0 : index
    %c0_34 = arith.constant 0 : index
    %c0_35 = arith.constant 0 : index
    %c0_36 = arith.constant 0 : index
    %57 = vector.load %arg3[%c0_32, %c0_33, %c0_34, %c0_35, %c0_36] : memref<1x1x10x10x6xf32, #tpu.memory_space<vmem>>, vector<1x1x10x10x6xf32>
    %58 = vector.shape_cast %57 : vector<1x1x10x10x6xf32> to vector<10x10x6xf32>
    %59 = vector.extract_strided_slice %58 {offsets = [0, 0, 0], sizes = [8, 8, 6], strides = [1, 1, 1]} : vector<10x10x6xf32> to vector<8x8x6xf32>
    %60 = vector.shape_cast %59 : vector<8x8x6xf32> to vector<64x6xf32>
    %c9 = arith.constant 9 : index
    %c0_37 = arith.constant 0 : index
    %c0_38 = arith.constant 0 : index
    %61 = vector.load %arg5[%c9, %c0_37, %c0_38] : memref<27x6x4xf32, #tpu.memory_space<vmem>>, vector<1x6x4xf32>
    %62 = vector.shape_cast %61 : vector<1x6x4xf32> to vector<6x4xf32>
    %cst_39 = arith.constant dense<0.000000e+00> : vector<64x4xf32>
    %63 = tpu.matmul %60, %62, %cst_39 {dimension_numbers = #tpu.dot_dimension_numbers<[1], [0], [0], [1], [0, 0, 1, 1], [], []>} : vector<64x6xf32>, vector<6x4xf32>, vector<64x4xf32> -> vector<64x4xf32>
    %64 = arith.addf %56, %63 : vector<64x4xf32>
    %65 = vector.extract_strided_slice %58 {offsets = [0, 1, 0], sizes = [8, 8, 6], strides = [1, 1, 1]} : vector<10x10x6xf32> to vector<8x8x6xf32>
    %66 = vector.shape_cast %65 : vector<8x8x6xf32> to vector<64x6xf32>
    %c10 = arith.constant 10 : index
    %c0_40 = arith.constant 0 : index
    %c0_41 = arith.constant 0 : index
    %67 = vector.load %arg5[%c10, %c0_40, %c0_41] : memref<27x6x4xf32, #tpu.memory_space<vmem>>, vector<1x6x4xf32>
    %68 = vector.shape_cast %67 : vector<1x6x4xf32> to vector<6x4xf32>
    %cst_42 = arith.constant dense<0.000000e+00> : vector<64x4xf32>
    %69 = tpu.matmul %66, %68, %cst_42 {dimension_numbers = #tpu.dot_dimension_numbers<[1], [0], [0], [1], [0, 0, 1, 1], [], []>} : vector<64x6xf32>, vector<6x4xf32>, vector<64x4xf32> -> vector<64x4xf32>
    %70 = arith.addf %64, %69 : vector<64x4xf32>
    %71 = vector.extract_strided_slice %58 {offsets = [0, 2, 0], sizes = [8, 8, 6], strides = [1, 1, 1]} : vector<10x10x6xf32> to vector<8x8x6xf32>
    %72 = vector.shape_cast %71 : vector<8x8x6xf32> to vector<64x6xf32>
    %c11 = arith.constant 11 : index
    %c0_43 = arith.constant 0 : index
    %c0_44 = arith.constant 0 : index
    %73 = vector.load %arg5[%c11, %c0_43, %c0_44] : memref<27x6x4xf32, #tpu.memory_space<vmem>>, vector<1x6x4xf32>
    %74 = vector.shape_cast %73 : vector<1x6x4xf32> to vector<6x4xf32>
    %cst_45 = arith.constant dense<0.000000e+00> : vector<64x4xf32>
    %75 = tpu.matmul %72, %74, %cst_45 {dimension_numbers = #tpu.dot_dimension_numbers<[1], [0], [0], [1], [0, 0, 1, 1], [], []>} : vector<64x6xf32>, vector<6x4xf32>, vector<64x4xf32> -> vector<64x4xf32>
    %76 = arith.addf %70, %75 : vector<64x4xf32>
    %77 = vector.extract_strided_slice %58 {offsets = [1, 0, 0], sizes = [8, 8, 6], strides = [1, 1, 1]} : vector<10x10x6xf32> to vector<8x8x6xf32>
    %78 = vector.shape_cast %77 : vector<8x8x6xf32> to vector<64x6xf32>
    %c12 = arith.constant 12 : index
    %c0_46 = arith.constant 0 : index
    %c0_47 = arith.constant 0 : index
    %79 = vector.load %arg5[%c12, %c0_46, %c0_47] : memref<27x6x4xf32, #tpu.memory_space<vmem>>, vector<1x6x4xf32>
    %80 = vector.shape_cast %79 : vector<1x6x4xf32> to vector<6x4xf32>
    %cst_48 = arith.constant dense<0.000000e+00> : vector<64x4xf32>
    %81 = tpu.matmul %78, %80, %cst_48 {dimension_numbers = #tpu.dot_dimension_numbers<[1], [0], [0], [1], [0, 0, 1, 1], [], []>} : vector<64x6xf32>, vector<6x4xf32>, vector<64x4xf32> -> vector<64x4xf32>
    %82 = arith.addf %76, %81 : vector<64x4xf32>
    %83 = vector.extract_strided_slice %58 {offsets = [1, 1, 0], sizes = [8, 8, 6], strides = [1, 1, 1]} : vector<10x10x6xf32> to vector<8x8x6xf32>
    %84 = vector.shape_cast %83 : vector<8x8x6xf32> to vector<64x6xf32>
    %c13 = arith.constant 13 : index
    %c0_49 = arith.constant 0 : index
    %c0_50 = arith.constant 0 : index
    %85 = vector.load %arg5[%c13, %c0_49, %c0_50] : memref<27x6x4xf32, #tpu.memory_space<vmem>>, vector<1x6x4xf32>
    %86 = vector.shape_cast %85 : vector<1x6x4xf32> to vector<6x4xf32>
    %cst_51 = arith.constant dense<0.000000e+00> : vector<64x4xf32>
    %87 = tpu.matmul %84, %86, %cst_51 {dimension_numbers = #tpu.dot_dimension_numbers<[1], [0], [0], [1], [0, 0, 1, 1], [], []>} : vector<64x6xf32>, vector<6x4xf32>, vector<64x4xf32> -> vector<64x4xf32>
    %88 = arith.addf %82, %87 : vector<64x4xf32>
    %89 = vector.extract_strided_slice %58 {offsets = [1, 2, 0], sizes = [8, 8, 6], strides = [1, 1, 1]} : vector<10x10x6xf32> to vector<8x8x6xf32>
    %90 = vector.shape_cast %89 : vector<8x8x6xf32> to vector<64x6xf32>
    %c14 = arith.constant 14 : index
    %c0_52 = arith.constant 0 : index
    %c0_53 = arith.constant 0 : index
    %91 = vector.load %arg5[%c14, %c0_52, %c0_53] : memref<27x6x4xf32, #tpu.memory_space<vmem>>, vector<1x6x4xf32>
    %92 = vector.shape_cast %91 : vector<1x6x4xf32> to vector<6x4xf32>
    %cst_54 = arith.constant dense<0.000000e+00> : vector<64x4xf32>
    %93 = tpu.matmul %90, %92, %cst_54 {dimension_numbers = #tpu.dot_dimension_numbers<[1], [0], [0], [1], [0, 0, 1, 1], [], []>} : vector<64x6xf32>, vector<6x4xf32>, vector<64x4xf32> -> vector<64x4xf32>
    %94 = arith.addf %88, %93 : vector<64x4xf32>
    %95 = vector.extract_strided_slice %58 {offsets = [2, 0, 0], sizes = [8, 8, 6], strides = [1, 1, 1]} : vector<10x10x6xf32> to vector<8x8x6xf32>
    %96 = vector.shape_cast %95 : vector<8x8x6xf32> to vector<64x6xf32>
    %c15 = arith.constant 15 : index
    %c0_55 = arith.constant 0 : index
    %c0_56 = arith.constant 0 : index
    %97 = vector.load %arg5[%c15, %c0_55, %c0_56] : memref<27x6x4xf32, #tpu.memory_space<vmem>>, vector<1x6x4xf32>
    %98 = vector.shape_cast %97 : vector<1x6x4xf32> to vector<6x4xf32>
    %cst_57 = arith.constant dense<0.000000e+00> : vector<64x4xf32>
    %99 = tpu.matmul %96, %98, %cst_57 {dimension_numbers = #tpu.dot_dimension_numbers<[1], [0], [0], [1], [0, 0, 1, 1], [], []>} : vector<64x6xf32>, vector<6x4xf32>, vector<64x4xf32> -> vector<64x4xf32>
    %100 = arith.addf %94, %99 : vector<64x4xf32>
    %101 = vector.extract_strided_slice %58 {offsets = [2, 1, 0], sizes = [8, 8, 6], strides = [1, 1, 1]} : vector<10x10x6xf32> to vector<8x8x6xf32>
    %102 = vector.shape_cast %101 : vector<8x8x6xf32> to vector<64x6xf32>
    %c16 = arith.constant 16 : index
    %c0_58 = arith.constant 0 : index
    %c0_59 = arith.constant 0 : index
    %103 = vector.load %arg5[%c16, %c0_58, %c0_59] : memref<27x6x4xf32, #tpu.memory_space<vmem>>, vector<1x6x4xf32>
    %104 = vector.shape_cast %103 : vector<1x6x4xf32> to vector<6x4xf32>
    %cst_60 = arith.constant dense<0.000000e+00> : vector<64x4xf32>
    %105 = tpu.matmul %102, %104, %cst_60 {dimension_numbers = #tpu.dot_dimension_numbers<[1], [0], [0], [1], [0, 0, 1, 1], [], []>} : vector<64x6xf32>, vector<6x4xf32>, vector<64x4xf32> -> vector<64x4xf32>
    %106 = arith.addf %100, %105 : vector<64x4xf32>
    %107 = vector.extract_strided_slice %58 {offsets = [2, 2, 0], sizes = [8, 8, 6], strides = [1, 1, 1]} : vector<10x10x6xf32> to vector<8x8x6xf32>
    %108 = vector.shape_cast %107 : vector<8x8x6xf32> to vector<64x6xf32>
    %c17 = arith.constant 17 : index
    %c0_61 = arith.constant 0 : index
    %c0_62 = arith.constant 0 : index
    %109 = vector.load %arg5[%c17, %c0_61, %c0_62] : memref<27x6x4xf32, #tpu.memory_space<vmem>>, vector<1x6x4xf32>
    %110 = vector.shape_cast %109 : vector<1x6x4xf32> to vector<6x4xf32>
    %cst_63 = arith.constant dense<0.000000e+00> : vector<64x4xf32>
    %111 = tpu.matmul %108, %110, %cst_63 {dimension_numbers = #tpu.dot_dimension_numbers<[1], [0], [0], [1], [0, 0, 1, 1], [], []>} : vector<64x6xf32>, vector<6x4xf32>, vector<64x4xf32> -> vector<64x4xf32>
    %112 = arith.addf %106, %111 : vector<64x4xf32>
    %c0_64 = arith.constant 0 : index
    %c0_65 = arith.constant 0 : index
    %c0_66 = arith.constant 0 : index
    %c0_67 = arith.constant 0 : index
    %c0_68 = arith.constant 0 : index
    %113 = vector.load %arg4[%c0_64, %c0_65, %c0_66, %c0_67, %c0_68] : memref<1x1x10x10x6xf32, #tpu.memory_space<vmem>>, vector<1x1x10x10x6xf32>
    %114 = vector.shape_cast %113 : vector<1x1x10x10x6xf32> to vector<10x10x6xf32>
    %115 = vector.extract_strided_slice %114 {offsets = [0, 0, 0], sizes = [8, 8, 6], strides = [1, 1, 1]} : vector<10x10x6xf32> to vector<8x8x6xf32>
    %116 = vector.shape_cast %115 : vector<8x8x6xf32> to vector<64x6xf32>
    %c18 = arith.constant 18 : index
    %c0_69 = arith.constant 0 : index
    %c0_70 = arith.constant 0 : index
    %117 = vector.load %arg5[%c18, %c0_69, %c0_70] : memref<27x6x4xf32, #tpu.memory_space<vmem>>, vector<1x6x4xf32>
    %118 = vector.shape_cast %117 : vector<1x6x4xf32> to vector<6x4xf32>
    %cst_71 = arith.constant dense<0.000000e+00> : vector<64x4xf32>
    %119 = tpu.matmul %116, %118, %cst_71 {dimension_numbers = #tpu.dot_dimension_numbers<[1], [0], [0], [1], [0, 0, 1, 1], [], []>} : vector<64x6xf32>, vector<6x4xf32>, vector<64x4xf32> -> vector<64x4xf32>
    %120 = arith.addf %112, %119 : vector<64x4xf32>
    %121 = vector.extract_strided_slice %114 {offsets = [0, 1, 0], sizes = [8, 8, 6], strides = [1, 1, 1]} : vector<10x10x6xf32> to vector<8x8x6xf32>
    %122 = vector.shape_cast %121 : vector<8x8x6xf32> to vector<64x6xf32>
    %c19 = arith.constant 19 : index
    %c0_72 = arith.constant 0 : index
    %c0_73 = arith.constant 0 : index
    %123 = vector.load %arg5[%c19, %c0_72, %c0_73] : memref<27x6x4xf32, #tpu.memory_space<vmem>>, vector<1x6x4xf32>
    %124 = vector.shape_cast %123 : vector<1x6x4xf32> to vector<6x4xf32>
    %cst_74 = arith.constant dense<0.000000e+00> : vector<64x4xf32>
    %125 = tpu.matmul %122, %124, %cst_74 {dimension_numbers = #tpu.dot_dimension_numbers<[1], [0], [0], [1], [0, 0, 1, 1], [], []>} : vector<64x6xf32>, vector<6x4xf32>, vector<64x4xf32> -> vector<64x4xf32>
    %126 = arith.addf %120, %125 : vector<64x4xf32>
    %127 = vector.extract_strided_slice %114 {offsets = [0, 2, 0], sizes = [8, 8, 6], strides = [1, 1, 1]} : vector<10x10x6xf32> to vector<8x8x6xf32>
    %128 = vector.shape_cast %127 : vector<8x8x6xf32> to vector<64x6xf32>
    %c20 = arith.constant 20 : index
    %c0_75 = arith.constant 0 : index
    %c0_76 = arith.constant 0 : index
    %129 = vector.load %arg5[%c20, %c0_75, %c0_76] : memref<27x6x4xf32, #tpu.memory_space<vmem>>, vector<1x6x4xf32>
    %130 = vector.shape_cast %129 : vector<1x6x4xf32> to vector<6x4xf32>
    %cst_77 = arith.constant dense<0.000000e+00> : vector<64x4xf32>
    %131 = tpu.matmul %128, %130, %cst_77 {dimension_numbers = #tpu.dot_dimension_numbers<[1], [0], [0], [1], [0, 0, 1, 1], [], []>} : vector<64x6xf32>, vector<6x4xf32>, vector<64x4xf32> -> vector<64x4xf32>
    %132 = arith.addf %126, %131 : vector<64x4xf32>
    %133 = vector.extract_strided_slice %114 {offsets = [1, 0, 0], sizes = [8, 8, 6], strides = [1, 1, 1]} : vector<10x10x6xf32> to vector<8x8x6xf32>
    %134 = vector.shape_cast %133 : vector<8x8x6xf32> to vector<64x6xf32>
    %c21 = arith.constant 21 : index
    %c0_78 = arith.constant 0 : index
    %c0_79 = arith.constant 0 : index
    %135 = vector.load %arg5[%c21, %c0_78, %c0_79] : memref<27x6x4xf32, #tpu.memory_space<vmem>>, vector<1x6x4xf32>
    %136 = vector.shape_cast %135 : vector<1x6x4xf32> to vector<6x4xf32>
    %cst_80 = arith.constant dense<0.000000e+00> : vector<64x4xf32>
    %137 = tpu.matmul %134, %136, %cst_80 {dimension_numbers = #tpu.dot_dimension_numbers<[1], [0], [0], [1], [0, 0, 1, 1], [], []>} : vector<64x6xf32>, vector<6x4xf32>, vector<64x4xf32> -> vector<64x4xf32>
    %138 = arith.addf %132, %137 : vector<64x4xf32>
    %139 = vector.extract_strided_slice %114 {offsets = [1, 1, 0], sizes = [8, 8, 6], strides = [1, 1, 1]} : vector<10x10x6xf32> to vector<8x8x6xf32>
    %140 = vector.shape_cast %139 : vector<8x8x6xf32> to vector<64x6xf32>
    %c22 = arith.constant 22 : index
    %c0_81 = arith.constant 0 : index
    %c0_82 = arith.constant 0 : index
    %141 = vector.load %arg5[%c22, %c0_81, %c0_82] : memref<27x6x4xf32, #tpu.memory_space<vmem>>, vector<1x6x4xf32>
    %142 = vector.shape_cast %141 : vector<1x6x4xf32> to vector<6x4xf32>
    %cst_83 = arith.constant dense<0.000000e+00> : vector<64x4xf32>
    %143 = tpu.matmul %140, %142, %cst_83 {dimension_numbers = #tpu.dot_dimension_numbers<[1], [0], [0], [1], [0, 0, 1, 1], [], []>} : vector<64x6xf32>, vector<6x4xf32>, vector<64x4xf32> -> vector<64x4xf32>
    %144 = arith.addf %138, %143 : vector<64x4xf32>
    %145 = vector.extract_strided_slice %114 {offsets = [1, 2, 0], sizes = [8, 8, 6], strides = [1, 1, 1]} : vector<10x10x6xf32> to vector<8x8x6xf32>
    %146 = vector.shape_cast %145 : vector<8x8x6xf32> to vector<64x6xf32>
    %c23 = arith.constant 23 : index
    %c0_84 = arith.constant 0 : index
    %c0_85 = arith.constant 0 : index
    %147 = vector.load %arg5[%c23, %c0_84, %c0_85] : memref<27x6x4xf32, #tpu.memory_space<vmem>>, vector<1x6x4xf32>
    %148 = vector.shape_cast %147 : vector<1x6x4xf32> to vector<6x4xf32>
    %cst_86 = arith.constant dense<0.000000e+00> : vector<64x4xf32>
    %149 = tpu.matmul %146, %148, %cst_86 {dimension_numbers = #tpu.dot_dimension_numbers<[1], [0], [0], [1], [0, 0, 1, 1], [], []>} : vector<64x6xf32>, vector<6x4xf32>, vector<64x4xf32> -> vector<64x4xf32>
    %150 = arith.addf %144, %149 : vector<64x4xf32>
    %151 = vector.extract_strided_slice %114 {offsets = [2, 0, 0], sizes = [8, 8, 6], strides = [1, 1, 1]} : vector<10x10x6xf32> to vector<8x8x6xf32>
    %152 = vector.shape_cast %151 : vector<8x8x6xf32> to vector<64x6xf32>
    %c24 = arith.constant 24 : index
    %c0_87 = arith.constant 0 : index
    %c0_88 = arith.constant 0 : index
    %153 = vector.load %arg5[%c24, %c0_87, %c0_88] : memref<27x6x4xf32, #tpu.memory_space<vmem>>, vector<1x6x4xf32>
    %154 = vector.shape_cast %153 : vector<1x6x4xf32> to vector<6x4xf32>
    %cst_89 = arith.constant dense<0.000000e+00> : vector<64x4xf32>
    %155 = tpu.matmul %152, %154, %cst_89 {dimension_numbers = #tpu.dot_dimension_numbers<[1], [0], [0], [1], [0, 0, 1, 1], [], []>} : vector<64x6xf32>, vector<6x4xf32>, vector<64x4xf32> -> vector<64x4xf32>
    %156 = arith.addf %150, %155 : vector<64x4xf32>
    %157 = vector.extract_strided_slice %114 {offsets = [2, 1, 0], sizes = [8, 8, 6], strides = [1, 1, 1]} : vector<10x10x6xf32> to vector<8x8x6xf32>
    %158 = vector.shape_cast %157 : vector<8x8x6xf32> to vector<64x6xf32>
    %c25 = arith.constant 25 : index
    %c0_90 = arith.constant 0 : index
    %c0_91 = arith.constant 0 : index
    %159 = vector.load %arg5[%c25, %c0_90, %c0_91] : memref<27x6x4xf32, #tpu.memory_space<vmem>>, vector<1x6x4xf32>
    %160 = vector.shape_cast %159 : vector<1x6x4xf32> to vector<6x4xf32>
    %cst_92 = arith.constant dense<0.000000e+00> : vector<64x4xf32>
    %161 = tpu.matmul %158, %160, %cst_92 {dimension_numbers = #tpu.dot_dimension_numbers<[1], [0], [0], [1], [0, 0, 1, 1], [], []>} : vector<64x6xf32>, vector<6x4xf32>, vector<64x4xf32> -> vector<64x4xf32>
    %162 = arith.addf %156, %161 : vector<64x4xf32>
    %163 = vector.extract_strided_slice %114 {offsets = [2, 2, 0], sizes = [8, 8, 6], strides = [1, 1, 1]} : vector<10x10x6xf32> to vector<8x8x6xf32>
    %164 = vector.shape_cast %163 : vector<8x8x6xf32> to vector<64x6xf32>
    %c26 = arith.constant 26 : index
    %c0_93 = arith.constant 0 : index
    %c0_94 = arith.constant 0 : index
    %165 = vector.load %arg5[%c26, %c0_93, %c0_94] : memref<27x6x4xf32, #tpu.memory_space<vmem>>, vector<1x6x4xf32>
    %166 = vector.shape_cast %165 : vector<1x6x4xf32> to vector<6x4xf32>
    %cst_95 = arith.constant dense<0.000000e+00> : vector<64x4xf32>
    %167 = tpu.matmul %164, %166, %cst_95 {dimension_numbers = #tpu.dot_dimension_numbers<[1], [0], [0], [1], [0, 0, 1, 1], [], []>} : vector<64x6xf32>, vector<6x4xf32>, vector<64x4xf32> -> vector<64x4xf32>
    %168 = arith.addf %162, %167 : vector<64x4xf32>
    %c0_96 = arith.constant 0 : index
    %c0_97 = arith.constant 0 : index
    %169 = vector.load %arg6[%c0_96, %c0_97] : memref<1x4xf32, #tpu.memory_space<vmem>>, vector<1x4xf32>
    %170 = vector.broadcast %169 : vector<1x4xf32> to vector<64x4xf32>
    %171 = arith.addf %168, %170 : vector<64x4xf32>
    %cst_98 = arith.constant dense<0.000000e+00> : vector<4xf32>
    %172 = vector.multi_reduction <add>, %171, %cst_98 [0] : vector<64x4xf32> to vector<4xf32>
    %173 = vector.shape_cast %172 : vector<4xf32> to vector<1x4xf32>
    %c0_99 = arith.constant 0 : index
    %c0_100 = arith.constant 0 : index
    %c0_101 = arith.constant 0 : index
    %c0_102 = arith.constant 0 : index
    %174 = vector.load %arg8[%c0_99, %c0_100, %c0_101, %c0_102] : memref<1x1x1x4xf32, #tpu.memory_space<vmem>>, vector<1x1x1x4xf32>
    %175 = vector.shape_cast %174 : vector<1x1x1x4xf32> to vector<1x4xf32>
    %176 = vector.shape_cast %173 : vector<1x4xf32> to vector<1x1x1x4xf32>
    tpu.vector_store %arg8[%c0_99, %c0_100, %c0_101, %c0_102], %176 {strides = array<i32>} : memref<1x1x1x4xf32, #tpu.memory_space<vmem>>, vector<1x1x1x4xf32>,
    %177 = arith.mulf %171, %171 : vector<64x4xf32>
    %cst_103 = arith.constant dense<0.000000e+00> : vector<4xf32>
    %178 = vector.multi_reduction <add>, %177, %cst_103 [0] : vector<64x4xf32> to vector<4xf32>
    %179 = vector.shape_cast %178 : vector<4xf32> to vector<1x4xf32>
    %c0_104 = arith.constant 0 : index
    %c0_105 = arith.constant 0 : index
    %c0_106 = arith.constant 0 : index
    %c0_107 = arith.constant 0 : index
    %180 = vector.load %arg9[%c0_104, %c0_105, %c0_106, %c0_107] : memref<1x1x1x4xf32, #tpu.memory_space<vmem>>, vector<1x1x1x4xf32>
    %181 = vector.shape_cast %180 : vector<1x1x1x4xf32> to vector<1x4xf32>
    %182 = vector.shape_cast %179 : vector<1x4xf32> to vector<1x1x1x4xf32>
    tpu.vector_store %arg9[%c0_104, %c0_105, %c0_106, %c0_107], %182 {strides = array<i32>} : memref<1x1x1x4xf32, #tpu.memory_space<vmem>>, vector<1x1x1x4xf32>,
    %183 = vector.shape_cast %171 : vector<64x4xf32> to vector<8x8x4xf32>
    %c0_108 = arith.constant 0 : index
    %c0_109 = arith.constant 0 : index
    %c0_110 = arith.constant 0 : index
    %c0_111 = arith.constant 0 : index
    %c0_112 = arith.constant 0 : index
    %184 = vector.load %arg7[%c0_108, %c0_109, %c0_110, %c0_111, %c0_112] : memref<1x1x8x8x4xf32, #tpu.memory_space<vmem>>, vector<1x1x8x8x4xf32>
    %185 = vector.shape_cast %184 : vector<1x1x8x8x4xf32> to vector<8x8x4xf32>
    %186 = vector.shape_cast %183 : vector<8x8x4xf32> to vector<1x1x8x8x4xf32>
    tpu.vector_store %arg7[%c0_108, %c0_109, %c0_110, %c0_111, %c0_112], %186 {strides = array<i32>} : memref<1x1x8x8x4xf32, #tpu.memory_space<vmem>>, vector<1x1x8x8x4xf32>,
    return
  }
  func.func @transform_0(%arg0: i32, %arg1: i32) -> (i32, i32, i32, i32, i32) {
    %c0_i32 = arith.constant 0 : i32
    %0 = arith.addi %arg1, %c0_i32 : i32
    %c0_i32_0 = arith.constant 0 : i32
    %c0_i32_1 = arith.constant 0 : i32
    %c0_i32_2 = arith.constant 0 : i32
    %c0_i32_3 = arith.constant 0 : i32
    return %arg0, %0, %c0_i32_0, %c0_i32_1, %c0_i32_2 : i32, i32, i32, i32, i32
  }
  func.func @transform_1(%arg0: i32, %arg1: i32) -> (i32, i32, i32, i32, i32) {
    %c1_i32 = arith.constant 1 : i32
    %0 = arith.addi %arg1, %c1_i32 : i32
    %c0_i32 = arith.constant 0 : i32
    %c0_i32_0 = arith.constant 0 : i32
    %c0_i32_1 = arith.constant 0 : i32
    %c0_i32_2 = arith.constant 0 : i32
    return %arg0, %0, %c0_i32, %c0_i32_0, %c0_i32_1 : i32, i32, i32, i32, i32
  }
  func.func @transform_2(%arg0: i32, %arg1: i32) -> (i32, i32, i32, i32, i32) {
    %c2_i32 = arith.constant 2 : i32
    %0 = arith.addi %arg1, %c2_i32 : i32
    %c0_i32 = arith.constant 0 : i32
    %c0_i32_0 = arith.constant 0 : i32
    %c0_i32_1 = arith.constant 0 : i32
    %c0_i32_2 = arith.constant 0 : i32
    return %arg0, %0, %c0_i32, %c0_i32_0, %c0_i32_1 : i32, i32, i32, i32, i32
  }
  func.func @transform_3(%arg0: i32, %arg1: i32) -> (i32, i32, i32) {
    %c0_i32 = arith.constant 0 : i32
    %c0_i32_0 = arith.constant 0 : i32
    %c0_i32_1 = arith.constant 0 : i32
    %c0_i32_2 = arith.constant 0 : i32
    return %c0_i32, %c0_i32_0, %c0_i32_1 : i32, i32, i32
  }
  func.func @transform_4(%arg0: i32, %arg1: i32) -> (i32, i32) {
    %c0_i32 = arith.constant 0 : i32
    %c0_i32_0 = arith.constant 0 : i32
    %c0_i32_1 = arith.constant 0 : i32
    return %c0_i32, %c0_i32_0 : i32, i32
  }
  func.func @transform_5(%arg0: i32, %arg1: i32) -> (i32, i32, i32, i32, i32) {
    %c0_i32 = arith.constant 0 : i32
    %c0_i32_0 = arith.constant 0 : i32
    %c0_i32_1 = arith.constant 0 : i32
    %c0_i32_2 = arith.constant 0 : i32
    return %arg0, %arg1, %c0_i32, %c0_i32_0, %c0_i32_1 : i32, i32, i32, i32, i32
  }
  func.func @transform_6(%arg0: i32, %arg1: i32) -> (i32, i32, i32, i32) {
    %c0_i32 = arith.constant 0 : i32
    %c0_i32_0 = arith.constant 0 : i32
    %c0_i32_1 = arith.constant 0 : i32
    return %arg0, %arg1, %c0_i32, %c0_i32_0 : i32, i32, i32, i32
  }
  func.func @transform_7(%arg0: i32, %arg1: i32) -> (i32, i32, i32, i32) {
    %c0_i32 = arith.constant 0 : i32
    %c0_i32_0 = arith.constant 0 : i32
    %c0_i32_1 = arith.constant 0 : i32
    return %arg0, %arg1, %c0_i32, %c0_i32_0 : i32, i32, i32, i32
  }
}

module attributes {stable_mosaic.version = 11 : i64} {
  func.func @kernel(%arg0: i32, %arg1: i32, %arg2: memref<1x1x10x10x4xf32, #tpu.memory_space<vmem>>, %arg3: memref<1x1x10x10x4xf32, #tpu.memory_space<vmem>>, %arg4: memref<1x1x10x10x4xf32, #tpu.memory_space<vmem>>, %arg5: memref<27x4x4xf32, #tpu.memory_space<vmem>>, %arg6: memref<1x4xf32, #tpu.memory_space<vmem>>, %arg7: memref<1x4xf32, #tpu.memory_space<vmem>>, %arg8: memref<1x4xf32, #tpu.memory_space<vmem>>, %arg9: memref<1x1x8x8x4xf32, #tpu.memory_space<vmem>>, %arg10: memref<1x1x1x4xf32, #tpu.memory_space<vmem>>, %arg11: memref<1x1x1x4xf32, #tpu.memory_space<vmem>>) attributes {dimension_semantics = [#tpu.dimension_semantics<parallel>, #tpu.dimension_semantics<parallel>], iteration_bounds = array<i64: 2, 8>, scalar_prefetch = 0 : i64, scratch_operands = 0 : i64, tpu.core_type = #tpu.core_type<tc>, window_params = [{transform_indices = @transform_0, window_bounds = array<i64: 1, 1, 10, 10, 4>}, {transform_indices = @transform_1, window_bounds = array<i64: 1, 1, 10, 10, 4>}, {transform_indices = @transform_2, window_bounds = array<i64: 1, 1, 10, 10, 4>}, {pipeline_mode = #tpu.pipeline_mode<synchronous>, transform_indices = @transform_3, window_bounds = array<i64: 27, 4, 4>}, {pipeline_mode = #tpu.pipeline_mode<synchronous>, transform_indices = @transform_4, window_bounds = array<i64: 1, 4>}, {pipeline_mode = #tpu.pipeline_mode<synchronous>, transform_indices = @transform_5, window_bounds = array<i64: 1, 4>}, {pipeline_mode = #tpu.pipeline_mode<synchronous>, transform_indices = @transform_6, window_bounds = array<i64: 1, 4>}, {transform_indices = @transform_7, window_bounds = array<i64: 1, 1, 8, 8, 4>}, {transform_indices = @transform_8, window_bounds = array<i64: 1, 1, 1, 4>}, {transform_indices = @transform_9, window_bounds = array<i64: 1, 1, 1, 4>}]} {
    %0 = tpu.iota {dimensions = array<i32: 0>} : vector<10x10x1xi32>
    %1 = tpu.iota {dimensions = array<i32: 1>} : vector<10x10x1xi32>
    %c1_i32 = arith.constant 1 : i32
    %2 = vector.broadcast %c1_i32 : i32 to vector<10x10x1xi32>
    %3 = arith.cmpi sge, %0, %2 : vector<10x10x1xi32>
    %c8_i32 = arith.constant 8 : i32
    %4 = vector.broadcast %c8_i32 : i32 to vector<10x10x1xi32>
    %5 = arith.cmpi sle, %0, %4 : vector<10x10x1xi32>
    %6 = arith.andi %3, %5 : vector<10x10x1xi1>
    %c1_i32_0 = arith.constant 1 : i32
    %7 = vector.broadcast %c1_i32_0 : i32 to vector<10x10x1xi32>
    %8 = arith.cmpi sge, %1, %7 : vector<10x10x1xi32>
    %c8_i32_1 = arith.constant 8 : i32
    %9 = vector.broadcast %c8_i32_1 : i32 to vector<10x10x1xi32>
    %10 = arith.cmpi sle, %1, %9 : vector<10x10x1xi32>
    %11 = arith.andi %8, %10 : vector<10x10x1xi1>
    %12 = arith.andi %6, %11 : vector<10x10x1xi1>
    %c0 = arith.constant 0 : index
    %c0_2 = arith.constant 0 : index
    %13 = vector.load %arg7[%c0, %c0_2] : memref<1x4xf32, #tpu.memory_space<vmem>>, vector<1x4xf32>
    %14 = vector.shape_cast %13 : vector<1x4xf32> to vector<1x1x4xf32>
    %c0_3 = arith.constant 0 : index
    %c0_4 = arith.constant 0 : index
    %15 = vector.load %arg8[%c0_3, %c0_4] : memref<1x4xf32, #tpu.memory_space<vmem>>, vector<1x4xf32>
    %16 = vector.shape_cast %15 : vector<1x4xf32> to vector<1x1x4xf32>
    %cst = arith.constant 0.000000e+00 : f32
    %17 = vector.broadcast %cst : f32 to vector<64x4xf32>
    %c0_5 = arith.constant 0 : index
    %c0_6 = arith.constant 0 : index
    %c0_7 = arith.constant 0 : index
    %c0_8 = arith.constant 0 : index
    %c0_9 = arith.constant 0 : index
    %18 = vector.load %arg2[%c0_5, %c0_6, %c0_7, %c0_8, %c0_9] : memref<1x1x10x10x4xf32, #tpu.memory_space<vmem>>, vector<1x1x10x10x4xf32>
    %19 = vector.shape_cast %18 : vector<1x1x10x10x4xf32> to vector<10x10x4xf32>
    %20 = vector.broadcast %14 : vector<1x1x4xf32> to vector<10x10x4xf32>
    %21 = arith.mulf %19, %20 : vector<10x10x4xf32>
    %22 = vector.broadcast %16 : vector<1x1x4xf32> to vector<10x10x4xf32>
    %23 = arith.addf %21, %22 : vector<10x10x4xf32>
    %cst_10 = arith.constant 0.000000e+00 : f32
    %24 = vector.broadcast %cst_10 : f32 to vector<10x10x4xf32>
    %25 = arith.maximumf %23, %24 : vector<10x10x4xf32>
    %c0_i32 = arith.constant 0 : i32
    %26 = arith.addi %arg1, %c0_i32 : i32
    %c1_i32_11 = arith.constant 1 : i32
    %27 = arith.cmpi sge, %26, %c1_i32_11 : i32
    %c0_i32_12 = arith.constant 0 : i32
    %28 = arith.addi %arg1, %c0_i32_12 : i32
    %c8_i32_13 = arith.constant 8 : i32
    %29 = arith.cmpi sle, %28, %c8_i32_13 : i32
    %30 = arith.andi %27, %29 : i1
    %31 = vector.broadcast %30 : i1 to vector<10x10x1xi1>
    %32 = arith.andi %12, %31 : vector<10x10x1xi1>
    %cst_14 = arith.constant 0.000000e+00 : f32
    %33 = vector.shape_cast %32 : vector<10x10x1xi1> to vector<10x10x1xi1>
    %34 = vector.broadcast %33 : vector<10x10x1xi1> to vector<10x10x4xi1>
    %35 = vector.broadcast %cst_14 : f32 to vector<10x10x4xf32>
    %36 = arith.select %34, %25, %35 : vector<10x10x4xi1>, vector<10x10x4xf32>
    %37 = vector.extract_strided_slice %36 {offsets = [0, 0, 0], sizes = [8, 8, 4], strides = [1, 1, 1]} : vector<10x10x4xf32> to vector<8x8x4xf32>
    %38 = vector.shape_cast %37 : vector<8x8x4xf32> to vector<64x4xf32>
    %c0_15 = arith.constant 0 : index
    %c0_16 = arith.constant 0 : index
    %c0_17 = arith.constant 0 : index
    %39 = vector.load %arg5[%c0_15, %c0_16, %c0_17] : memref<27x4x4xf32, #tpu.memory_space<vmem>>, vector<1x4x4xf32>
    %40 = vector.shape_cast %39 : vector<1x4x4xf32> to vector<4x4xf32>
    %cst_18 = arith.constant dense<0.000000e+00> : vector<64x4xf32>
    %41 = tpu.matmul %38, %40, %cst_18 {dimension_numbers = #tpu.dot_dimension_numbers<[1], [0], [0], [1], [0, 0, 1, 1], [], []>} : vector<64x4xf32>, vector<4x4xf32>, vector<64x4xf32> -> vector<64x4xf32>
    %42 = arith.addf %17, %41 : vector<64x4xf32>
    %43 = vector.extract_strided_slice %36 {offsets = [0, 1, 0], sizes = [8, 8, 4], strides = [1, 1, 1]} : vector<10x10x4xf32> to vector<8x8x4xf32>
    %44 = vector.shape_cast %43 : vector<8x8x4xf32> to vector<64x4xf32>
    %c1 = arith.constant 1 : index
    %c0_19 = arith.constant 0 : index
    %c0_20 = arith.constant 0 : index
    %45 = vector.load %arg5[%c1, %c0_19, %c0_20] : memref<27x4x4xf32, #tpu.memory_space<vmem>>, vector<1x4x4xf32>
    %46 = vector.shape_cast %45 : vector<1x4x4xf32> to vector<4x4xf32>
    %cst_21 = arith.constant dense<0.000000e+00> : vector<64x4xf32>
    %47 = tpu.matmul %44, %46, %cst_21 {dimension_numbers = #tpu.dot_dimension_numbers<[1], [0], [0], [1], [0, 0, 1, 1], [], []>} : vector<64x4xf32>, vector<4x4xf32>, vector<64x4xf32> -> vector<64x4xf32>
    %48 = arith.addf %42, %47 : vector<64x4xf32>
    %49 = vector.extract_strided_slice %36 {offsets = [0, 2, 0], sizes = [8, 8, 4], strides = [1, 1, 1]} : vector<10x10x4xf32> to vector<8x8x4xf32>
    %50 = vector.shape_cast %49 : vector<8x8x4xf32> to vector<64x4xf32>
    %c2 = arith.constant 2 : index
    %c0_22 = arith.constant 0 : index
    %c0_23 = arith.constant 0 : index
    %51 = vector.load %arg5[%c2, %c0_22, %c0_23] : memref<27x4x4xf32, #tpu.memory_space<vmem>>, vector<1x4x4xf32>
    %52 = vector.shape_cast %51 : vector<1x4x4xf32> to vector<4x4xf32>
    %cst_24 = arith.constant dense<0.000000e+00> : vector<64x4xf32>
    %53 = tpu.matmul %50, %52, %cst_24 {dimension_numbers = #tpu.dot_dimension_numbers<[1], [0], [0], [1], [0, 0, 1, 1], [], []>} : vector<64x4xf32>, vector<4x4xf32>, vector<64x4xf32> -> vector<64x4xf32>
    %54 = arith.addf %48, %53 : vector<64x4xf32>
    %55 = vector.extract_strided_slice %36 {offsets = [1, 0, 0], sizes = [8, 8, 4], strides = [1, 1, 1]} : vector<10x10x4xf32> to vector<8x8x4xf32>
    %56 = vector.shape_cast %55 : vector<8x8x4xf32> to vector<64x4xf32>
    %c3 = arith.constant 3 : index
    %c0_25 = arith.constant 0 : index
    %c0_26 = arith.constant 0 : index
    %57 = vector.load %arg5[%c3, %c0_25, %c0_26] : memref<27x4x4xf32, #tpu.memory_space<vmem>>, vector<1x4x4xf32>
    %58 = vector.shape_cast %57 : vector<1x4x4xf32> to vector<4x4xf32>
    %cst_27 = arith.constant dense<0.000000e+00> : vector<64x4xf32>
    %59 = tpu.matmul %56, %58, %cst_27 {dimension_numbers = #tpu.dot_dimension_numbers<[1], [0], [0], [1], [0, 0, 1, 1], [], []>} : vector<64x4xf32>, vector<4x4xf32>, vector<64x4xf32> -> vector<64x4xf32>
    %60 = arith.addf %54, %59 : vector<64x4xf32>
    %61 = vector.extract_strided_slice %36 {offsets = [1, 1, 0], sizes = [8, 8, 4], strides = [1, 1, 1]} : vector<10x10x4xf32> to vector<8x8x4xf32>
    %62 = vector.shape_cast %61 : vector<8x8x4xf32> to vector<64x4xf32>
    %c4 = arith.constant 4 : index
    %c0_28 = arith.constant 0 : index
    %c0_29 = arith.constant 0 : index
    %63 = vector.load %arg5[%c4, %c0_28, %c0_29] : memref<27x4x4xf32, #tpu.memory_space<vmem>>, vector<1x4x4xf32>
    %64 = vector.shape_cast %63 : vector<1x4x4xf32> to vector<4x4xf32>
    %cst_30 = arith.constant dense<0.000000e+00> : vector<64x4xf32>
    %65 = tpu.matmul %62, %64, %cst_30 {dimension_numbers = #tpu.dot_dimension_numbers<[1], [0], [0], [1], [0, 0, 1, 1], [], []>} : vector<64x4xf32>, vector<4x4xf32>, vector<64x4xf32> -> vector<64x4xf32>
    %66 = arith.addf %60, %65 : vector<64x4xf32>
    %67 = vector.extract_strided_slice %36 {offsets = [1, 2, 0], sizes = [8, 8, 4], strides = [1, 1, 1]} : vector<10x10x4xf32> to vector<8x8x4xf32>
    %68 = vector.shape_cast %67 : vector<8x8x4xf32> to vector<64x4xf32>
    %c5 = arith.constant 5 : index
    %c0_31 = arith.constant 0 : index
    %c0_32 = arith.constant 0 : index
    %69 = vector.load %arg5[%c5, %c0_31, %c0_32] : memref<27x4x4xf32, #tpu.memory_space<vmem>>, vector<1x4x4xf32>
    %70 = vector.shape_cast %69 : vector<1x4x4xf32> to vector<4x4xf32>
    %cst_33 = arith.constant dense<0.000000e+00> : vector<64x4xf32>
    %71 = tpu.matmul %68, %70, %cst_33 {dimension_numbers = #tpu.dot_dimension_numbers<[1], [0], [0], [1], [0, 0, 1, 1], [], []>} : vector<64x4xf32>, vector<4x4xf32>, vector<64x4xf32> -> vector<64x4xf32>
    %72 = arith.addf %66, %71 : vector<64x4xf32>
    %73 = vector.extract_strided_slice %36 {offsets = [2, 0, 0], sizes = [8, 8, 4], strides = [1, 1, 1]} : vector<10x10x4xf32> to vector<8x8x4xf32>
    %74 = vector.shape_cast %73 : vector<8x8x4xf32> to vector<64x4xf32>
    %c6 = arith.constant 6 : index
    %c0_34 = arith.constant 0 : index
    %c0_35 = arith.constant 0 : index
    %75 = vector.load %arg5[%c6, %c0_34, %c0_35] : memref<27x4x4xf32, #tpu.memory_space<vmem>>, vector<1x4x4xf32>
    %76 = vector.shape_cast %75 : vector<1x4x4xf32> to vector<4x4xf32>
    %cst_36 = arith.constant dense<0.000000e+00> : vector<64x4xf32>
    %77 = tpu.matmul %74, %76, %cst_36 {dimension_numbers = #tpu.dot_dimension_numbers<[1], [0], [0], [1], [0, 0, 1, 1], [], []>} : vector<64x4xf32>, vector<4x4xf32>, vector<64x4xf32> -> vector<64x4xf32>
    %78 = arith.addf %72, %77 : vector<64x4xf32>
    %79 = vector.extract_strided_slice %36 {offsets = [2, 1, 0], sizes = [8, 8, 4], strides = [1, 1, 1]} : vector<10x10x4xf32> to vector<8x8x4xf32>
    %80 = vector.shape_cast %79 : vector<8x8x4xf32> to vector<64x4xf32>
    %c7 = arith.constant 7 : index
    %c0_37 = arith.constant 0 : index
    %c0_38 = arith.constant 0 : index
    %81 = vector.load %arg5[%c7, %c0_37, %c0_38] : memref<27x4x4xf32, #tpu.memory_space<vmem>>, vector<1x4x4xf32>
    %82 = vector.shape_cast %81 : vector<1x4x4xf32> to vector<4x4xf32>
    %cst_39 = arith.constant dense<0.000000e+00> : vector<64x4xf32>
    %83 = tpu.matmul %80, %82, %cst_39 {dimension_numbers = #tpu.dot_dimension_numbers<[1], [0], [0], [1], [0, 0, 1, 1], [], []>} : vector<64x4xf32>, vector<4x4xf32>, vector<64x4xf32> -> vector<64x4xf32>
    %84 = arith.addf %78, %83 : vector<64x4xf32>
    %85 = vector.extract_strided_slice %36 {offsets = [2, 2, 0], sizes = [8, 8, 4], strides = [1, 1, 1]} : vector<10x10x4xf32> to vector<8x8x4xf32>
    %86 = vector.shape_cast %85 : vector<8x8x4xf32> to vector<64x4xf32>
    %c8 = arith.constant 8 : index
    %c0_40 = arith.constant 0 : index
    %c0_41 = arith.constant 0 : index
    %87 = vector.load %arg5[%c8, %c0_40, %c0_41] : memref<27x4x4xf32, #tpu.memory_space<vmem>>, vector<1x4x4xf32>
    %88 = vector.shape_cast %87 : vector<1x4x4xf32> to vector<4x4xf32>
    %cst_42 = arith.constant dense<0.000000e+00> : vector<64x4xf32>
    %89 = tpu.matmul %86, %88, %cst_42 {dimension_numbers = #tpu.dot_dimension_numbers<[1], [0], [0], [1], [0, 0, 1, 1], [], []>} : vector<64x4xf32>, vector<4x4xf32>, vector<64x4xf32> -> vector<64x4xf32>
    %90 = arith.addf %84, %89 : vector<64x4xf32>
    %c0_43 = arith.constant 0 : index
    %c0_44 = arith.constant 0 : index
    %c0_45 = arith.constant 0 : index
    %c0_46 = arith.constant 0 : index
    %c0_47 = arith.constant 0 : index
    %91 = vector.load %arg3[%c0_43, %c0_44, %c0_45, %c0_46, %c0_47] : memref<1x1x10x10x4xf32, #tpu.memory_space<vmem>>, vector<1x1x10x10x4xf32>
    %92 = vector.shape_cast %91 : vector<1x1x10x10x4xf32> to vector<10x10x4xf32>
    %93 = vector.broadcast %14 : vector<1x1x4xf32> to vector<10x10x4xf32>
    %94 = arith.mulf %92, %93 : vector<10x10x4xf32>
    %95 = vector.broadcast %16 : vector<1x1x4xf32> to vector<10x10x4xf32>
    %96 = arith.addf %94, %95 : vector<10x10x4xf32>
    %cst_48 = arith.constant 0.000000e+00 : f32
    %97 = vector.broadcast %cst_48 : f32 to vector<10x10x4xf32>
    %98 = arith.maximumf %96, %97 : vector<10x10x4xf32>
    %c1_i32_49 = arith.constant 1 : i32
    %99 = arith.addi %arg1, %c1_i32_49 : i32
    %c1_i32_50 = arith.constant 1 : i32
    %100 = arith.cmpi sge, %99, %c1_i32_50 : i32
    %c1_i32_51 = arith.constant 1 : i32
    %101 = arith.addi %arg1, %c1_i32_51 : i32
    %c8_i32_52 = arith.constant 8 : i32
    %102 = arith.cmpi sle, %101, %c8_i32_52 : i32
    %103 = arith.andi %100, %102 : i1
    %104 = vector.broadcast %103 : i1 to vector<10x10x1xi1>
    %105 = arith.andi %12, %104 : vector<10x10x1xi1>
    %cst_53 = arith.constant 0.000000e+00 : f32
    %106 = vector.shape_cast %105 : vector<10x10x1xi1> to vector<10x10x1xi1>
    %107 = vector.broadcast %106 : vector<10x10x1xi1> to vector<10x10x4xi1>
    %108 = vector.broadcast %cst_53 : f32 to vector<10x10x4xf32>
    %109 = arith.select %107, %98, %108 : vector<10x10x4xi1>, vector<10x10x4xf32>
    %110 = vector.extract_strided_slice %109 {offsets = [0, 0, 0], sizes = [8, 8, 4], strides = [1, 1, 1]} : vector<10x10x4xf32> to vector<8x8x4xf32>
    %111 = vector.shape_cast %110 : vector<8x8x4xf32> to vector<64x4xf32>
    %c9 = arith.constant 9 : index
    %c0_54 = arith.constant 0 : index
    %c0_55 = arith.constant 0 : index
    %112 = vector.load %arg5[%c9, %c0_54, %c0_55] : memref<27x4x4xf32, #tpu.memory_space<vmem>>, vector<1x4x4xf32>
    %113 = vector.shape_cast %112 : vector<1x4x4xf32> to vector<4x4xf32>
    %cst_56 = arith.constant dense<0.000000e+00> : vector<64x4xf32>
    %114 = tpu.matmul %111, %113, %cst_56 {dimension_numbers = #tpu.dot_dimension_numbers<[1], [0], [0], [1], [0, 0, 1, 1], [], []>} : vector<64x4xf32>, vector<4x4xf32>, vector<64x4xf32> -> vector<64x4xf32>
    %115 = arith.addf %90, %114 : vector<64x4xf32>
    %116 = vector.extract_strided_slice %109 {offsets = [0, 1, 0], sizes = [8, 8, 4], strides = [1, 1, 1]} : vector<10x10x4xf32> to vector<8x8x4xf32>
    %117 = vector.shape_cast %116 : vector<8x8x4xf32> to vector<64x4xf32>
    %c10 = arith.constant 10 : index
    %c0_57 = arith.constant 0 : index
    %c0_58 = arith.constant 0 : index
    %118 = vector.load %arg5[%c10, %c0_57, %c0_58] : memref<27x4x4xf32, #tpu.memory_space<vmem>>, vector<1x4x4xf32>
    %119 = vector.shape_cast %118 : vector<1x4x4xf32> to vector<4x4xf32>
    %cst_59 = arith.constant dense<0.000000e+00> : vector<64x4xf32>
    %120 = tpu.matmul %117, %119, %cst_59 {dimension_numbers = #tpu.dot_dimension_numbers<[1], [0], [0], [1], [0, 0, 1, 1], [], []>} : vector<64x4xf32>, vector<4x4xf32>, vector<64x4xf32> -> vector<64x4xf32>
    %121 = arith.addf %115, %120 : vector<64x4xf32>
    %122 = vector.extract_strided_slice %109 {offsets = [0, 2, 0], sizes = [8, 8, 4], strides = [1, 1, 1]} : vector<10x10x4xf32> to vector<8x8x4xf32>
    %123 = vector.shape_cast %122 : vector<8x8x4xf32> to vector<64x4xf32>
    %c11 = arith.constant 11 : index
    %c0_60 = arith.constant 0 : index
    %c0_61 = arith.constant 0 : index
    %124 = vector.load %arg5[%c11, %c0_60, %c0_61] : memref<27x4x4xf32, #tpu.memory_space<vmem>>, vector<1x4x4xf32>
    %125 = vector.shape_cast %124 : vector<1x4x4xf32> to vector<4x4xf32>
    %cst_62 = arith.constant dense<0.000000e+00> : vector<64x4xf32>
    %126 = tpu.matmul %123, %125, %cst_62 {dimension_numbers = #tpu.dot_dimension_numbers<[1], [0], [0], [1], [0, 0, 1, 1], [], []>} : vector<64x4xf32>, vector<4x4xf32>, vector<64x4xf32> -> vector<64x4xf32>
    %127 = arith.addf %121, %126 : vector<64x4xf32>
    %128 = vector.extract_strided_slice %109 {offsets = [1, 0, 0], sizes = [8, 8, 4], strides = [1, 1, 1]} : vector<10x10x4xf32> to vector<8x8x4xf32>
    %129 = vector.shape_cast %128 : vector<8x8x4xf32> to vector<64x4xf32>
    %c12 = arith.constant 12 : index
    %c0_63 = arith.constant 0 : index
    %c0_64 = arith.constant 0 : index
    %130 = vector.load %arg5[%c12, %c0_63, %c0_64] : memref<27x4x4xf32, #tpu.memory_space<vmem>>, vector<1x4x4xf32>
    %131 = vector.shape_cast %130 : vector<1x4x4xf32> to vector<4x4xf32>
    %cst_65 = arith.constant dense<0.000000e+00> : vector<64x4xf32>
    %132 = tpu.matmul %129, %131, %cst_65 {dimension_numbers = #tpu.dot_dimension_numbers<[1], [0], [0], [1], [0, 0, 1, 1], [], []>} : vector<64x4xf32>, vector<4x4xf32>, vector<64x4xf32> -> vector<64x4xf32>
    %133 = arith.addf %127, %132 : vector<64x4xf32>
    %134 = vector.extract_strided_slice %109 {offsets = [1, 1, 0], sizes = [8, 8, 4], strides = [1, 1, 1]} : vector<10x10x4xf32> to vector<8x8x4xf32>
    %135 = vector.shape_cast %134 : vector<8x8x4xf32> to vector<64x4xf32>
    %c13 = arith.constant 13 : index
    %c0_66 = arith.constant 0 : index
    %c0_67 = arith.constant 0 : index
    %136 = vector.load %arg5[%c13, %c0_66, %c0_67] : memref<27x4x4xf32, #tpu.memory_space<vmem>>, vector<1x4x4xf32>
    %137 = vector.shape_cast %136 : vector<1x4x4xf32> to vector<4x4xf32>
    %cst_68 = arith.constant dense<0.000000e+00> : vector<64x4xf32>
    %138 = tpu.matmul %135, %137, %cst_68 {dimension_numbers = #tpu.dot_dimension_numbers<[1], [0], [0], [1], [0, 0, 1, 1], [], []>} : vector<64x4xf32>, vector<4x4xf32>, vector<64x4xf32> -> vector<64x4xf32>
    %139 = arith.addf %133, %138 : vector<64x4xf32>
    %140 = vector.extract_strided_slice %109 {offsets = [1, 2, 0], sizes = [8, 8, 4], strides = [1, 1, 1]} : vector<10x10x4xf32> to vector<8x8x4xf32>
    %141 = vector.shape_cast %140 : vector<8x8x4xf32> to vector<64x4xf32>
    %c14 = arith.constant 14 : index
    %c0_69 = arith.constant 0 : index
    %c0_70 = arith.constant 0 : index
    %142 = vector.load %arg5[%c14, %c0_69, %c0_70] : memref<27x4x4xf32, #tpu.memory_space<vmem>>, vector<1x4x4xf32>
    %143 = vector.shape_cast %142 : vector<1x4x4xf32> to vector<4x4xf32>
    %cst_71 = arith.constant dense<0.000000e+00> : vector<64x4xf32>
    %144 = tpu.matmul %141, %143, %cst_71 {dimension_numbers = #tpu.dot_dimension_numbers<[1], [0], [0], [1], [0, 0, 1, 1], [], []>} : vector<64x4xf32>, vector<4x4xf32>, vector<64x4xf32> -> vector<64x4xf32>
    %145 = arith.addf %139, %144 : vector<64x4xf32>
    %146 = vector.extract_strided_slice %109 {offsets = [2, 0, 0], sizes = [8, 8, 4], strides = [1, 1, 1]} : vector<10x10x4xf32> to vector<8x8x4xf32>
    %147 = vector.shape_cast %146 : vector<8x8x4xf32> to vector<64x4xf32>
    %c15 = arith.constant 15 : index
    %c0_72 = arith.constant 0 : index
    %c0_73 = arith.constant 0 : index
    %148 = vector.load %arg5[%c15, %c0_72, %c0_73] : memref<27x4x4xf32, #tpu.memory_space<vmem>>, vector<1x4x4xf32>
    %149 = vector.shape_cast %148 : vector<1x4x4xf32> to vector<4x4xf32>
    %cst_74 = arith.constant dense<0.000000e+00> : vector<64x4xf32>
    %150 = tpu.matmul %147, %149, %cst_74 {dimension_numbers = #tpu.dot_dimension_numbers<[1], [0], [0], [1], [0, 0, 1, 1], [], []>} : vector<64x4xf32>, vector<4x4xf32>, vector<64x4xf32> -> vector<64x4xf32>
    %151 = arith.addf %145, %150 : vector<64x4xf32>
    %152 = vector.extract_strided_slice %109 {offsets = [2, 1, 0], sizes = [8, 8, 4], strides = [1, 1, 1]} : vector<10x10x4xf32> to vector<8x8x4xf32>
    %153 = vector.shape_cast %152 : vector<8x8x4xf32> to vector<64x4xf32>
    %c16 = arith.constant 16 : index
    %c0_75 = arith.constant 0 : index
    %c0_76 = arith.constant 0 : index
    %154 = vector.load %arg5[%c16, %c0_75, %c0_76] : memref<27x4x4xf32, #tpu.memory_space<vmem>>, vector<1x4x4xf32>
    %155 = vector.shape_cast %154 : vector<1x4x4xf32> to vector<4x4xf32>
    %cst_77 = arith.constant dense<0.000000e+00> : vector<64x4xf32>
    %156 = tpu.matmul %153, %155, %cst_77 {dimension_numbers = #tpu.dot_dimension_numbers<[1], [0], [0], [1], [0, 0, 1, 1], [], []>} : vector<64x4xf32>, vector<4x4xf32>, vector<64x4xf32> -> vector<64x4xf32>
    %157 = arith.addf %151, %156 : vector<64x4xf32>
    %158 = vector.extract_strided_slice %109 {offsets = [2, 2, 0], sizes = [8, 8, 4], strides = [1, 1, 1]} : vector<10x10x4xf32> to vector<8x8x4xf32>
    %159 = vector.shape_cast %158 : vector<8x8x4xf32> to vector<64x4xf32>
    %c17 = arith.constant 17 : index
    %c0_78 = arith.constant 0 : index
    %c0_79 = arith.constant 0 : index
    %160 = vector.load %arg5[%c17, %c0_78, %c0_79] : memref<27x4x4xf32, #tpu.memory_space<vmem>>, vector<1x4x4xf32>
    %161 = vector.shape_cast %160 : vector<1x4x4xf32> to vector<4x4xf32>
    %cst_80 = arith.constant dense<0.000000e+00> : vector<64x4xf32>
    %162 = tpu.matmul %159, %161, %cst_80 {dimension_numbers = #tpu.dot_dimension_numbers<[1], [0], [0], [1], [0, 0, 1, 1], [], []>} : vector<64x4xf32>, vector<4x4xf32>, vector<64x4xf32> -> vector<64x4xf32>
    %163 = arith.addf %157, %162 : vector<64x4xf32>
    %c0_81 = arith.constant 0 : index
    %c0_82 = arith.constant 0 : index
    %c0_83 = arith.constant 0 : index
    %c0_84 = arith.constant 0 : index
    %c0_85 = arith.constant 0 : index
    %164 = vector.load %arg4[%c0_81, %c0_82, %c0_83, %c0_84, %c0_85] : memref<1x1x10x10x4xf32, #tpu.memory_space<vmem>>, vector<1x1x10x10x4xf32>
    %165 = vector.shape_cast %164 : vector<1x1x10x10x4xf32> to vector<10x10x4xf32>
    %166 = vector.broadcast %14 : vector<1x1x4xf32> to vector<10x10x4xf32>
    %167 = arith.mulf %165, %166 : vector<10x10x4xf32>
    %168 = vector.broadcast %16 : vector<1x1x4xf32> to vector<10x10x4xf32>
    %169 = arith.addf %167, %168 : vector<10x10x4xf32>
    %cst_86 = arith.constant 0.000000e+00 : f32
    %170 = vector.broadcast %cst_86 : f32 to vector<10x10x4xf32>
    %171 = arith.maximumf %169, %170 : vector<10x10x4xf32>
    %c2_i32 = arith.constant 2 : i32
    %172 = arith.addi %arg1, %c2_i32 : i32
    %c1_i32_87 = arith.constant 1 : i32
    %173 = arith.cmpi sge, %172, %c1_i32_87 : i32
    %c2_i32_88 = arith.constant 2 : i32
    %174 = arith.addi %arg1, %c2_i32_88 : i32
    %c8_i32_89 = arith.constant 8 : i32
    %175 = arith.cmpi sle, %174, %c8_i32_89 : i32
    %176 = arith.andi %173, %175 : i1
    %177 = vector.broadcast %176 : i1 to vector<10x10x1xi1>
    %178 = arith.andi %12, %177 : vector<10x10x1xi1>
    %cst_90 = arith.constant 0.000000e+00 : f32
    %179 = vector.shape_cast %178 : vector<10x10x1xi1> to vector<10x10x1xi1>
    %180 = vector.broadcast %179 : vector<10x10x1xi1> to vector<10x10x4xi1>
    %181 = vector.broadcast %cst_90 : f32 to vector<10x10x4xf32>
    %182 = arith.select %180, %171, %181 : vector<10x10x4xi1>, vector<10x10x4xf32>
    %183 = vector.extract_strided_slice %182 {offsets = [0, 0, 0], sizes = [8, 8, 4], strides = [1, 1, 1]} : vector<10x10x4xf32> to vector<8x8x4xf32>
    %184 = vector.shape_cast %183 : vector<8x8x4xf32> to vector<64x4xf32>
    %c18 = arith.constant 18 : index
    %c0_91 = arith.constant 0 : index
    %c0_92 = arith.constant 0 : index
    %185 = vector.load %arg5[%c18, %c0_91, %c0_92] : memref<27x4x4xf32, #tpu.memory_space<vmem>>, vector<1x4x4xf32>
    %186 = vector.shape_cast %185 : vector<1x4x4xf32> to vector<4x4xf32>
    %cst_93 = arith.constant dense<0.000000e+00> : vector<64x4xf32>
    %187 = tpu.matmul %184, %186, %cst_93 {dimension_numbers = #tpu.dot_dimension_numbers<[1], [0], [0], [1], [0, 0, 1, 1], [], []>} : vector<64x4xf32>, vector<4x4xf32>, vector<64x4xf32> -> vector<64x4xf32>
    %188 = arith.addf %163, %187 : vector<64x4xf32>
    %189 = vector.extract_strided_slice %182 {offsets = [0, 1, 0], sizes = [8, 8, 4], strides = [1, 1, 1]} : vector<10x10x4xf32> to vector<8x8x4xf32>
    %190 = vector.shape_cast %189 : vector<8x8x4xf32> to vector<64x4xf32>
    %c19 = arith.constant 19 : index
    %c0_94 = arith.constant 0 : index
    %c0_95 = arith.constant 0 : index
    %191 = vector.load %arg5[%c19, %c0_94, %c0_95] : memref<27x4x4xf32, #tpu.memory_space<vmem>>, vector<1x4x4xf32>
    %192 = vector.shape_cast %191 : vector<1x4x4xf32> to vector<4x4xf32>
    %cst_96 = arith.constant dense<0.000000e+00> : vector<64x4xf32>
    %193 = tpu.matmul %190, %192, %cst_96 {dimension_numbers = #tpu.dot_dimension_numbers<[1], [0], [0], [1], [0, 0, 1, 1], [], []>} : vector<64x4xf32>, vector<4x4xf32>, vector<64x4xf32> -> vector<64x4xf32>
    %194 = arith.addf %188, %193 : vector<64x4xf32>
    %195 = vector.extract_strided_slice %182 {offsets = [0, 2, 0], sizes = [8, 8, 4], strides = [1, 1, 1]} : vector<10x10x4xf32> to vector<8x8x4xf32>
    %196 = vector.shape_cast %195 : vector<8x8x4xf32> to vector<64x4xf32>
    %c20 = arith.constant 20 : index
    %c0_97 = arith.constant 0 : index
    %c0_98 = arith.constant 0 : index
    %197 = vector.load %arg5[%c20, %c0_97, %c0_98] : memref<27x4x4xf32, #tpu.memory_space<vmem>>, vector<1x4x4xf32>
    %198 = vector.shape_cast %197 : vector<1x4x4xf32> to vector<4x4xf32>
    %cst_99 = arith.constant dense<0.000000e+00> : vector<64x4xf32>
    %199 = tpu.matmul %196, %198, %cst_99 {dimension_numbers = #tpu.dot_dimension_numbers<[1], [0], [0], [1], [0, 0, 1, 1], [], []>} : vector<64x4xf32>, vector<4x4xf32>, vector<64x4xf32> -> vector<64x4xf32>
    %200 = arith.addf %194, %199 : vector<64x4xf32>
    %201 = vector.extract_strided_slice %182 {offsets = [1, 0, 0], sizes = [8, 8, 4], strides = [1, 1, 1]} : vector<10x10x4xf32> to vector<8x8x4xf32>
    %202 = vector.shape_cast %201 : vector<8x8x4xf32> to vector<64x4xf32>
    %c21 = arith.constant 21 : index
    %c0_100 = arith.constant 0 : index
    %c0_101 = arith.constant 0 : index
    %203 = vector.load %arg5[%c21, %c0_100, %c0_101] : memref<27x4x4xf32, #tpu.memory_space<vmem>>, vector<1x4x4xf32>
    %204 = vector.shape_cast %203 : vector<1x4x4xf32> to vector<4x4xf32>
    %cst_102 = arith.constant dense<0.000000e+00> : vector<64x4xf32>
    %205 = tpu.matmul %202, %204, %cst_102 {dimension_numbers = #tpu.dot_dimension_numbers<[1], [0], [0], [1], [0, 0, 1, 1], [], []>} : vector<64x4xf32>, vector<4x4xf32>, vector<64x4xf32> -> vector<64x4xf32>
    %206 = arith.addf %200, %205 : vector<64x4xf32>
    %207 = vector.extract_strided_slice %182 {offsets = [1, 1, 0], sizes = [8, 8, 4], strides = [1, 1, 1]} : vector<10x10x4xf32> to vector<8x8x4xf32>
    %208 = vector.shape_cast %207 : vector<8x8x4xf32> to vector<64x4xf32>
    %c22 = arith.constant 22 : index
    %c0_103 = arith.constant 0 : index
    %c0_104 = arith.constant 0 : index
    %209 = vector.load %arg5[%c22, %c0_103, %c0_104] : memref<27x4x4xf32, #tpu.memory_space<vmem>>, vector<1x4x4xf32>
    %210 = vector.shape_cast %209 : vector<1x4x4xf32> to vector<4x4xf32>
    %cst_105 = arith.constant dense<0.000000e+00> : vector<64x4xf32>
    %211 = tpu.matmul %208, %210, %cst_105 {dimension_numbers = #tpu.dot_dimension_numbers<[1], [0], [0], [1], [0, 0, 1, 1], [], []>} : vector<64x4xf32>, vector<4x4xf32>, vector<64x4xf32> -> vector<64x4xf32>
    %212 = arith.addf %206, %211 : vector<64x4xf32>
    %213 = vector.extract_strided_slice %182 {offsets = [1, 2, 0], sizes = [8, 8, 4], strides = [1, 1, 1]} : vector<10x10x4xf32> to vector<8x8x4xf32>
    %214 = vector.shape_cast %213 : vector<8x8x4xf32> to vector<64x4xf32>
    %c23 = arith.constant 23 : index
    %c0_106 = arith.constant 0 : index
    %c0_107 = arith.constant 0 : index
    %215 = vector.load %arg5[%c23, %c0_106, %c0_107] : memref<27x4x4xf32, #tpu.memory_space<vmem>>, vector<1x4x4xf32>
    %216 = vector.shape_cast %215 : vector<1x4x4xf32> to vector<4x4xf32>
    %cst_108 = arith.constant dense<0.000000e+00> : vector<64x4xf32>
    %217 = tpu.matmul %214, %216, %cst_108 {dimension_numbers = #tpu.dot_dimension_numbers<[1], [0], [0], [1], [0, 0, 1, 1], [], []>} : vector<64x4xf32>, vector<4x4xf32>, vector<64x4xf32> -> vector<64x4xf32>
    %218 = arith.addf %212, %217 : vector<64x4xf32>
    %219 = vector.extract_strided_slice %182 {offsets = [2, 0, 0], sizes = [8, 8, 4], strides = [1, 1, 1]} : vector<10x10x4xf32> to vector<8x8x4xf32>
    %220 = vector.shape_cast %219 : vector<8x8x4xf32> to vector<64x4xf32>
    %c24 = arith.constant 24 : index
    %c0_109 = arith.constant 0 : index
    %c0_110 = arith.constant 0 : index
    %221 = vector.load %arg5[%c24, %c0_109, %c0_110] : memref<27x4x4xf32, #tpu.memory_space<vmem>>, vector<1x4x4xf32>
    %222 = vector.shape_cast %221 : vector<1x4x4xf32> to vector<4x4xf32>
    %cst_111 = arith.constant dense<0.000000e+00> : vector<64x4xf32>
    %223 = tpu.matmul %220, %222, %cst_111 {dimension_numbers = #tpu.dot_dimension_numbers<[1], [0], [0], [1], [0, 0, 1, 1], [], []>} : vector<64x4xf32>, vector<4x4xf32>, vector<64x4xf32> -> vector<64x4xf32>
    %224 = arith.addf %218, %223 : vector<64x4xf32>
    %225 = vector.extract_strided_slice %182 {offsets = [2, 1, 0], sizes = [8, 8, 4], strides = [1, 1, 1]} : vector<10x10x4xf32> to vector<8x8x4xf32>
    %226 = vector.shape_cast %225 : vector<8x8x4xf32> to vector<64x4xf32>
    %c25 = arith.constant 25 : index
    %c0_112 = arith.constant 0 : index
    %c0_113 = arith.constant 0 : index
    %227 = vector.load %arg5[%c25, %c0_112, %c0_113] : memref<27x4x4xf32, #tpu.memory_space<vmem>>, vector<1x4x4xf32>
    %228 = vector.shape_cast %227 : vector<1x4x4xf32> to vector<4x4xf32>
    %cst_114 = arith.constant dense<0.000000e+00> : vector<64x4xf32>
    %229 = tpu.matmul %226, %228, %cst_114 {dimension_numbers = #tpu.dot_dimension_numbers<[1], [0], [0], [1], [0, 0, 1, 1], [], []>} : vector<64x4xf32>, vector<4x4xf32>, vector<64x4xf32> -> vector<64x4xf32>
    %230 = arith.addf %224, %229 : vector<64x4xf32>
    %231 = vector.extract_strided_slice %182 {offsets = [2, 2, 0], sizes = [8, 8, 4], strides = [1, 1, 1]} : vector<10x10x4xf32> to vector<8x8x4xf32>
    %232 = vector.shape_cast %231 : vector<8x8x4xf32> to vector<64x4xf32>
    %c26 = arith.constant 26 : index
    %c0_115 = arith.constant 0 : index
    %c0_116 = arith.constant 0 : index
    %233 = vector.load %arg5[%c26, %c0_115, %c0_116] : memref<27x4x4xf32, #tpu.memory_space<vmem>>, vector<1x4x4xf32>
    %234 = vector.shape_cast %233 : vector<1x4x4xf32> to vector<4x4xf32>
    %cst_117 = arith.constant dense<0.000000e+00> : vector<64x4xf32>
    %235 = tpu.matmul %232, %234, %cst_117 {dimension_numbers = #tpu.dot_dimension_numbers<[1], [0], [0], [1], [0, 0, 1, 1], [], []>} : vector<64x4xf32>, vector<4x4xf32>, vector<64x4xf32> -> vector<64x4xf32>
    %236 = arith.addf %230, %235 : vector<64x4xf32>
    %c0_118 = arith.constant 0 : index
    %c0_119 = arith.constant 0 : index
    %237 = vector.load %arg6[%c0_118, %c0_119] : memref<1x4xf32, #tpu.memory_space<vmem>>, vector<1x4xf32>
    %238 = vector.broadcast %237 : vector<1x4xf32> to vector<64x4xf32>
    %239 = arith.addf %236, %238 : vector<64x4xf32>
    %cst_120 = arith.constant dense<0.000000e+00> : vector<4xf32>
    %240 = vector.multi_reduction <add>, %239, %cst_120 [0] : vector<64x4xf32> to vector<4xf32>
    %241 = vector.shape_cast %240 : vector<4xf32> to vector<1x4xf32>
    %c0_121 = arith.constant 0 : index
    %c0_122 = arith.constant 0 : index
    %c0_123 = arith.constant 0 : index
    %c0_124 = arith.constant 0 : index
    %242 = vector.load %arg10[%c0_121, %c0_122, %c0_123, %c0_124] : memref<1x1x1x4xf32, #tpu.memory_space<vmem>>, vector<1x1x1x4xf32>
    %243 = vector.shape_cast %242 : vector<1x1x1x4xf32> to vector<1x4xf32>
    %244 = vector.shape_cast %241 : vector<1x4xf32> to vector<1x1x1x4xf32>
    tpu.vector_store %arg10[%c0_121, %c0_122, %c0_123, %c0_124], %244 {strides = array<i32>} : memref<1x1x1x4xf32, #tpu.memory_space<vmem>>, vector<1x1x1x4xf32>,
    %245 = arith.mulf %239, %239 : vector<64x4xf32>
    %cst_125 = arith.constant dense<0.000000e+00> : vector<4xf32>
    %246 = vector.multi_reduction <add>, %245, %cst_125 [0] : vector<64x4xf32> to vector<4xf32>
    %247 = vector.shape_cast %246 : vector<4xf32> to vector<1x4xf32>
    %c0_126 = arith.constant 0 : index
    %c0_127 = arith.constant 0 : index
    %c0_128 = arith.constant 0 : index
    %c0_129 = arith.constant 0 : index
    %248 = vector.load %arg11[%c0_126, %c0_127, %c0_128, %c0_129] : memref<1x1x1x4xf32, #tpu.memory_space<vmem>>, vector<1x1x1x4xf32>
    %249 = vector.shape_cast %248 : vector<1x1x1x4xf32> to vector<1x4xf32>
    %250 = vector.shape_cast %247 : vector<1x4xf32> to vector<1x1x1x4xf32>
    tpu.vector_store %arg11[%c0_126, %c0_127, %c0_128, %c0_129], %250 {strides = array<i32>} : memref<1x1x1x4xf32, #tpu.memory_space<vmem>>, vector<1x1x1x4xf32>,
    %251 = vector.shape_cast %239 : vector<64x4xf32> to vector<8x8x4xf32>
    %c0_130 = arith.constant 0 : index
    %c0_131 = arith.constant 0 : index
    %c0_132 = arith.constant 0 : index
    %c0_133 = arith.constant 0 : index
    %c0_134 = arith.constant 0 : index
    %252 = vector.load %arg9[%c0_130, %c0_131, %c0_132, %c0_133, %c0_134] : memref<1x1x8x8x4xf32, #tpu.memory_space<vmem>>, vector<1x1x8x8x4xf32>
    %253 = vector.shape_cast %252 : vector<1x1x8x8x4xf32> to vector<8x8x4xf32>
    %254 = vector.shape_cast %251 : vector<8x8x4xf32> to vector<1x1x8x8x4xf32>
    tpu.vector_store %arg9[%c0_130, %c0_131, %c0_132, %c0_133, %c0_134], %254 {strides = array<i32>} : memref<1x1x8x8x4xf32, #tpu.memory_space<vmem>>, vector<1x1x8x8x4xf32>,
    return
  }
  func.func @transform_0(%arg0: i32, %arg1: i32) -> (i32, i32, i32, i32, i32) {
    %c0_i32 = arith.constant 0 : i32
    %0 = arith.addi %arg1, %c0_i32 : i32
    %c0_i32_0 = arith.constant 0 : i32
    %c0_i32_1 = arith.constant 0 : i32
    %c0_i32_2 = arith.constant 0 : i32
    %c0_i32_3 = arith.constant 0 : i32
    return %arg0, %0, %c0_i32_0, %c0_i32_1, %c0_i32_2 : i32, i32, i32, i32, i32
  }
  func.func @transform_1(%arg0: i32, %arg1: i32) -> (i32, i32, i32, i32, i32) {
    %c1_i32 = arith.constant 1 : i32
    %0 = arith.addi %arg1, %c1_i32 : i32
    %c0_i32 = arith.constant 0 : i32
    %c0_i32_0 = arith.constant 0 : i32
    %c0_i32_1 = arith.constant 0 : i32
    %c0_i32_2 = arith.constant 0 : i32
    return %arg0, %0, %c0_i32, %c0_i32_0, %c0_i32_1 : i32, i32, i32, i32, i32
  }
  func.func @transform_2(%arg0: i32, %arg1: i32) -> (i32, i32, i32, i32, i32) {
    %c2_i32 = arith.constant 2 : i32
    %0 = arith.addi %arg1, %c2_i32 : i32
    %c0_i32 = arith.constant 0 : i32
    %c0_i32_0 = arith.constant 0 : i32
    %c0_i32_1 = arith.constant 0 : i32
    %c0_i32_2 = arith.constant 0 : i32
    return %arg0, %0, %c0_i32, %c0_i32_0, %c0_i32_1 : i32, i32, i32, i32, i32
  }
  func.func @transform_3(%arg0: i32, %arg1: i32) -> (i32, i32, i32) {
    %c0_i32 = arith.constant 0 : i32
    %c0_i32_0 = arith.constant 0 : i32
    %c0_i32_1 = arith.constant 0 : i32
    %c0_i32_2 = arith.constant 0 : i32
    return %c0_i32, %c0_i32_0, %c0_i32_1 : i32, i32, i32
  }
  func.func @transform_4(%arg0: i32, %arg1: i32) -> (i32, i32) {
    %c0_i32 = arith.constant 0 : i32
    %c0_i32_0 = arith.constant 0 : i32
    %c0_i32_1 = arith.constant 0 : i32
    return %c0_i32, %c0_i32_0 : i32, i32
  }
  func.func @transform_5(%arg0: i32, %arg1: i32) -> (i32, i32) {
    %c0_i32 = arith.constant 0 : i32
    %c0_i32_0 = arith.constant 0 : i32
    %c0_i32_1 = arith.constant 0 : i32
    return %c0_i32, %c0_i32_0 : i32, i32
  }
  func.func @transform_6(%arg0: i32, %arg1: i32) -> (i32, i32) {
    %c0_i32 = arith.constant 0 : i32
    %c0_i32_0 = arith.constant 0 : i32
    %c0_i32_1 = arith.constant 0 : i32
    return %c0_i32, %c0_i32_0 : i32, i32
  }
  func.func @transform_7(%arg0: i32, %arg1: i32) -> (i32, i32, i32, i32, i32) {
    %c0_i32 = arith.constant 0 : i32
    %c0_i32_0 = arith.constant 0 : i32
    %c0_i32_1 = arith.constant 0 : i32
    %c0_i32_2 = arith.constant 0 : i32
    return %arg0, %arg1, %c0_i32, %c0_i32_0, %c0_i32_1 : i32, i32, i32, i32, i32
  }
  func.func @transform_8(%arg0: i32, %arg1: i32) -> (i32, i32, i32, i32) {
    %c0_i32 = arith.constant 0 : i32
    %c0_i32_0 = arith.constant 0 : i32
    %c0_i32_1 = arith.constant 0 : i32
    return %arg0, %arg1, %c0_i32, %c0_i32_0 : i32, i32, i32, i32
  }
  func.func @transform_9(%arg0: i32, %arg1: i32) -> (i32, i32, i32, i32) {
    %c0_i32 = arith.constant 0 : i32
    %c0_i32_0 = arith.constant 0 : i32
    %c0_i32_1 = arith.constant 0 : i32
    return %arg0, %arg1, %c0_i32, %c0_i32_0 : i32, i32, i32, i32
  }
}

module attributes {stable_mosaic.version = 11 : i64} {
  func.func @_scale_shift_relu_kernel(%arg0: i32, %arg1: memref<32x128xf32, #tpu.memory_space<vmem>>, %arg2: memref<1x128xf32, #tpu.memory_space<vmem>>, %arg3: memref<1x128xf32, #tpu.memory_space<vmem>>, %arg4: memref<32x128xf32, #tpu.memory_space<vmem>>) attributes {dimension_semantics = [#tpu.dimension_semantics<parallel>], iteration_bounds = array<i64: 1>, scalar_prefetch = 0 : i64, scratch_operands = 0 : i64, tpu.core_type = #tpu.core_type<tc>, window_params = [{transform_indices = @transform_0, window_bounds = array<i64: 32, 128>}, {pipeline_mode = #tpu.pipeline_mode<synchronous>, transform_indices = @transform_1, window_bounds = array<i64: 1, 128>}, {pipeline_mode = #tpu.pipeline_mode<synchronous>, transform_indices = @transform_2, window_bounds = array<i64: 1, 128>}, {transform_indices = @transform_3, window_bounds = array<i64: 32, 128>}]} {
    %c0 = arith.constant 0 : index
    %c0_0 = arith.constant 0 : index
    %0 = vector.load %arg1[%c0, %c0_0] : memref<32x128xf32, #tpu.memory_space<vmem>>, vector<32x128xf32>
    %c0_1 = arith.constant 0 : index
    %c0_2 = arith.constant 0 : index
    %1 = vector.load %arg2[%c0_1, %c0_2] : memref<1x128xf32, #tpu.memory_space<vmem>>, vector<1x128xf32>
    %2 = vector.broadcast %1 : vector<1x128xf32> to vector<32x128xf32>
    %3 = arith.mulf %0, %2 : vector<32x128xf32>
    %c0_3 = arith.constant 0 : index
    %c0_4 = arith.constant 0 : index
    %4 = vector.load %arg3[%c0_3, %c0_4] : memref<1x128xf32, #tpu.memory_space<vmem>>, vector<1x128xf32>
    %5 = vector.broadcast %4 : vector<1x128xf32> to vector<32x128xf32>
    %6 = arith.addf %3, %5 : vector<32x128xf32>
    %cst = arith.constant 0.000000e+00 : f32
    %7 = vector.broadcast %cst : f32 to vector<32x128xf32>
    %8 = arith.maximumf %6, %7 : vector<32x128xf32>
    %c0_5 = arith.constant 0 : index
    %c0_6 = arith.constant 0 : index
    %9 = vector.load %arg4[%c0_5, %c0_6] : memref<32x128xf32, #tpu.memory_space<vmem>>, vector<32x128xf32>
    tpu.vector_store %arg4[%c0_5, %c0_6], %8 {strides = array<i32>} : memref<32x128xf32, #tpu.memory_space<vmem>>, vector<32x128xf32>,
    return
  }
  func.func @transform_0(%arg0: i32) -> (i32, i32) {
    %c0_i32 = arith.constant 0 : i32
    %c0_i32_0 = arith.constant 0 : i32
    return %arg0, %c0_i32 : i32, i32
  }
  func.func @transform_1(%arg0: i32) -> (i32, i32) {
    %c0_i32 = arith.constant 0 : i32
    %c0_i32_0 = arith.constant 0 : i32
    %c0_i32_1 = arith.constant 0 : i32
    return %c0_i32, %c0_i32_0 : i32, i32
  }
  func.func @transform_2(%arg0: i32) -> (i32, i32) {
    %c0_i32 = arith.constant 0 : i32
    %c0_i32_0 = arith.constant 0 : i32
    %c0_i32_1 = arith.constant 0 : i32
    return %c0_i32, %c0_i32_0 : i32, i32
  }
  func.func @transform_3(%arg0: i32) -> (i32, i32) {
    %c0_i32 = arith.constant 0 : i32
    %c0_i32_0 = arith.constant 0 : i32
    return %arg0, %c0_i32 : i32, i32
  }
}

</mosaic_0001>

<bundles_post_ra>
// kernel: upconvblock3_forward.4
= control target key start
LH: loop header
LB: loop body
LE: loop exit
PB: predicated region body
PF: predicated region fallthrough
CT: control target
= control target key end

     0   :  { %8 = vsyncpa [#allocation3], 0  ;;  %s358_s12 = smov [#allocation2]   ;;  %s522_s0 = inlined_call_operand.vmem [shape: f32[128,4], index: 0, kind: input, shape index: {}]   ;;  %s523_s1 = inlined_call_operand.vmem [shape: f32[4,2], index: 1, kind: input, shape index: {}]   ;;  %s524_s2 = inlined_call_operand.hbm [shape: f32[1,2], index: 2, kind: input, shape index: {}]   ;;  %s525_s3 = inlined_call_operand.vmem [shape: f32[128,2], index: 3, kind: output, shape index: {}]  }
   0x1   :  { %s19_s13 = sshll.u32 %s358_s12, 4  ;;  %s334_s16 = scalar_lea.hbm %s524_s2, 16  ;;  %s20_s13 = int_to_ptr.vmem [resolvable:$true] %s19_s13 }
   0x2   :  { %p335_p0 = scmp.ne.s32.totalorder %s524_s2, %s334_s16  ;;  %p338_p1 = scmp.lt.u32.totalorder %s334_s16, %s524_s2 }
   0x4   :  { %p340_p2 = pnand %p338_p1, %p335_p0 }
   0x6   :  { %343 = shalt.err (!%p340_p2)
}
   0x7   :  { %s344_s21 = scalar_lea.vmem %s20_s13, 16  ;;  %s348_s22 = scalar_lea.vmem %s20_s13, 32 }
   0x8   :  { %p345_p3 = scmp.ne.s32.totalorder %s20_s13, %s344_s21  ;;  %p349_p4 = scmp.lt.s32.totalorder %s20_s13, %s20_s13 }
   0x9   :  { %p350_p5 = scmp.lt.s32.totalorder %s348_s22, %s344_s21 }
   0xb   :  { %p351_p6 = por %p350_p5, %p349_p4 }
   0xd   :  { %p352_p7 = pnand %p351_p6, %p345_p3 }
   0xf   :  { %355 = shalt.err (!%p352_p7)
}
  0x10   :  { %22 = dma.hbm_to_vmem [thread:$0]  %s524_s2, 16, %s20_s13, [#allocation3]  }
  0x11   :  { %356 = dma.done.wait [#allocation3], 16  }
  0x12   :  { %357 = vsyncadd [#allocation3], 4294967280  ;;  %vm99_vm0 = vcmask 1043456   ;;  %v42_v0 = vld [vmem:[%s523_s1] sm:$0xf]  ;;  %vm50_vm1 = vcmask 31744  }
  0x13   :  { %v26_v1 = vld [vmem:[%s522_s0] sm:$0xff]  ;;  %305 = vmatprep.subr.msk.mxu0 %vm99_vm0, %v42_v0  ;;  %331 = vmatprep.subr.msk.mxu1 %vm99_vm0, %v42_v0  ;;  %v27_v3 = vld [vmem:[%s522_s0 + $0x8] sm:$0xff]  ;;  %v28_v5 = vld [vmem:[%s522_s0 + $0x10] sm:$0xff]  ;;  %vm248_vm2 = vcmask 15360  }
  0x14   :  { %v34_v2 = vld [vmem:[%s522_s0 + $0x40] sm:$0xff]  ;;  %v35_v4 = vld [vmem:[%s522_s0 + $0x48] sm:$0xff]  ;;  %306 = vmatpush3.msk.msra.mxu0 %vm99_vm0, %v42_v0  ;;  %332 = vmatpush3.msk.msra.mxu1 %vm99_vm0, %v42_v0  ;;  %v36_v6 = vld [vmem:[%s522_s0 + $0x50] sm:$0xff] }
  0x15   :  { %307 = vmatprep.mubr.msk.f32.mxu0 %vm50_vm1, %v26_v1  ;;  %319 = vmatprep.mubr.msk.f32.mxu1 %vm50_vm1, %v34_v2  ;;  %v29_v7 = vld [vmem:[%s522_s0 + $0x18] sm:$0xff]  ;;  %v30_v9 = vld [vmem:[%s522_s0 + $0x20] sm:$0xff]  ;;  %v31_v11 = vld [vmem:[%s522_s0 + $0x28] sm:$0xff] }
  0x16   :  { %308 = vmatmul.mubr.msk.f32.vlgmr.msra.gmra.mrb[0].mxu0 %vm50_vm1, %v27_v3  ;;  %320 = vmatmul.mubr.msk.f32.vlgmr.msra.gmra.mrb[0].mxu1 %vm50_vm1, %v35_v4  ;;  %v37_v8 = vld [vmem:[%s522_s0 + $0x58] sm:$0xff]  ;;  %v38_v10 = vld [vmem:[%s522_s0 + $0x60] sm:$0xff]  ;;  %v39_v12 = vld [vmem:[%s522_s0 + $0x68] sm:$0xff] }
  0x17   :  { %310 = vmatprep.mubr.msk.f32.mxu0 %vm50_vm1, %v28_v5  ;;  %322 = vmatprep.mubr.msk.f32.mxu1 %vm50_vm1, %v36_v6  ;;  %v32_v13 = vld [vmem:[%s522_s0 + $0x30] sm:$0xff]  ;;  %v33_v15 = vld [vmem:[%s522_s0 + $0x38] sm:$0xff]  ;;  %v270_v17 = vld [vmem:[#allocation2] ss:$0 sm:$0xff] }
  0x18   :  { %v40_v14 = vld [vmem:[%s522_s0 + $0x70] sm:$0xff]  ;;  %v41_v16 = vld [vmem:[%s522_s0 + $0x78] sm:$0xff] }
  0x1a   :  { %311 = vmatmul.mubr.msk.f32.gmra.mrb[2].mxu0 %vm50_vm1, %v29_v7  ;;  %323 = vmatmul.mubr.msk.f32.gmra.mrb[2].mxu1 %vm50_vm1, %v37_v8 }
  0x1b   :  { %313 = vmatprep.mubr.msk.f32.mxu0 %vm50_vm1, %v30_v9  ;;  %325 = vmatprep.mubr.msk.f32.mxu1 %vm50_vm1, %v38_v10 }
  0x1e   :  { %314 = vmatmul.mubr.msk.f32.gmra.mrb[4].mxu0 %vm50_vm1, %v31_v11  ;;  %326 = vmatmul.mubr.msk.f32.gmra.mrb[4].mxu1 %vm50_vm1, %v39_v12 }
  0x1f   :  { %316 = vmatprep.mubr.msk.f32.mxu0 %vm50_vm1, %v32_v13  ;;  %328 = vmatprep.mubr.msk.f32.mxu1 %vm50_vm1, %v40_v14 }
  0x22   :  { %317 = vmatmul.mubr.msk.f32.gmra.mrb[6].mxu0 %vm50_vm1, %v33_v15  ;;  %329 = vmatmul.mubr.msk.f32.gmra.mrb[6].mxu1 %vm50_vm1, %v41_v16 }
  0xe9   :  { %v309_v18 = vpop.f32.mrb[0].mxu0  ;;  %v321_v19 = vpop.f32.mrb[0].mxu1 }
  0xea   :  { %v175_v20 = vadd.f32 %v309_v18, %v270_v17  ;;  %v215_v21 = vadd.f32 %v321_v19, %v270_v17  ;;  %v169_v22 = vpop.f32.mrb[1].mxu0  ;;  %v209_v23 = vpop.f32.mrb[1].mxu1 }
  0xeb   :  { %v170_v24 = vadd.f32 %v270_v17, %v169_v22  ;;  %v210_v25 = vadd.f32 %v270_v17, %v209_v23 }
  0xec   :  { %250 = vst.msk [vmem:[%s525_s3 + $0x8] sm:$0xff] %vm248_vm2, %v175_v20  ;;  %258 = vst.msk [vmem:[%s525_s3 + $0x48] sm:$0xff] %vm248_vm2, %v215_v21 }
  0xed   :  { %249 = vst.msk [vmem:[%s525_s3] sm:$0xff] %vm248_vm2, %v170_v24  ;;  %257 = vst.msk [vmem:[%s525_s3 + $0x40] sm:$0xff] %vm248_vm2, %v210_v25  ;;  %v312_v26 = vpop.f32.mrb[2].mxu0  ;;  %v324_v27 = vpop.f32.mrb[2].mxu1 }
  0xee   :  { %v185_v28 = vadd.f32 %v312_v26, %v270_v17  ;;  %v225_v29 = vadd.f32 %v324_v27, %v270_v17  ;;  %v179_v30 = vpop.f32.mrb[3].mxu0  ;;  %v219_v31 = vpop.f32.mrb[3].mxu1 }
  0xef   :  { %v180_v32 = vadd.f32 %v270_v17, %v179_v30  ;;  %v220_v33 = vadd.f32 %v270_v17, %v219_v31 }
  0xf0   :  { %252 = vst.msk [vmem:[%s525_s3 + $0x18] sm:$0xff] %vm248_vm2, %v185_v28  ;;  %260 = vst.msk [vmem:[%s525_s3 + $0x58] sm:$0xff] %vm248_vm2, %v225_v29 }
  0xf1   :  { %251 = vst.msk [vmem:[%s525_s3 + $0x10] sm:$0xff] %vm248_vm2, %v180_v32  ;;  %259 = vst.msk [vmem:[%s525_s3 + $0x50] sm:$0xff] %vm248_vm2, %v220_v33  ;;  %v315_v34 = vpop.f32.mrb[4].mxu0  ;;  %v327_v35 = vpop.f32.mrb[4].mxu1 }
  0xf2   :  { %v195_v36 = vadd.f32 %v315_v34, %v270_v17  ;;  %v235_v37 = vadd.f32 %v327_v35, %v270_v17  ;;  %v189_v38 = vpop.f32.mrb[5].mxu0  ;;  %v229_v39 = vpop.f32.mrb[5].mxu1 }
  0xf3   :  { %v190_v40 = vadd.f32 %v270_v17, %v189_v38  ;;  %v230_v41 = vadd.f32 %v270_v17, %v229_v39 }
  0xf4   :  { %254 = vst.msk [vmem:[%s525_s3 + $0x28] sm:$0xff] %vm248_vm2, %v195_v36  ;;  %262 = vst.msk [vmem:[%s525_s3 + $0x68] sm:$0xff] %vm248_vm2, %v235_v37 }
  0xf5   :  { %253 = vst.msk [vmem:[%s525_s3 + $0x20] sm:$0xff] %vm248_vm2, %v190_v40  ;;  %261 = vst.msk [vmem:[%s525_s3 + $0x60] sm:$0xff] %vm248_vm2, %v230_v41  ;;  %v318_v42 = vpop.f32.mrb[6].mxu0  ;;  %v330_v43 = vpop.f32.mrb[6].mxu1 }
  0xf6   :  { %v205_v44 = vadd.f32 %v318_v42, %v270_v17  ;;  %v245_v45 = vadd.f32 %v330_v43, %v270_v17  ;;  %v199_v46 = vpop.f32.mrb[7].mxu0  ;;  %v239_v47 = vpop.f32.mrb[7].mxu1 }
  0xf7   :  { %v200_v48 = vadd.f32 %v270_v17, %v199_v46  ;;  %v240_v49 = vadd.f32 %v270_v17, %v239_v47 }
  0xf8   :  { %256 = vst.msk [vmem:[%s525_s3 + $0x38] sm:$0xff] %vm248_vm2, %v205_v44  ;;  %264 = vst.msk [vmem:[%s525_s3 + $0x78] sm:$0xff] %vm248_vm2, %v245_v45 }
  0xf9   :  { %255 = vst.msk [vmem:[%s525_s3 + $0x30] sm:$0xff] %vm248_vm2, %v200_v48  ;;  %263 = vst.msk [vmem:[%s525_s3 + $0x70] sm:$0xff] %vm248_vm2, %v240_v49 }
  0xfa   :  { %269 = vsyncpa [#allocation3], 1 }

// kernel: upconvblock3_forward.5
= control target key start
LH: loop header
LB: loop body
LE: loop exit
PB: predicated region body
PF: predicated region fallthrough
CT: control target
= control target key end

     0   :  { %s5623_s24 = smov 0   ;;  %s5625_s25 = smov 0   ;;  %s6725_s0 = inlined_call_operand.vmem [shape: f32[2,10,10,10,6], index: 0, kind: input, shape index: {}, may-alias: {0,1,2}]   ;;  %s6726_s1 = inlined_call_operand.vmem [shape: f32[2,10,10,10,6], index: 1, kind: input, shape index: {}, may-alias: {0,1,2}]   ;;  %s6727_s2 = inlined_call_operand.vmem [shape: f32[2,10,10,10,6], index: 2, kind: input, shape index: {}, may-alias: {0,1,2}]   ;;  %s6728_s3 = inlined_call_operand.vmem [shape: f32[27,6,4], index: 3, kind: input, shape index: {}]   ;;  %s6729_s4 = inlined_call_operand.vmem [shape: f32[1,4], index: 4, kind: input, shape index: {}]   ;;  %s6730_s5 = inlined_call_operand.vmem [shape: f32[2,8,8,8,4], index: 5, kind: output, shape index: {0}]   ;;  %s6731_s6 = inlined_call_operand.vmem [shape: f32[2,8,1,4], index: 6, kind: output, shape index: {1}]   ;;  %s6732_s7 = inlined_call_operand.vmem [shape: f32[2,8,1,4], index: 7, kind: output, shape index: {2}]  }
   0x1   :  { %s5627_s26 = smov 0   ;;  %s5629_s27 = smov 0  }
   0x2   :  { %s5631_s28 = smov 0  }
   0x3 LB: > { %s27_s29 = sadd.s32 1, %s5573_s26  ;;  %s30_s30 = sadd.s32 1, %s5577_s27  ;;  %s5581_s28 = sphi %s5631_s28, %s18_s28   ;;  %s5577_s27 = sphi %s5629_s27, %s6781_s27   ;;  %s5573_s26 = sphi %s5627_s26, %s6780_s26   ;;  %s5569_s25 = sphi %s5625_s25, %s6779_s25   ;;  %s5565_s24 = sphi %s5623_s24, %s6778_s24  }
   0x4   : > { %p28_p0 = scmp.ge.s32.totalorder %s27_s29, 8  ;;  %p4386_p1 = scmp.ge.s32.totalorder %s5581_s28, 1 }
   0x5   : > { %p306_p2 = scmp.lt.s32.totalorder %s5581_s28, 17 }
   0x6   : > { %s6783_s29 = smov (%p28_p0, %s27_s29), 0  ;;  %s6785_s30 = smov (!%p28_p0, %s30_s30), %s5577_s27 }
   0x7   : > { %p307_p3 = pnand %p4386_p1, %p306_p2  ;;  %p32_p4 = scmp.ge.s32.totalorder %s6785_s30, 2 }
   0x9   : > { %s6787_s30 = smov (%p32_p4, %s6785_s30), 0  ;;  %310 = sbr.rel (%p307_p3) target bundleno = 484 (0x1e4), region = 40 }
  0x10   : > { %v4395_v0 = vld [vmem:[%s6728_s3 + $0x8] sm:$0x3f]  ;;  %vm515_vm0 = vcmask 1045504   ;;  %p380_p5 = scmp.lt.s32.totalorder %s5569_s25, 1  ;;  %p382_p6 = scmp.lt.s32.totalorder %s5565_s24, 9  ;;  %vm471_vm1 = vcmask 1046528  }
  0x11   : > { %v4524_v1 = vld [vmem:[%s6728_s3 + $0x68] sm:$0x3f]  ;;  %4910 = vmatprep.subr.msk.mxu1 %vm515_vm0, %v4395_v0  ;;  %v454_v2 = vld [vmem:[%s6728_s3] sm:$0x3f]  ;;  %s389_s14 = sadd.s32 1, %s5565_s24  ;;  %vm498_vm2 = vcmask 48128  }
  0x12   : > { %5092 = vmatprep.subr.msk.mxu0 %vm515_vm0, %v4524_v1  ;;  %4911 = vmatpush3.msk.msra.mxu1 %vm515_vm0, %v4395_v0  ;;  %s6789_s25 = smov (!%p380_p5, %s5569_s25), 1  ;;  %v5675_v3 = vld [vmem:[%s6728_s3 + $0x70] sm:$0x3f]  ;;  %p392_p7 = scmp.lt.s32.totalorder %s389_s14, 9  ;;  %v4544_v39 = vld [vmem:[%s6728_s3 + $0x78] sm:$0x3f] }
  0x13   : > { %5093 = vmatpush3.msk.msra.mxu0 %vm515_vm0, %v4524_v1  ;;  %s383_s17 = scalar_select %p382_p6, %s5565_s24, 9  ;;  %4924 = vmatprep.subr.msk.mxu1 %vm515_vm0, %v454_v2  ;;  %v5716_v14 = vld [vmem:[%s6728_s3 + $0x10] sm:$0x3f]  ;;  %vm4101_vm3 = vcmask 31744   ;;  %vm4123_vm4 = vcmask 24576  }
  0x14   : > { %5106 = vmatprep.subr.msk.mxu0 %vm515_vm0, %v5675_v3  ;;  %s5682_s18 = smul.u32 200, %s6789_s25  ;;  %s6791_s14 = smov (!%p392_p7, %s389_s14), 9 }
  0x15   : > { %s5498_s19 = smul.u32 20, %s383_s17  ;;  %p413_p9 = scmp.lt.s32.totalorder %s5565_s24, 7 }
  0x16   : > { %s5500_s22 = smul.u32 20, %s6791_s14 }
  0x17   : > { %s386_s20 = sadd.s32 %s5682_s18, %s5498_s19 }
  0x18   : > { %s4387_s21 = sshll.u32 %s386_s20, 3  ;;  %s396_s10 = sadd.s32 %s5500_s22, %s5682_s18 }
  0x19   : > { %s5688_s9 = scalar_lea.vmem %s6725_s0, %s4387_s21  ;;  %s4388_s11 = sshll.u32 %s396_s10, 3 }
  0x1a   : > { %v5691_v4 = vld [vmem:[%s5688_s9] sm:$0xff]  ;;  %v5694_v5 = vld [vmem:[%s5688_s9 + $0x8] sm:$0x3]  ;;  %v5697_v6 = vld [vmem:[%s5688_s9 + $0x10] sm:$0xff]  ;;  %s5722_s16 = scalar_lea.vmem %s6726_s1, %s4388_s11  ;;  %s400_s22 = sadd.s32 2, %s5565_s24 }
  0x1b   : > { %v472_v7 = vrot.slane %v5691_v4, 1  ;;  %v473_v8 = vrot.slane %v5694_v5, 1  ;;  %v5703_v9 = vld [vmem:[%s5688_s9 + $0x18] sm:$0x3]  ;;  %v475_v10 = vrot.slane %v5697_v6, 1  ;;  %v5708_v12 = vld [vmem:[%s5688_s9 + $0x20] sm:$0xff] }
  0x1c   : > { %v476_v11 = vrot.slane %v5703_v9, 1  ;;  %v5711_v13 = vld [vmem:[%s5688_s9 + $0x28] sm:$0x3]  ;;  %v478_v16 = vrot.slane %v5708_v12, 1  ;;  %v5727_v18 = vld [vmem:[%s5688_s9 + $0x30] sm:$0xff]  ;;  %v5733_v20 = vld [vmem:[%s5688_s9 + $0x40] sm:$0xff] }
  0x1d   : > { %v474_v15 = vsel %vm471_vm1, %v472_v7, %v473_v8  ;;  %v479_v17 = vrot.slane %v5711_v13, 1  ;;  %v5730_v19 = vld [vmem:[%s5688_s9 + $0x38] sm:$0x3]  ;;  %v5740_v22 = vld [vmem:[%s5722_s16 + $0x10] sm:$0xff]  ;;  %v5744_v24 = vld [vmem:[%s5722_s16 + $0x20] sm:$0xff]  ;;  %v481_v25 = vrot.slane %v5727_v18, 1 }
  0x1e   : > { %4912 = vmatprep.mubr.msk.f32.mxu1 %vm498_vm2, %v474_v15  ;;  %v5737_v21 = vsel %vm471_vm1, %v475_v10, %v476_v11  ;;  %v1645_v23 = vld [vmem:[%s5722_s16 + $0x18] sm:$0x3]  ;;  %v482_v26 = vrot.slane %v5730_v19, 1  ;;  %v1815_v27 = vrot.slane %v5740_v22, 1  ;;  %v1647_v30 = vld [vmem:[%s5722_s16 + $0x28] sm:$0x3] }
  0x1f   : > { %4913 = vmatmul.mubr.msk.f32.vlgmr.msra.gmra.mrb[0].mxu1 %vm498_vm2, %v5737_v21  ;;  %v1816_v28 = vrot.slane %v1645_v23, 1  ;;  %v1974_v29 = vrot.slane %v1645_v23, 2  ;;  %v1818_v31 = vrot.slane %v5744_v24, 1  ;;  %v1819_v32 = vrot.slane %v1647_v30, 1  ;;  %v5761_v36 = vld [vmem:[%s5722_s16 + $0x30] sm:$0xff]  ;;  %v5765_v38 = vld [vmem:[%s5722_s16 + $0x40] sm:$0xff] }
  0x20   : > { %4925 = vmatpush3.msk.msra.mxu1 %vm515_vm0, %v454_v2  ;;  %v1977_v33 = vrot.slane %v1647_v30, 2  ;;  %v5755_v34 = vsel %vm471_vm1, %v478_v16, %v479_v17  ;;  %v5758_v35 = vsel %vm471_vm1, %v481_v25, %v482_v26  ;;  %v1649_v37 = vld [vmem:[%s5722_s16 + $0x38] sm:$0x3]  ;;  %v1821_v41 = vrot.slane %v5761_v36, 1  ;;  %v1651_v43 = vld [vmem:[%s5722_s16 + $0x48] sm:$0x3] }
  0x21   : > { %v5771_v40 = vsel %vm471_vm1, %v1815_v27, %v1816_v28  ;;  %4915 = vmatprep.mubr.msk.f32.mxu1 %vm498_vm2, %v5755_v34  ;;  %v1822_v42 = vrot.slane %v1649_v37, 1  ;;  %v1824_v44 = vrot.slane %v5765_v38, 1  ;;  %v5779_v45 = vld [vmem:[%s5688_s9 + $0x50] sm:$0xff]  ;;  %4938 = vmatprep.subr.msk.mxu1 %vm515_vm0, %v5716_v14  ;;  %v5786_v46 = vsel %vm471_vm1, %v1818_v31, %v1819_v32  ;;  %v5789_v48 = vld [vmem:[%s5688_s9 + $0x48] sm:$0x3]  ;;  %v5806_v55 = vld [vmem:[%s5688_s9 + $0x60] sm:$0xff] }
  0x22   : > { %5094 = vmatprep.mubr.msk.f32.mxu0 %vm498_vm2, %v5771_v40  ;;  %v1825_v47 = vrot.slane %v1651_v43, 1  ;;  %v484_v49 = vrot.slane %v5733_v20, 1  ;;  %v5793_v50 = vld [vmem:[%s5688_s9 + $0x58] sm:$0x3]  ;;  %v485_v52 = vrot.slane %v5789_v48, 1  ;;  %v487_v53 = vrot.slane %v5779_v45, 1 }
  0x23   : > { %5095 = vmatmul.mubr.msk.f32.vlgmr.msra.gmra.mrb[0].mxu0 %vm498_vm2, %v5786_v46  ;;  %4916 = vmatmul.mubr.msk.f32.gmra.mrb[2].mxu1 %vm498_vm2, %v5758_v35  ;;  %v5800_v51 = vsel %vm471_vm1, %v1821_v41, %v1822_v42  ;;  %v488_v54 = vrot.slane %v5793_v50, 1  ;;  %v5809_v56 = vld [vmem:[%s5688_s9 + $0x68] sm:$0x3]  ;;  %v1973_v58 = vrot.slane %v5740_v22, 2  ;;  %v1976_v59 = vrot.slane %v5744_v24, 2  ;;  %v5822_v61 = vld [vmem:[%s5688_s9 + $0x70] sm:$0xff] }
  0x24   : > { %5107 = vmatpush3.msk.msra.mxu0 %vm515_vm0, %v5675_v3  ;;  %5097 = vmatprep.mubr.msk.f32.mxu0 %vm498_vm2, %v5800_v51  ;;  %v5816_v57 = vsel %vm471_vm1, %v1824_v44, %v1825_v47  ;;  %v490_v60 = vrot.slane %v5806_v55, 1  ;;  %v5825_v62 = vld [vmem:[%s5688_s9 + $0x78] sm:$0x3]  ;;  %v5828_v63 = vsel %vm471_vm1, %v484_v49, %v485_v52  ;;  %v491_v1 = vrot.slane %v5809_v56, 1  ;;  %v5844_v10 = vld [vmem:[%s5722_s16 + $0x50] sm:$0xff]  ;;  %v5873_v30 = vld [vmem:[%s5722_s16 + $0x60] sm:$0xff] }
  0x25   : > { %6750 = vst [vmem:[#allocation2_spill] sm:$0xff] %v5816_v57  ;;  %v5831_v0 = vsel %vm471_vm1, %v487_v53, %v488_v54  ;;  %5120 = vmatprep.subr.msk.mxu0 %vm515_vm0, %v4544_v39  ;;  %v493_v2 = vrot.slane %v5822_v61, 1  ;;  %4918 = vmatprep.mubr.msk.f32.mxu1 %vm498_vm2, %v5828_v63  ;;  %v5839_v3 = vsel %vm515_vm0, %v1973_v58, %v1974_v29  ;;  %v494_v7 = vrot.slane %v5825_v62, 1  ;;  %v5847_v11 = vld [vmem:[%s5722_s16 + $0x58] sm:$0x3]  ;;  %v5879_v32 = vld [vmem:[%s5722_s16 + $0x70] sm:$0xff] }
  0x26   : > { %6751 = vst [vmem:[#allocation3_spill] sm:$0xff] %v5839_v3  ;;  %v1979_v8 = vrot.slane %v5761_v36, 2  ;;  %v5854_v15 = vsel %vm471_vm1, %v490_v60, %v491_v1  ;;  %v1980_v16 = vrot.slane %v1649_v37, 2  ;;  %v5859_v17 = vsel %vm515_vm0, %v1976_v59, %v1977_v33  ;;  %v5876_v31 = vld [vmem:[%s5722_s16 + $0x68] sm:$0x3]  ;;  %v5908_v49 = vld [vmem:[%s5722_s16 + $0x80] sm:$0xff] }
  0x27   : > { %5098 = vmatmul.mubr.msk.f32.gmra.mrb[2].mxu0 %vm498_vm2, %v5816_v57  ;;  %4919 = vmatmul.mubr.msk.f32.gmra.mrb[4].mxu1 %vm498_vm2, %v5831_v0  ;;  %6752 = vst [vmem:[#allocation4_spill] sm:$0xff] %v5859_v17  ;;  %v5864_v23 = vsel %vm471_vm1, %v493_v2, %v494_v7  ;;  %v1982_v25 = vrot.slane %v5765_v38, 2  ;;  %v1983_v26 = vrot.slane %v1651_v43, 2  ;;  %v1985_v28 = vrot.slane %v5844_v10, 2  ;;  %v5882_v33 = vld [vmem:[%s5722_s16 + $0x78] sm:$0x3] }
  0x28   : > { %5108 = vmatprep.mubr.msk.f32.mxu0 %vm498_vm2, %v5839_v3  ;;  %4921 = vmatprep.mubr.msk.f32.mxu1 %vm498_vm2, %v5854_v15  ;;  %v5868_v27 = vsel %vm515_vm0, %v1979_v8, %v1980_v16  ;;  %v1986_v29 = vrot.slane %v5847_v11, 2  ;;  %v4554_v37 = vld [vmem:[%s6728_s3 + $0x80] sm:$0x3f]  ;;  %v1988_v42 = vrot.slane %v5873_v30, 2  ;;  %v1989_v43 = vrot.slane %v5876_v31, 2  ;;  %6756 = vst [vmem:[#allocation8_spill] sm:$0xff] %v5908_v49 }
  0x29   : > { %6753 = vst [vmem:[#allocation5_spill] sm:$0xff] %v5868_v27  ;;  %v5895_v41 = vsel %vm515_vm0, %v1982_v25, %v1983_v26  ;;  %v1991_v47 = vrot.slane %v5879_v32, 2  ;;  %v5911_v52 = vld [vmem:[%s5722_s16 + $0x88] sm:$0x3]  ;;  %v4424_v53 = vld [vmem:[%s6728_s3 + $0x18] sm:$0x3f] }
  0x2a   : > { %6754 = vst [vmem:[#allocation6_spill] sm:$0xff] %v5895_v41  ;;  %v5903_v44 = vsel %vm515_vm0, %v1985_v28, %v1986_v29  ;;  %p403_p8 = scmp.lt.s32.totalorder %s400_s22, 9  ;;  %v5926_v54 = vsel %vm515_vm0, %v1988_v42, %v1989_v43  ;;  %v2373_v58 = vrot.slane %v5908_v49, 2  ;;  %v2374_v59 = vrot.slane %v5911_v52, 2  ;;  %v4564_v25 = vld [vmem:[%s6728_s3 + $0x88] sm:$0x3f] }
  0x2b   : > { %5109 = vmatmul.mubr.msk.f32.vlgmr.msra.gmra.mrb[0].mxu0 %vm498_vm2, %v5859_v17  ;;  %4922 = vmatmul.mubr.msk.f32.gmra.mrb[6].mxu1 %vm498_vm2, %v5864_v23  ;;  %6755 = vst [vmem:[#allocation7_spill] sm:$0xff] %v5903_v44  ;;  %6757 = vst [vmem:[#allocation9_spill] sm:$0xff] %v5926_v54  ;;  %v749_v1 = vrot.slane %v5694_v5, 2  ;;  %v748_v2 = vrot.slane %v5691_v4, 2  ;;  %v752_v7 = vrot.slane %v5703_v9, 2  ;;  %v751_v8 = vrot.slane %v5697_v6, 2 }
  0x2c   : > { %5121 = vmatpush3.msk.msra.mxu0 %vm515_vm0, %v4544_v39  ;;  %5111 = vmatprep.mubr.msk.f32.mxu0 %vm498_vm2, %v5868_v27  ;;  %v1992_v39 = vrot.slane %v5882_v33, 2  ;;  %s6793_s22 = smov (!%p403_p8, %s400_s22), 9  ;;  %v755_v16 = vrot.slane %v5711_v13, 2  ;;  %v757_v13 = vrot.slane %v5727_v18, 2  ;;  %v758_v26 = vrot.slane %v5730_v19, 2  ;;  %s6795_s24 = smov (!%p413_p9, %s5565_s24), 7 }
  0x2d   : > { %4926 = vmatprep.mubr.msk.f32.mxu1 %vm498_vm2, %v5691_v4  ;;  %5134 = vmatprep.subr.msk.mxu0 %vm515_vm0, %v4554_v37  ;;  %s5501_s10 = smul.u32 20, %s6793_s22  ;;  %v750_v5 = vsel %vm515_vm0, %v748_v2, %v749_v1  ;;  %v754_v4 = vrot.slane %v5708_v12, 2  ;;  %v5974_v9 = vsel %vm515_vm0, %v751_v8, %v752_v7  ;;  %v760_v28 = vrot.slane %v5733_v20, 2  ;;  %v4434_v42 = vld [vmem:[%s6728_s3 + $0x20] sm:$0x3f]  ;;  %s4393_s22 = sshll.u32 %s6789_s25, 3 }
  0x2e   : > { %v5933_v60 = vsel %vm515_vm0, %v1991_v47, %v1992_v39  ;;  %v761_v29 = vrot.slane %v5789_v48, 2  ;;  %v5996_v19 = vsel %vm515_vm0, %v757_v13, %v758_v26  ;;  %v763_v48 = vrot.slane %v5779_v45, 2  ;;  %s425_s23 = sadd.s32 %s4393_s22, %s6795_s24 }
  0x2f   : > { %5112 = vmatmul.mubr.msk.f32.gmra.mrb[2].mxu0 %vm498_vm2, %v5895_v41  ;;  %4927 = vmatmul.mubr.msk.f32.vlgmr.msra.gmra.mrb[0].mxu1 %vm498_vm2, %v5697_v6  ;;  %6758 = vst [vmem:[#allocation10_spill] sm:$0xff] %v5933_v60  ;;  %s407_s13 = sadd.s32 %s5501_s10, %s5682_s18  ;;  %v764_v43 = vrot.slane %v5793_v50, 2  ;;  %v766_v39 = vrot.slane %v5806_v55, 2  ;;  %v769_v2 = vrot.slane %v5822_v61, 2  ;;  %v770_v7 = vrot.slane %v5825_v62, 2  ;;  %s426_s11 = scalar_lea.vmem %s6731_s6, %s425_s23 }
  0x30   : > { %5114 = vmatprep.mubr.msk.f32.mxu0 %vm498_vm2, %v5903_v44  ;;  %4939 = vmatpush3.msk.msra.mxu1 %vm515_vm0, %v5716_v14  ;;  %v5943_v14 = vsel %vm515_vm0, %v2373_v58, %v2374_v59  ;;  %s4389_s15 = sshll.u32 %s407_s13, 3  ;;  %v6003_v47 = vsel %vm515_vm0, %v760_v28, %v761_v29  ;;  %v767_v58 = vrot.slane %v5809_v56, 2  ;;  %v6025_v59 = vld [vmem:[%s5722_s16 + $0x90] sm:$0xff]  ;;  %v1827_v26 = vrot.slane %v5844_v10, 1  ;;  %s4391_s13 = sshll.u32 %s6789_s25, 6 }
  0x31   : > { %4929 = vmatprep.mubr.msk.f32.mxu1 %vm498_vm2, %v5708_v12  ;;  %4952 = vmatprep.subr.msk.mxu1 %vm515_vm0, %v4424_v53  ;;  %s6011_s20 = scalar_lea.vmem %s6727_s2, %s4389_s15  ;;  %v6030_v1 = vsel %vm515_vm0, %v763_v48, %v764_v43  ;;  %v6050_v62 = vsel %vm515_vm0, %v769_v2, %v770_v7  ;;  %v1828_v28 = vrot.slane %v5847_v11, 1  ;;  %v1830_v48 = vrot.slane %v5873_v30, 1  ;;  %v1661_v2 = vld [vmem:[%s5722_s16 + $0x98] sm:$0x3]  ;;  %v4444_v7 = vld [vmem:[%s6728_s3 + $0x28] sm:$0x3f] }
  0x32   : > { %v6014_v50 = vld [vmem:[%s6011_s20 + $0x80] sm:$0xff]  ;;  %v1831_v43 = vrot.slane %v5876_v31, 1  ;;  %v1833_v31 = vrot.slane %v5879_v32, 1 }
  0x33   : > { %5115 = vmatmul.mubr.msk.f32.gmra.mrb[4].mxu0 %vm498_vm2, %v5926_v54  ;;  %4930 = vmatmul.mubr.msk.f32.gmra.mrb[2].mxu1 %vm498_vm2, %v5727_v18  ;;  %v3472_v56 = vrot.slane %v6014_v50, 1  ;;  %v3595_v8 = vrot.slane %v6014_v50, 2  ;;  %v6070_v11 = vsel %vm471_vm1, %v1827_v26, %v1828_v28  ;;  %v4454_v26 = vld [vmem:[%s6728_s3 + $0x30] sm:$0x3f]  ;;  %v2741_v28 = vrot.slane %v6025_v59, 2 }
  0x34   : > { %5117 = vmatprep.mubr.msk.f32.mxu0 %vm498_vm2, %v5933_v60  ;;  %4932 = vmatprep.mubr.msk.f32.mxu1 %vm498_vm2, %v5733_v20  ;;  %6760 = vst [vmem:[#allocation12_spill] sm:$0xff] %v6070_v11 }
  0x37   : > { %5118 = vmatmul.mubr.msk.f32.gmra.mrb[6].mxu0 %vm498_vm2, %v5943_v14  ;;  %4933 = vmatmul.mubr.msk.f32.gmra.mrb[4].mxu1 %vm498_vm2, %v5779_v45 }
  0x38   : > { %5122 = vmatprep.mubr.msk.f32.mxu0 %vm498_vm2, %v5744_v24  ;;  %4935 = vmatprep.mubr.msk.f32.mxu1 %vm498_vm2, %v5806_v55 }
  0x3b   : > { %5123 = vmatmul.mubr.msk.f32.vlgmr.msra.gmra.mrb[0].mxu0 %vm498_vm2, %v5761_v36  ;;  %4936 = vmatmul.mubr.msk.f32.gmra.mrb[6].mxu1 %vm498_vm2, %v5822_v61 }
  0x3c   : > { %5135 = vmatpush3.msk.msra.mxu0 %vm515_vm0, %v4554_v37  ;;  %5125 = vmatprep.mubr.msk.f32.mxu0 %vm498_vm2, %v5765_v38  ;;  %v5983_v37 = vsel %vm515_vm0, %v754_v4, %v755_v16 }
  0x3d   : > { %4940 = vmatprep.mubr.msk.f32.mxu1 %vm498_vm2, %v750_v5  ;;  %5148 = vmatprep.subr.msk.mxu0 %vm515_vm0, %v4564_v25  ;;  %v6036_v5 = vsel %vm515_vm0, %v766_v39, %v767_v58  ;;  %v4574_v39 = vld [vmem:[%s6728_s3 + $0x90] sm:$0x3f]  ;;  %v1834_v58 = vrot.slane %v5882_v33, 1 }
  0x3f   : > { %5126 = vmatmul.mubr.msk.f32.gmra.mrb[2].mxu0 %vm498_vm2, %v5844_v10  ;;  %4941 = vmatmul.mubr.msk.f32.vlgmr.msra.gmra.mrb[0].mxu1 %vm498_vm2, %v5974_v9  ;;  %v6095_v33 = vsel %vm471_vm1, %v1833_v31, %v1834_v58  ;;  %v6161_v31 = vld [vmem:[%s6011_s20] sm:$0xff] }
  0x40   : > { %5128 = vmatprep.mubr.msk.f32.mxu0 %vm498_vm2, %v5873_v30  ;;  %4953 = vmatpush3.msk.msra.mxu1 %vm515_vm0, %v4424_v53  ;;  %v2881_v53 = vld [vmem:[%s6011_s20 + $0x88] sm:$0x3]  ;;  %6762 = vst [vmem:[#allocation14_spill] sm:$0xff] %v6095_v33 }
  0x41   : > { %4943 = vmatprep.mubr.msk.f32.mxu1 %vm498_vm2, %v5983_v37  ;;  %4966 = vmatprep.subr.msk.mxu1 %vm515_vm0, %v4434_v42  ;;  %v3473_v4 = vrot.slane %v2881_v53, 1  ;;  %v3596_v16 = vrot.slane %v2881_v53, 2  ;;  %v6077_v53 = vsel %vm471_vm1, %v1830_v48, %v1831_v43  ;;  %v451_v48 = vld [vmem:[%s5688_s9 + $0x88] sm:$0x3] }
  0x42   : > { %6761 = vst [vmem:[#allocation13_spill] sm:$0xff] %v6077_v53 }
  0x43   : > { %5129 = vmatmul.mubr.msk.f32.gmra.mrb[4].mxu0 %vm498_vm2, %v5879_v32  ;;  %4944 = vmatmul.mubr.msk.f32.gmra.mrb[2].mxu1 %vm498_vm2, %v5996_v19  ;;  %v6043_v13 = vsel %vm471_vm1, %v3472_v56, %v3473_v4  ;;  %v6055_v29 = vsel %vm515_vm0, %v3595_v8, %v3596_v16  ;;  %v2250_v56 = vrot.slane %v5908_v49, 1  ;;  %v6120_v4 = vld [vmem:[%s5688_s9 + $0x80] sm:$0xff]  ;;  %v4584_v16 = vld [vmem:[%s6728_s3 + $0x98] sm:$0x3f] }
  0x44   : > { %5131 = vmatprep.mubr.msk.f32.mxu0 %vm498_vm2, %v5908_v49  ;;  %4946 = vmatprep.mubr.msk.f32.mxu1 %vm498_vm2, %v6003_v47  ;;  %6759 = vst [vmem:[#allocation11_spill] sm:$0xff] %v6055_v29  ;;  %v1152_v49 = vrot.slane %v451_v48, 2  ;;  %v6300_v29 = vld [vmem:[%s6011_s20 + $0x78] sm:$0x3] }
  0x47   : > { %5132 = vmatmul.mubr.msk.f32.gmra.mrb[6].mxu0 %vm498_vm2, %v6025_v59  ;;  %4947 = vmatmul.mubr.msk.f32.gmra.mrb[4].mxu1 %vm498_vm2, %v6030_v1 }
  0x48   : > { %5136 = vmatprep.mubr.msk.f32.mxu0 %vm498_vm2, %v5786_v46  ;;  %4949 = vmatprep.mubr.msk.f32.mxu1 %vm498_vm2, %v6036_v5 }
  0x4b   : > { %5137 = vmatmul.mubr.msk.f32.vlgmr.msra.gmra.mrb[0].mxu0 %vm498_vm2, %v5800_v51  ;;  %4950 = vmatmul.mubr.msk.f32.gmra.mrb[6].mxu1 %vm498_vm2, %v6050_v62 }
  0x4c   : > { %5149 = vmatpush3.msk.msra.mxu0 %vm515_vm0, %v4564_v25  ;;  %5139 = vmatprep.mubr.msk.f32.mxu0 %vm498_vm2, %v5816_v57  ;;  %v2251_v25 = vrot.slane %v5911_v52, 1  ;;  %v2619_v52 = vrot.slane %v1661_v2, 1 }
  0x4d   : > { %4954 = vmatprep.mubr.msk.f32.mxu1 %vm498_vm2, %v5697_v6  ;;  %5162 = vmatprep.subr.msk.mxu0 %vm515_vm0, %v4574_v39  ;;  %v2618_v6 = vrot.slane %v6025_v59, 1  ;;  %v1028_v59 = vrot.slane %v6120_v4, 1 }
  0x4e   : > { %v6100_v8 = vsel %vm471_vm1, %v2250_v56, %v2251_v25  ;;  %v6177_v56 = vld [vmem:[%s6011_s20 + $0x20] sm:$0xff] }
  0x4f   : > { %5140 = vmatmul.mubr.msk.f32.gmra.mrb[2].mxu0 %vm498_vm2, %v6070_v11  ;;  %4955 = vmatmul.mubr.msk.f32.vlgmr.msra.gmra.mrb[0].mxu1 %vm498_vm2, %v5708_v12  ;;  %6763 = vst [vmem:[#allocation15_spill] sm:$0xff] %v6100_v8  ;;  %v4594_v25 = vld [vmem:[%s6728_s3 + $0xa0] sm:$0x3f] }
  0x50   : > { %5142 = vmatprep.mubr.msk.f32.mxu0 %vm498_vm2, %v6077_v53  ;;  %4967 = vmatpush3.msk.msra.mxu1 %vm515_vm0, %v4434_v42  ;;  %v2620_v42 = vsel %vm471_vm1, %v2618_v6, %v2619_v52  ;;  %v6199_v6 = vld [vmem:[%s6011_s20 + $0x8] sm:$0x3]  ;;  %v4464_v52 = vld [vmem:[%s6728_s3 + $0x38] sm:$0x3f] }
  0x51   : > { %4957 = vmatprep.mubr.msk.f32.mxu1 %vm498_vm2, %v5727_v18  ;;  %4980 = vmatprep.subr.msk.mxu1 %vm515_vm0, %v4444_v7 }
  0x53   : > { %5143 = vmatmul.mubr.msk.f32.gmra.mrb[4].mxu0 %vm498_vm2, %v6095_v33  ;;  %4958 = vmatmul.mubr.msk.f32.gmra.mrb[2].mxu1 %vm498_vm2, %v5733_v20 }
  0x54   : > { %5145 = vmatprep.mubr.msk.f32.mxu0 %vm498_vm2, %v6100_v8  ;;  %4960 = vmatprep.mubr.msk.f32.mxu1 %vm498_vm2, %v5779_v45 }
  0x57   : > { %5146 = vmatmul.mubr.msk.f32.gmra.mrb[6].mxu0 %vm498_vm2, %v2620_v42  ;;  %4961 = vmatmul.mubr.msk.f32.gmra.mrb[4].mxu1 %vm498_vm2, %v5806_v55  ;;  %v3034_v42 = vrot.slane %v6161_v31, 1 }
  0x58   : > { %5150 = vmatprep.mubr.msk.f32.mxu0 %vm498_vm2, %v5859_v17  ;;  %4963 = vmatprep.mubr.msk.f32.mxu1 %vm498_vm2, %v5822_v61 }
  0x5b   : > { %5151 = vmatmul.mubr.msk.f32.vlgmr.msra.gmra.mrb[0].mxu0 %vm498_vm2, %v5868_v27  ;;  %4964 = vmatmul.mubr.msk.f32.gmra.mrb[6].mxu1 %vm498_vm2, %v6120_v4  ;;  %v6249_v27 = vld [vmem:[%s6011_s20 + $0x48] sm:$0x3] }
  0x5c   : > { %5163 = vmatpush3.msk.msra.mxu0 %vm515_vm0, %v4574_v39  ;;  %5153 = vmatprep.mubr.msk.f32.mxu0 %vm498_vm2, %v5895_v41  ;;  %v1029_v39 = vrot.slane %v451_v48, 1  ;;  %v6246_v41 = vld [vmem:[%s6011_s20 + $0x38] sm:$0x3] }
  0x5d   : > { %4968 = vmatprep.mubr.msk.f32.mxu1 %vm498_vm2, %v5737_v21  ;;  %5176 = vmatprep.subr.msk.mxu0 %vm515_vm0, %v4584_v16  ;;  %v2742_v21 = vrot.slane %v1661_v2, 2  ;;  %v6190_v2 = vld [vmem:[%s6011_s20 + $0x30] sm:$0xff]  ;;  %v3044_v17 = vrot.slane %v6246_v41, 1 }
  0x5e   : > { %v6174_v58 = vsel %vm471_vm1, %v1028_v59, %v1029_v39  ;;  %v6226_v59 = vld [vmem:[%s6011_s20 + $0x28] sm:$0x3]  ;;  %v6237_v39 = vld [vmem:[%s6011_s20 + $0x70] sm:$0xff] }
  0x5f   : > { %5154 = vmatmul.mubr.msk.f32.gmra.mrb[2].mxu0 %vm498_vm2, %v5903_v44  ;;  %4969 = vmatmul.mubr.msk.f32.vlgmr.msra.gmra.mrb[0].mxu1 %vm498_vm2, %v5755_v34  ;;  %v2743_v43 = vsel %vm515_vm0, %v2741_v28, %v2742_v21  ;;  %v3035_v28 = vrot.slane %v6199_v6, 1  ;;  %v6222_v21 = vld [vmem:[%s6011_s20 + $0x18] sm:$0x3]  ;;  %v3041_v44 = vrot.slane %v6226_v59, 1 }
  0x60   : > { %5156 = vmatprep.mubr.msk.f32.mxu0 %vm498_vm2, %v5926_v54  ;;  %4981 = vmatpush3.msk.msra.mxu1 %vm515_vm0, %v4444_v7  ;;  %v6195_v7 = vld [vmem:[%s6011_s20 + $0x40] sm:$0xff]  ;;  %v3038_v8 = vrot.slane %v6222_v21, 1  ;;  %v3040_v54 = vrot.slane %v6177_v56, 1 }
  0x61   : > { %4971 = vmatprep.mubr.msk.f32.mxu1 %vm498_vm2, %v5758_v35  ;;  %4994 = vmatprep.subr.msk.mxu1 %vm515_vm0, %v4454_v26  ;;  %v3046_v33 = vrot.slane %v6195_v7, 1 }
  0x62   : > { %v6267_v3 = vsel %vm471_vm1, %v3040_v54, %v3041_v44 }
  0x63   : > { %5157 = vmatmul.mubr.msk.f32.gmra.mrb[4].mxu0 %vm498_vm2, %v5933_v60  ;;  %4972 = vmatmul.mubr.msk.f32.gmra.mrb[2].mxu1 %vm498_vm2, %v5828_v63  ;;  %v3036_v60 = vsel %vm471_vm1, %v3034_v42, %v3035_v28  ;;  %v3043_v28 = vrot.slane %v6190_v2, 1 }
  0x64   : > { %5159 = vmatprep.mubr.msk.f32.mxu0 %vm498_vm2, %v5943_v14  ;;  %4974 = vmatprep.mubr.msk.f32.mxu1 %vm498_vm2, %v5831_v0  ;;  %v6169_v14 = vld [vmem:[%s6011_s20 + $0x10] sm:$0xff] }
  0x65   : > { %v6288_v44 = vsel %vm471_vm1, %v3043_v28, %v3044_v17  ;;  %v4474_v17 = vld [vmem:[%s6728_s3 + $0x40] sm:$0x3f]  ;;  %v3056_v28 = vrot.slane %v6300_v29, 1 }
  0x67   : > { %5160 = vmatmul.mubr.msk.f32.gmra.mrb[6].mxu0 %vm498_vm2, %v2743_v43  ;;  %4975 = vmatmul.mubr.msk.f32.gmra.mrb[4].mxu1 %vm498_vm2, %v5854_v15  ;;  %v3037_v43 = vrot.slane %v6169_v14, 1 }
  0x68   : > { %5164 = vmatprep.mubr.msk.f32.mxu0 %vm498_vm2, %v6161_v31  ;;  %4977 = vmatprep.mubr.msk.f32.mxu1 %vm498_vm2, %v5864_v23 }
  0x69   : > { %v6257_v48 = vsel %vm471_vm1, %v3037_v43, %v3038_v8  ;;  %v6272_v8 = vld [vmem:[%s6011_s20 + $0x58] sm:$0x3]  ;;  %v6275_v43 = vld [vmem:[%s6011_s20 + $0x68] sm:$0x3] }
  0x6b   : > { %5165 = vmatmul.mubr.msk.f32.vlgmr.msra.gmra.mrb[0].mxu0 %vm498_vm2, %v6169_v14  ;;  %4978 = vmatmul.mubr.msk.f32.gmra.mrb[6].mxu1 %vm498_vm2, %v6174_v58 }
  0x6c   : > { %5177 = vmatpush3.msk.msra.mxu0 %vm515_vm0, %v4584_v16  ;;  %5167 = vmatprep.mubr.msk.f32.mxu0 %vm498_vm2, %v6177_v56  ;;  %v6218_v16 = vld [vmem:[%s6011_s20 + $0x60] sm:$0xff] }
  0x6d   : > { %4982 = vmatprep.mubr.msk.f32.mxu1 %vm498_vm2, %v5974_v9  ;;  %5190 = vmatprep.subr.msk.mxu0 %vm515_vm0, %v4594_v25  ;;  %v6212_v9 = vld [vmem:[%s6011_s20 + $0x50] sm:$0xff]  ;;  %v3052_v11 = vrot.slane %v6218_v16, 1 }
  0x6e   : > { %v3049_v54 = vrot.slane %v6212_v9, 1 }
  0x6f   : > { %5168 = vmatmul.mubr.msk.f32.gmra.mrb[2].mxu0 %vm498_vm2, %v6190_v2  ;;  %4983 = vmatmul.mubr.msk.f32.vlgmr.msra.gmra.mrb[0].mxu1 %vm498_vm2, %v5983_v37 }
  0x70   : > { %5170 = vmatprep.mubr.msk.f32.mxu0 %vm498_vm2, %v6195_v7  ;;  %4995 = vmatpush3.msk.msra.mxu1 %vm515_vm0, %v4454_v26  ;;  %v1151_v26 = vrot.slane %v6120_v4, 2 }
  0x71   : > { %4985 = vmatprep.mubr.msk.f32.mxu1 %vm498_vm2, %v5996_v19  ;;  %5008 = vmatprep.subr.msk.mxu1 %vm515_vm0, %v4464_v52 }
  0x72   : > { %v6262_v42 = vsel %vm515_vm0, %v1151_v26, %v1152_v49  ;;  %v4604_v49 = vld [vmem:[%s6728_s3 + $0xa8] sm:$0x3f]  ;;  %v3050_v26 = vrot.slane %v6272_v8, 1 }
  0x73   : > { %5171 = vmatmul.mubr.msk.f32.gmra.mrb[4].mxu0 %vm498_vm2, %v6212_v9  ;;  %4986 = vmatmul.mubr.msk.f32.gmra.mrb[2].mxu1 %vm498_vm2, %v6003_v47 }
  0x74   : > { %5173 = vmatprep.mubr.msk.f32.mxu0 %vm498_vm2, %v6218_v16  ;;  %4988 = vmatprep.mubr.msk.f32.mxu1 %vm498_vm2, %v6030_v1 }
  0x77   : > { %5174 = vmatmul.mubr.msk.f32.gmra.mrb[6].mxu0 %vm498_vm2, %v6237_v39  ;;  %4989 = vmatmul.mubr.msk.f32.gmra.mrb[4].mxu1 %vm498_vm2, %v6036_v5 }
  0x78   : > { %5178 = vmatprep.mubr.msk.f32.mxu0 %vm498_vm2, %v3036_v60  ;;  %4991 = vmatprep.mubr.msk.f32.mxu1 %vm498_vm2, %v6050_v62  ;;  %v3047_v60 = vrot.slane %v6249_v27, 1 }
  0x7a   : > { %v6295_v53 = vsel %vm471_vm1, %v3046_v33, %v3047_v60  ;;  %v3055_v33 = vrot.slane %v6237_v39, 1  ;;  %v3192_v60 = vrot.slane %v6161_v31, 2 }
  0x7b   : > { %5179 = vmatmul.mubr.msk.f32.vlgmr.msra.gmra.mrb[0].mxu0 %vm498_vm2, %v6257_v48  ;;  %4992 = vmatmul.mubr.msk.f32.gmra.mrb[6].mxu1 %vm498_vm2, %v6262_v42 }
  0x7c   : > { %5191 = vmatpush3.msk.msra.mxu0 %vm515_vm0, %v4594_v25  ;;  %5181 = vmatprep.mubr.msk.f32.mxu0 %vm498_vm2, %v6267_v3  ;;  %v3053_v25 = vrot.slane %v6275_v43, 1 }
  0x7d   : > { %4996 = vmatprep.mubr.msk.f32.mxu1 %vm498_vm2, %v5708_v12  ;;  %5204 = vmatprep.subr.msk.mxu0 %vm515_vm0, %v4604_v49  ;;  %v6314_v12 = vsel %vm471_vm1, %v3049_v54, %v3050_v26  ;;  %v3199_v54 = vrot.slane %v6226_v59, 2  ;;  %v3202_v59 = vrot.slane %v6246_v41, 2 }
  0x7e   : > { %v6322_v57 = vsel %vm471_vm1, %v3052_v11, %v3053_v25  ;;  %v3196_v11 = vrot.slane %v6222_v21, 2  ;;  %v3201_v21 = vrot.slane %v6190_v2, 2  ;;  %v3204_v25 = vrot.slane %v6195_v7, 2 }
  0x7f   : > { %5182 = vmatmul.mubr.msk.f32.gmra.mrb[2].mxu0 %vm498_vm2, %v6288_v44  ;;  %4997 = vmatmul.mubr.msk.f32.vlgmr.msra.gmra.mrb[0].mxu1 %vm498_vm2, %v5727_v18  ;;  %v3193_v18 = vrot.slane %v6199_v6, 2  ;;  %v3198_v6 = vrot.slane %v6177_v56, 2 }
  0x80   : > { %5184 = vmatprep.mubr.msk.f32.mxu0 %vm498_vm2, %v6295_v53  ;;  %5009 = vmatpush3.msk.msra.mxu1 %vm515_vm0, %v4464_v52  ;;  %v3195_v52 = vrot.slane %v6169_v14, 2  ;;  %v6373_v41 = vsel %vm515_vm0, %v3201_v21, %v3202_v59  ;;  %v4654_v21 = vld [vmem:[%s6728_s3 + $0xd0] sm:$0x3f]  ;;  %v6768_v59 = vld [vmem:[#allocation14_spill] sm:$0xff] }
  0x81   : > { %4999 = vmatprep.mubr.msk.f32.mxu1 %vm498_vm2, %v5733_v20  ;;  %5022 = vmatprep.subr.msk.mxu1 %vm515_vm0, %v4474_v17  ;;  %v6334_v20 = vsel %vm471_vm1, %v3055_v33, %v3056_v28  ;;  %v3194_v31 = vsel %vm515_vm0, %v3192_v60, %v3193_v18  ;;  %v6358_v26 = vsel %vm515_vm0, %v3198_v6, %v3199_v54  ;;  %v4614_v33 = vld [vmem:[%s6728_s3 + $0xb0] sm:$0x3f]  ;;  %v3210_v60 = vrot.slane %v6218_v16, 2  ;;  %v4484_v18 = vld [vmem:[%s6728_s3 + $0x48] sm:$0x3f] }
  0x83   : > { %5185 = vmatmul.mubr.msk.f32.gmra.mrb[4].mxu0 %vm498_vm2, %v6314_v12  ;;  %5000 = vmatmul.mubr.msk.f32.gmra.mrb[2].mxu1 %vm498_vm2, %v5779_v45  ;;  %v6348_v45 = vsel %vm515_vm0, %v3195_v52, %v3196_v11  ;;  %v453_v11 = vld [vmem:[%s5688_s9 + $0x98] sm:$0x3] }
  0x84   : > { %5187 = vmatprep.mubr.msk.f32.mxu0 %vm498_vm2, %v6322_v57  ;;  %5002 = vmatprep.mubr.msk.f32.mxu1 %vm498_vm2, %v5806_v55  ;;  %v6353_v55 = vld [vmem:[%s5688_s9 + $0x90] sm:$0xff] }
  0x87   : > { %5188 = vmatmul.mubr.msk.f32.gmra.mrb[6].mxu0 %vm498_vm2, %v6334_v20  ;;  %5003 = vmatmul.mubr.msk.f32.gmra.mrb[4].mxu1 %vm498_vm2, %v5822_v61  ;;  %v3205_v61 = vrot.slane %v6249_v27, 2  ;;  %v3207_v27 = vrot.slane %v6212_v9, 2 }
  0x88   : > { %5192 = vmatprep.mubr.msk.f32.mxu0 %vm498_vm2, %v3194_v31  ;;  %5005 = vmatprep.mubr.msk.f32.mxu1 %vm498_vm2, %v6120_v4  ;;  %v3208_v4 = vrot.slane %v6272_v8, 2  ;;  %v3213_v8 = vrot.slane %v6237_v39, 2  ;;  %v4514_v31 = vld [vmem:[%s6728_s3 + $0x60] sm:$0x3f] }
  0x89   : > { %v6380_v28 = vsel %vm515_vm0, %v3204_v25, %v3205_v61  ;;  %v6772_v25 = vld [vmem:[#allocation6_spill] sm:$0xff]  ;;  %v6773_v61 = vld [vmem:[#allocation7_spill] sm:$0xff] }
  0x8b   : > { %5193 = vmatmul.mubr.msk.f32.vlgmr.msra.gmra.mrb[0].mxu0 %vm498_vm2, %v6348_v45  ;;  %5006 = vmatmul.mubr.msk.f32.gmra.mrb[6].mxu1 %vm498_vm2, %v6353_v55 }
  0x8c   : > { %5205 = vmatpush3.msk.msra.mxu0 %vm515_vm0, %v4604_v49  ;;  %5195 = vmatprep.mubr.msk.f32.mxu0 %vm498_vm2, %v6358_v26  ;;  %v3211_v49 = vrot.slane %v6275_v43, 2  ;;  %v3214_v43 = vrot.slane %v6300_v29, 2 }
  0x8d   : > { %5010 = vmatprep.mubr.msk.f32.mxu1 %vm498_vm2, %v5755_v34  ;;  %5218 = vmatprep.subr.msk.mxu0 %vm515_vm0, %v4614_v33  ;;  %v6396_v34 = vsel %vm515_vm0, %v3207_v27, %v3208_v4 }
  0x8e   : > { %v6403_v52 = vsel %vm515_vm0, %v3210_v60, %v3211_v49  ;;  %v6415_v29 = vsel %vm515_vm0, %v3213_v8, %v3214_v43 }
  0x8f   : > { %5196 = vmatmul.mubr.msk.f32.gmra.mrb[2].mxu0 %vm498_vm2, %v6373_v41  ;;  %5011 = vmatmul.mubr.msk.f32.vlgmr.msra.gmra.mrb[0].mxu1 %vm498_vm2, %v5758_v35  ;;  %v1396_v35 = vrot.slane %v6353_v55, 1 }
  0x90   : > { %5198 = vmatprep.mubr.msk.f32.mxu0 %vm498_vm2, %v6380_v28  ;;  %5023 = vmatpush3.msk.msra.mxu1 %vm515_vm0, %v4474_v17  ;;  %v4624_v17 = vld [vmem:[%s6728_s3 + $0xb8] sm:$0x3f] }
  0x91   : > { %5013 = vmatprep.mubr.msk.f32.mxu1 %vm498_vm2, %v5828_v63  ;;  %5036 = vmatprep.subr.msk.mxu1 %vm515_vm0, %v4484_v18  ;;  %v1397_v63 = vrot.slane %v453_v11, 1 }
  0x93   : > { %5199 = vmatmul.mubr.msk.f32.gmra.mrb[4].mxu0 %vm498_vm2, %v6396_v34  ;;  %5014 = vmatmul.mubr.msk.f32.gmra.mrb[2].mxu1 %vm498_vm2, %v5831_v0  ;;  %v1398_v0 = vsel %vm471_vm1, %v1396_v35, %v1397_v63 }
  0x94   : > { %5201 = vmatprep.mubr.msk.f32.mxu0 %vm498_vm2, %v6403_v52  ;;  %5016 = vmatprep.mubr.msk.f32.mxu1 %vm498_vm2, %v5854_v15  ;;  %v4494_v15 = vld [vmem:[%s6728_s3 + $0x50] sm:$0x3f] }
  0x97   : > { %5202 = vmatmul.mubr.msk.f32.gmra.mrb[6].mxu0 %vm498_vm2, %v6415_v29  ;;  %5017 = vmatmul.mubr.msk.f32.gmra.mrb[4].mxu1 %vm498_vm2, %v5864_v23  ;;  %v1519_v23 = vrot.slane %v6353_v55, 2  ;;  %v6767_v55 = vld [vmem:[#allocation13_spill] sm:$0xff] }
  0x98   : > { %5206 = vmatprep.mubr.msk.f32.mxu0 %vm498_vm2, %v6169_v14  ;;  %5019 = vmatprep.mubr.msk.f32.mxu1 %vm498_vm2, %v6174_v58 }
  0x9b   : > { %5207 = vmatmul.mubr.msk.f32.vlgmr.msra.gmra.mrb[0].mxu0 %vm498_vm2, %v6177_v56  ;;  %5020 = vmatmul.mubr.msk.f32.gmra.mrb[6].mxu1 %vm498_vm2, %v1398_v0 }
  0x9c   : > { %5219 = vmatpush3.msk.msra.mxu0 %vm515_vm0, %v4614_v33  ;;  %5209 = vmatprep.mubr.msk.f32.mxu0 %vm498_vm2, %v6190_v2  ;;  %v6774_v33 = vld [vmem:[#allocation9_spill] sm:$0xff] }
  0x9d   : > { %5024 = vmatprep.mubr.msk.f32.mxu1 %vm498_vm2, %v5983_v37  ;;  %5232 = vmatprep.subr.msk.mxu0 %vm515_vm0, %v4624_v17  ;;  %v1520_v37 = vrot.slane %v453_v11, 2 }
  0x9f   : > { %5210 = vmatmul.mubr.msk.f32.gmra.mrb[2].mxu0 %vm498_vm2, %v6195_v7  ;;  %5025 = vmatmul.mubr.msk.f32.vlgmr.msra.gmra.mrb[0].mxu1 %vm498_vm2, %v5996_v19  ;;  %v1521_v19 = vsel %vm515_vm0, %v1519_v23, %v1520_v37 }
  0xa0   : > { %5212 = vmatprep.mubr.msk.f32.mxu0 %vm498_vm2, %v6212_v9  ;;  %5037 = vmatpush3.msk.msra.mxu1 %vm515_vm0, %v4484_v18 }
  0xa1   : > { %5027 = vmatprep.mubr.msk.f32.mxu1 %vm498_vm2, %v6003_v47  ;;  %5050 = vmatprep.subr.msk.mxu1 %vm515_vm0, %v4494_v15  ;;  %v1642_v47 = vld [vmem:[%s5722_s16] sm:$0xff] }
  0xa2   : > { %v1812_v14 = vrot.slane %v1642_v47, 1  ;;  %v1970_v6 = vrot.slane %v1642_v47, 2 }
  0xa3   : > { %5213 = vmatmul.mubr.msk.f32.gmra.mrb[4].mxu0 %vm498_vm2, %v6218_v16  ;;  %5028 = vmatmul.mubr.msk.f32.gmra.mrb[2].mxu1 %vm498_vm2, %v6030_v1  ;;  %v4634_v1 = vld [vmem:[%s6728_s3 + $0xc0] sm:$0x3f] }
  0xa4   : > { %5215 = vmatprep.mubr.msk.f32.mxu0 %vm498_vm2, %v6237_v39  ;;  %5030 = vmatprep.mubr.msk.f32.mxu1 %vm498_vm2, %v6036_v5  ;;  %v4504_v5 = vld [vmem:[%s6728_s3 + $0x58] sm:$0x3f] }
  0xa7   : > { %5216 = vmatmul.mubr.msk.f32.gmra.mrb[6].mxu0 %vm498_vm2, %v6014_v50  ;;  %5031 = vmatmul.mubr.msk.f32.gmra.mrb[4].mxu1 %vm498_vm2, %v6050_v62  ;;  %v1643_v62 = vld [vmem:[%s5722_s16 + $0x8] sm:$0x3] }
  0xa8   : > { %5220 = vmatprep.mubr.msk.f32.mxu0 %vm498_vm2, %v6257_v48  ;;  %5033 = vmatprep.mubr.msk.f32.mxu1 %vm498_vm2, %v6262_v42  ;;  %v1813_v58 = vrot.slane %v1643_v62, 1  ;;  %v4644_v42 = vld [vmem:[%s6728_s3 + $0xc8] sm:$0x3f]  ;;  %v1971_v54 = vrot.slane %v1643_v62, 2 }
  0xaa   : > { %v1814_v48 = vsel %vm471_vm1, %v1812_v14, %v1813_v58 }
  0xab   : > { %5221 = vmatmul.mubr.msk.f32.vlgmr.msra.gmra.mrb[0].mxu0 %vm498_vm2, %v6267_v3  ;;  %5034 = vmatmul.mubr.msk.f32.gmra.mrb[6].mxu1 %vm498_vm2, %v1521_v19 }
  0xac   : > { %5233 = vmatpush3.msk.msra.mxu0 %vm515_vm0, %v4624_v17  ;;  %5223 = vmatprep.mubr.msk.f32.mxu0 %vm498_vm2, %v6288_v44 }
  0xad   : > { %5038 = vmatprep.mubr.msk.f32.mxu1 %vm498_vm2, %v1642_v47  ;;  %5246 = vmatprep.subr.msk.mxu0 %vm515_vm0, %v4634_v1 }
  0xaf   : > { %5224 = vmatmul.mubr.msk.f32.gmra.mrb[2].mxu0 %vm498_vm2, %v6295_v53  ;;  %5039 = vmatmul.mubr.msk.f32.vlgmr.msra.gmra.mrb[0].mxu1 %vm498_vm2, %v5740_v22 }
  0xb0   : > { %5226 = vmatprep.mubr.msk.f32.mxu0 %vm498_vm2, %v6314_v12  ;;  %5051 = vmatpush3.msk.msra.mxu1 %vm515_vm0, %v4494_v15 }
  0xb1   : > { %5041 = vmatprep.mubr.msk.f32.mxu1 %vm498_vm2, %v5744_v24  ;;  %5064 = vmatprep.subr.msk.mxu1 %vm515_vm0, %v4504_v5 }
  0xb3   : > { %5227 = vmatmul.mubr.msk.f32.gmra.mrb[4].mxu0 %vm498_vm2, %v6322_v57  ;;  %5042 = vmatmul.mubr.msk.f32.gmra.mrb[2].mxu1 %vm498_vm2, %v5761_v36 }
  0xb4   : > { %5229 = vmatprep.mubr.msk.f32.mxu0 %vm498_vm2, %v6334_v20  ;;  %5044 = vmatprep.mubr.msk.f32.mxu1 %vm498_vm2, %v5765_v38 }
  0xb7   : > { %5230 = vmatmul.mubr.msk.f32.gmra.mrb[6].mxu0 %vm498_vm2, %v6043_v13  ;;  %5045 = vmatmul.mubr.msk.f32.gmra.mrb[4].mxu1 %vm498_vm2, %v5844_v10 }
  0xb8   : > { %5234 = vmatprep.mubr.msk.f32.mxu0 %vm498_vm2, %v6348_v45  ;;  %5047 = vmatprep.mubr.msk.f32.mxu1 %vm498_vm2, %v5873_v30  ;;  %v6765_v45 = vld [vmem:[#allocation11_spill] sm:$0xff] }
  0xbb   : > { %5235 = vmatmul.mubr.msk.f32.vlgmr.msra.gmra.mrb[0].mxu0 %vm498_vm2, %v6358_v26  ;;  %5048 = vmatmul.mubr.msk.f32.gmra.mrb[6].mxu1 %vm498_vm2, %v5879_v32 }
  0xbc   : > { %5247 = vmatpush3.msk.msra.mxu0 %vm515_vm0, %v4634_v1  ;;  %5237 = vmatprep.mubr.msk.f32.mxu0 %vm498_vm2, %v6373_v41 }
  0xbd   : > { %5052 = vmatprep.mubr.msk.f32.mxu1 %vm498_vm2, %v1814_v48  ;;  %5260 = vmatprep.subr.msk.mxu0 %vm515_vm0, %v4644_v42 }
  0xbf   : > { %5238 = vmatmul.mubr.msk.f32.gmra.mrb[2].mxu0 %vm498_vm2, %v6380_v28  ;;  %5053 = vmatmul.mubr.msk.f32.vlgmr.msra.gmra.mrb[0].mxu1 %vm498_vm2, %v5771_v40  ;;  %v6764_v40 = vld [vmem:[#allocation2_spill] sm:$0xff] }
  0xc0   : > { %5240 = vmatprep.mubr.msk.f32.mxu0 %vm498_vm2, %v6396_v34  ;;  %5065 = vmatpush3.msk.msra.mxu1 %vm515_vm0, %v4504_v5 }
  0xc1   : > { %5055 = vmatprep.mubr.msk.f32.mxu1 %vm498_vm2, %v5786_v46  ;;  %5078 = vmatprep.subr.msk.mxu1 %vm515_vm0, %v4514_v31  ;;  %v6766_v46 = vld [vmem:[#allocation12_spill] sm:$0xff] }
  0xc3   : > { %5241 = vmatmul.mubr.msk.f32.gmra.mrb[4].mxu0 %vm498_vm2, %v6403_v52  ;;  %5056 = vmatmul.mubr.msk.f32.gmra.mrb[2].mxu1 %vm498_vm2, %v5800_v51  ;;  %v1972_v51 = vsel %vm515_vm0, %v1970_v6, %v1971_v54 }
  0xc4   : > { %5243 = vmatprep.mubr.msk.f32.mxu0 %vm498_vm2, %v6415_v29  ;;  %5058 = vmatprep.mubr.msk.f32.mxu1 %vm498_vm2, %v6764_v40 }
  0xc7   : > { %5244 = vmatmul.mubr.msk.f32.gmra.mrb[6].mxu0 %vm498_vm2, %v6765_v45  ;;  %5059 = vmatmul.mubr.msk.f32.gmra.mrb[4].mxu1 %vm498_vm2, %v6766_v46 }
  0xc8   : > { %5248 = vmatprep.mubr.msk.f32.mxu0 %vm498_vm2, %v6177_v56  ;;  %5061 = vmatprep.mubr.msk.f32.mxu1 %vm498_vm2, %v6767_v55  ;;  %v6769_v56 = vld [vmem:[#allocation3_spill] sm:$0xff] }
  0xcb   : > { %5249 = vmatmul.mubr.msk.f32.vlgmr.msra.gmra.mrb[0].mxu0 %vm498_vm2, %v6190_v2  ;;  %5062 = vmatmul.mubr.msk.f32.gmra.mrb[6].mxu1 %vm498_vm2, %v6768_v59  ;;  %v6770_v2 = vld [vmem:[#allocation4_spill] sm:$0xff] }
  0xcc   : > { %5261 = vmatpush3.msk.msra.mxu0 %vm515_vm0, %v4644_v42  ;;  %5251 = vmatprep.mubr.msk.f32.mxu0 %vm498_vm2, %v6195_v7  ;;  %v5542_v7 = vld [vmem:[%s6728_s3 + $0x68] sm:$0x3f] }
  0xcd   : > { %5066 = vmatprep.mubr.msk.f32.mxu1 %vm498_vm2, %v1972_v51  ;;  %5274 = vmatprep.subr.msk.mxu0 %vm515_vm0, %v4654_v21 }
  0xcf   : > { %5252 = vmatmul.mubr.msk.f32.gmra.mrb[2].mxu0 %vm498_vm2, %v6212_v9  ;;  %5067 = vmatmul.mubr.msk.f32.vlgmr.msra.gmra.mrb[0].mxu1 %vm498_vm2, %v6769_v56  ;;  %v6771_v9 = vld [vmem:[#allocation5_spill] sm:$0xff] }
  0xd0   : > { %5254 = vmatprep.mubr.msk.f32.mxu0 %vm498_vm2, %v6218_v16  ;;  %5079 = vmatpush3.msk.msra.mxu1 %vm515_vm0, %v4514_v31  ;;  %v2882_v16 = vld [vmem:[%s6011_s20 + $0x90] sm:$0xff] }
  0xd1   : > { %5069 = vmatprep.mubr.msk.f32.mxu1 %vm498_vm2, %v6770_v2  ;;  %5288 = vmatprep.subr.msk.mxu1 %vm515_vm0, %v5542_v7 }
  0xd3   : > { %5255 = vmatmul.mubr.msk.f32.gmra.mrb[4].mxu0 %vm498_vm2, %v6237_v39  ;;  %5070 = vmatmul.mubr.msk.f32.gmra.mrb[2].mxu1 %vm498_vm2, %v6771_v9  ;;  %v6775_v39 = vld [vmem:[#allocation10_spill] sm:$0xff] }
  0xd4   : > { %5257 = vmatprep.mubr.msk.f32.mxu0 %vm498_vm2, %v6014_v50  ;;  %5072 = vmatprep.mubr.msk.f32.mxu1 %vm498_vm2, %v6772_v25  ;;  %v2883_v50 = vld [vmem:[%s6011_s20 + $0x98] sm:$0x3]  ;;  %s4390_s20 = sshll.u32 %s6795_s24, 3 }
  0xd5   : > { %s417_s18 = sadd.s32 %s4391_s13, %s4390_s20  ;;  %s433_s20 = scalar_lea.vmem %s6732_s7, %s425_s23 }
  0xd6   : > { %s4392_s14 = sshll.u32 %s417_s18, 3 }
  0xd7   : > { %5258 = vmatmul.mubr.msk.f32.gmra.mrb[6].mxu0 %vm498_vm2, %v2882_v16  ;;  %5073 = vmatmul.mubr.msk.f32.gmra.mrb[4].mxu1 %vm498_vm2, %v6773_v61  ;;  %s6668_s16 = scalar_lea.vmem %s6730_s5, %s4392_s14 }
  0xd8   : > { %5262 = vmatprep.mubr.msk.f32.mxu0 %vm498_vm2, %v6267_v3  ;;  %5075 = vmatprep.mubr.msk.f32.mxu1 %vm498_vm2, %v6774_v33  ;;  %v3840_v3 = vrot.slane %v2882_v16, 1 }
  0xdb   : > { %5263 = vmatmul.mubr.msk.f32.vlgmr.msra.gmra.mrb[0].mxu0 %vm498_vm2, %v6288_v44  ;;  %5076 = vmatmul.mubr.msk.f32.gmra.mrb[6].mxu1 %vm498_vm2, %v6775_v39  ;;  %v3841_v44 = vrot.slane %v2883_v50, 1 }
  0xdc   : > { %5275 = vmatpush3.msk.msra.mxu0 %vm515_vm0, %v4654_v21  ;;  %5265 = vmatprep.mubr.msk.f32.mxu0 %vm498_vm2, %v6295_v53 }
  0xdd   : > { %5080 = vmatprep.mubr.msk.f32.mxu1 %vm498_vm2, %v5740_v22  ;;  %v3842_v22 = vsel %vm471_vm1, %v3840_v3, %v3841_v44 }
  0xdf   : > { %5266 = vmatmul.mubr.msk.f32.gmra.mrb[2].mxu0 %vm498_vm2, %v6314_v12  ;;  %5081 = vmatmul.mubr.msk.f32.vlgmr.msra.gmra.mrb[0].mxu1 %vm498_vm2, %v5744_v24  ;;  %v6776_v24 = vld [vmem:[#allocation8_spill] sm:$0xff] }
  0xe0   : > { %5268 = vmatprep.mubr.msk.f32.mxu0 %vm498_vm2, %v6322_v57  ;;  %5289 = vmatpush3.msk.msra.mxu1 %vm515_vm0, %v5542_v7  ;;  %v6777_v57 = vld [vmem:[#allocation15_spill] sm:$0xff] }
  0xe1   : > { %5083 = vmatprep.mubr.msk.f32.mxu1 %vm498_vm2, %v5761_v36  ;;  %v3963_v36 = vrot.slane %v2882_v16, 2 }
  0xe3   : > { %5269 = vmatmul.mubr.msk.f32.gmra.mrb[4].mxu0 %vm498_vm2, %v6334_v20  ;;  %5084 = vmatmul.mubr.msk.f32.gmra.mrb[2].mxu1 %vm498_vm2, %v5765_v38  ;;  %v3964_v38 = vrot.slane %v2883_v50, 2  ;;  %v4664_v20 = vld [vmem:[%s6729_s4] ss:$0 sm:$0xff] }
  0xe4   : > { %5271 = vmatprep.mubr.msk.f32.mxu0 %vm498_vm2, %v6043_v13  ;;  %5086 = vmatprep.mubr.msk.f32.mxu1 %vm498_vm2, %v5844_v10 }
  0xe5   : > { %v3965_v10 = vsel %vm515_vm0, %v3963_v36, %v3964_v38 }
  0xe7   : > { %5272 = vmatmul.mubr.msk.f32.gmra.mrb[6].mxu0 %vm498_vm2, %v3842_v22  ;;  %5087 = vmatmul.mubr.msk.f32.gmra.mrb[4].mxu1 %vm498_vm2, %v5873_v30 }
  0xe8   : > { %5276 = vmatprep.mubr.msk.f32.mxu0 %vm498_vm2, %v6358_v26  ;;  %5089 = vmatprep.mubr.msk.f32.mxu1 %vm498_vm2, %v5879_v32 }
  0xeb   : > { %5277 = vmatmul.mubr.msk.f32.vlgmr.msra.gmra.mrb[0].mxu0 %vm498_vm2, %v6373_v41  ;;  %5090 = vmatmul.mubr.msk.f32.gmra.mrb[6].mxu1 %vm498_vm2, %v6776_v24 }
  0xec   : > { %5279 = vmatprep.mubr.msk.f32.mxu0 %vm498_vm2, %v6380_v28  ;;  %5100 = vmatprep.mubr.msk.f32.mxu1 %vm498_vm2, %v6766_v46 }
  0xef   : > { %5280 = vmatmul.mubr.msk.f32.gmra.mrb[2].mxu0 %vm498_vm2, %v6396_v34  ;;  %5101 = vmatmul.mubr.msk.f32.vlgmr.msra.gmra.mrb[4].mxu1 %vm498_vm2, %v6767_v55 }
  0xf0   : > { %5282 = vmatprep.mubr.msk.f32.mxu0 %vm498_vm2, %v6403_v52  ;;  %5103 = vmatprep.mubr.msk.f32.mxu1 %vm498_vm2, %v6768_v59 }
  0xf3   : > { %5283 = vmatmul.mubr.msk.f32.gmra.mrb[4].mxu0 %vm498_vm2, %v6415_v29  ;;  %5104 = vmatmul.mubr.msk.f32.gmra.mrb[6].mxu1 %vm498_vm2, %v6777_v57 }
  0xf4   : > { %5285 = vmatprep.mubr.msk.f32.mxu0 %vm498_vm2, %v6765_v45 }
  0xf7   : > { %5286 = vmatmul.mubr.msk.f32.gmra.mrb[6].mxu0 %vm498_vm2, %v3965_v10 }
 0x1b2   : > { %v5082_v30 = vpop.f32.mrb[0].mxu1 }
 0x1b3   : > { %v2202_v32 = vpop.f32.mrb[1].mxu1 }
 0x1b6   : > { %v5085_v13 = vpop.f32.mrb[2].mxu1 }
 0x1b7   : > { %v2212_v53 = vpop.f32.mrb[3].mxu1 }
 0x1be   : > { %v5278_v12 = vpop.f32.mrb[0].mxu0 }
 0x1bf   : > { %v5290_v26 = vadd.f32 %v5278_v12, %v5082_v30  ;;  %v4039_v41 = vpop.f32.mrb[1].mxu0 }
 0x1c0   : > { %v5291_v27 = vadd.f32 %v4039_v41, %v2202_v32 }
 0x1c1   : > { %v4094_v4 = vadd.f32 %v5290_v26, %v4664_v20 }
 0x1c2   : > { %v4093_v28 = vadd.f32 %v5291_v27, %v4664_v20  ;;  %v5281_v60 = vpop.f32.mrb[2].mxu0  ;;  %v5102_v49 = vpop.f32.mrb[4].mxu1 }
 0x1c3   : > { %v4103_v18 = vsel %vm4101_vm3, %v4094_v4, 0.0  ;;  %v4126_v34 = vmul.f32 %v4094_v4, %v4094_v4  ;;  %4156 = vst.msk [vmem:[%s6668_s16 + $0x8] sm:$0xff] %vm4101_vm3, %v4094_v4  ;;  %v5292_v8 = vadd.f32 %v5281_v60, %v5085_v13  ;;  %v4049_v43 = vpop.f32.mrb[3].mxu0  ;;  %v2346_v52 = vpop.f32.mrb[5].mxu1 }
 0x1c4   : > { %v4102_v11 = vsel %vm4101_vm3, %v4093_v28, 0.0  ;;  %v4125_v35 = vmul.f32 %v4093_v28, %v4093_v28  ;;  %4155 = vst.msk [vmem:[%s6668_s16] sm:$0xff] %vm4101_vm3, %v4093_v28  ;;  %v5293_v29 = vadd.f32 %v4049_v43, %v2212_v53 }
 0x1c5   : > { %v4134_v63 = vsel %vm4101_vm3, %v4126_v34, 0.0  ;;  %v4104_v0 = vadd.f32 %v4103_v18, %v4102_v11  ;;  %v4096_v17 = vadd.f32 %v5292_v8, %v4664_v20 }
 0x1c6   : > { %v4133_v15 = vsel %vm4101_vm3, %v4125_v35, 0.0  ;;  %v4095_v23 = vadd.f32 %v5293_v29, %v4664_v20  ;;  %v5284_v37 = vpop.f32.mrb[4].mxu0  ;;  %v5105_v19 = vpop.f32.mrb[6].mxu1 }
 0x1c7   : > { %v4135_v47 = vadd.f32 %v4134_v63, %v4133_v15  ;;  %v4128_v1 = vmul.f32 %v4096_v17, %v4096_v17  ;;  %4158 = vst.msk [vmem:[%s6668_s16 + $0x18] sm:$0xff] %vm4101_vm3, %v4096_v17  ;;  %v5294_v5 = vadd.f32 %v5284_v37, %v5102_v49  ;;  %v4059_v62 = vpop.f32.mrb[5].mxu0  ;;  %v2356_v14 = vpop.f32.mrb[7].mxu1  ;;  %v4107_v6 = vsel %vm4101_vm3, %v4096_v17, 0.0 }
 0x1c8   : > { %v4105_v58 = vsel %vm4101_vm3, %v4095_v23, 0.0  ;;  %v4127_v48 = vmul.f32 %v4095_v23, %v4095_v23  ;;  %4157 = vst.msk [vmem:[%s6668_s16 + $0x10] sm:$0xff] %vm4101_vm3, %v4095_v23  ;;  %v5295_v42 = vadd.f32 %v4059_v62, %v2346_v52 }
 0x1c9   : > { %v4106_v31 = vadd.f32 %v4105_v58, %v4104_v0  ;;  %v4098_v40 = vadd.f32 %v5294_v5, %v4664_v20  ;;  %v4138_v55 = vsel %vm4101_vm3, %v4128_v1, 0.0 }
 0x1ca   : > { %v4136_v54 = vsel %vm4101_vm3, %v4127_v48, 0.0  ;;  %v4097_v45 = vadd.f32 %v5295_v42, %v4664_v20  ;;  %v5287_v46 = vpop.f32.mrb[6].mxu0 }
 0x1cb   : > { %v4137_v51 = vadd.f32 %v4136_v54, %v4135_v47  ;;  %v4130_v21 = vmul.f32 %v4098_v40, %v4098_v40  ;;  %4160 = vst.msk [vmem:[%s6668_s16 + $0x28] sm:$0xff] %vm4101_vm3, %v4098_v40  ;;  %v4108_v59 = vadd.f32 %v4107_v6, %v4106_v31  ;;  %v4069_v56 = vpop.f32.mrb[7].mxu0  ;;  %v5296_v9 = vadd.f32 %v5287_v46, %v5105_v19 }
 0x1cc   : > { %v4109_v2 = vsel %vm4101_vm3, %v4097_v45, 0.0  ;;  %v4129_v7 = vmul.f32 %v4097_v45, %v4097_v45  ;;  %4159 = vst.msk [vmem:[%s6668_s16 + $0x20] sm:$0xff] %vm4101_vm3, %v4097_v45  ;;  %v5297_v16 = vadd.f32 %v4069_v56, %v2356_v14  ;;  %v4111_v33 = vsel %vm4101_vm3, %v4098_v40, 0.0 }
 0x1cd   : > { %v4110_v25 = vadd.f32 %v4109_v2, %v4108_v59  ;;  %v4139_v61 = vadd.f32 %v4138_v55, %v4137_v51  ;;  %v4100_v50 = vadd.f32 %v5296_v9, %v4664_v20  ;;  %v4142_v24 = vsel %vm4101_vm3, %v4130_v21, 0.0 }
 0x1ce   : > { %v4140_v39 = vsel %vm4101_vm3, %v4129_v7, 0.0  ;;  %v4099_v3 = vadd.f32 %v5297_v16, %v4664_v20 }
 0x1cf   : > { %v4141_v44 = vadd.f32 %v4140_v39, %v4139_v61  ;;  %v4112_v22 = vadd.f32 %v4111_v33, %v4110_v25  ;;  %v4132_v36 = vmul.f32 %v4100_v50, %v4100_v50  ;;  %4162 = vst.msk [vmem:[%s6668_s16 + $0x38] sm:$0xff] %vm4101_vm3, %v4100_v50  ;;  %v4115_v32 = vsel %vm4101_vm3, %v4100_v50, 0.0 }
 0x1d0   : > { %v4113_v38 = vsel %vm4101_vm3, %v4099_v3, 0.0  ;;  %v4131_v57 = vmul.f32 %v4099_v3, %v4099_v3  ;;  %4161 = vst.msk [vmem:[%s6668_s16 + $0x30] sm:$0xff] %vm4101_vm3, %v4099_v3 }
 0x1d1   : > { %v4114_v10 = vadd.f32 %v4113_v38, %v4112_v22  ;;  %v4143_v30 = vadd.f32 %v4142_v24, %v4141_v44  ;;  %v4146_v20 = vsel %vm4101_vm3, %v4132_v36, 0.0 }
 0x1d2   : > { %v4144_v13 = vsel %vm4101_vm3, %v4131_v57, 0.0 }
 0x1d3   : > { %v4116_v53 = vadd.f32 %v4115_v32, %v4114_v10  ;;  %v4145_v12 = vadd.f32 %v4144_v13, %v4143_v30 }
 0x1d5   : > { %v4117_v26 = vrot.slane %v4116_v53, 4  ;;  %v4147_v41 = vadd.f32 %v4146_v20, %v4145_v12 }
 0x1d7   : > { %v4118_v27 = vadd.f32 %v4117_v26, %v4116_v53  ;;  %v4148_v4 = vrot.slane %v4147_v41, 4 }
 0x1d9   : > { %v4119_v28 = vrot.slane %v4118_v27, 2  ;;  %v4149_v60 = vadd.f32 %v4148_v4, %v4147_v41 }
 0x1db   : > { %v4120_v49 = vadd.f32 %v4119_v28, %v4118_v27  ;;  %v4150_v18 = vrot.slane %v4149_v60, 2 }
 0x1dd   : > { %v4121_v34 = vrot.slane %v4120_v49, 1  ;;  %v4151_v8 = vadd.f32 %v4150_v18, %v4149_v60 }
 0x1df   : > { %v4122_v43 = vadd.f32 %v4121_v34, %v4120_v49  ;;  %v4152_v52 = vrot.slane %v4151_v8, 1 }
 0x1e1   : > { %4124 = vst.msk [vmem:[%s426_s11] sm:$0x1] %vm4123_vm4, %v4122_v43  ;;  %v4153_v11 = vadd.f32 %v4152_v52, %v4151_v8 }
 0x1e3   : > { %4154 = vst.msk [vmem:[%s433_s20] sm:$0x1] %vm4123_vm4, %v4153_v11 }
 0x1e4 PF: > { %s18_s28 = sadd.s32 1, %s5581_s28   ;;  %s6778_s24 = smov %s5573_s26 }
 0x1e5   : > { %p15_p10 = scmp.ge.s32.totalorder %s18_s28, 18   ;;  %s6779_s25 = smov %s5577_s27 }
 0x1e6   : > { %s6780_s26 = smov %s6783_s29  ;;  %s6781_s27 = smov %s6787_s30 }
 0x1e7   :  { %17 = sbr.rel (!%p15_p10) target bundleno = 3 (0x3), region = 126 }

// kernel: upconvblock3_forward.7
= control target key start
LH: loop header
LB: loop body
LE: loop exit
PB: predicated region body
PF: predicated region fallthrough
CT: control target
= control target key end

     0   :  { %s104_s0 = inlined_call_operand.vmem [shape: f32[32,128], index: 0, kind: input, shape index: {}]   ;;  %s105_s1 = inlined_call_operand.vmem [shape: f32[1,128], index: 1, kind: input, shape index: {}]   ;;  %s106_s2 = inlined_call_operand.vmem [shape: f32[1,128], index: 2, kind: input, shape index: {}]   ;;  %s107_s3 = inlined_call_operand.vmem [shape: f32[32,128], index: 3, kind: output, shape index: {}]  }
   0x1   :  { %v14_v0 = vld [vmem:[%s104_s0] sm:$0xff]  ;;  %v15_v4 = vld [vmem:[%s104_s0 + $0x8] sm:$0xff]  ;;  %v16_v5 = vld [vmem:[%s104_s0 + $0x10] sm:$0xff] }
   0x2   :  { %v52_v1 = vld [vmem:[%s105_s1] ss:$0 sm:$0xff]  ;;  %v17_v6 = vld [vmem:[%s104_s0 + $0x18] sm:$0xff] }
   0x3   :  { %v53_v2 = vld [vmem:[%s106_s2] ss:$0 sm:$0xff]  ;;  %v25_v3 = vmul.f32 %v52_v1, %v14_v0  ;;  %v26_v7 = vmul.f32 %v52_v1, %v15_v4  ;;  %v27_v8 = vmul.f32 %v52_v1, %v16_v5  ;;  %v28_v9 = vmul.f32 %v52_v1, %v17_v6 }
   0x5   :  { %v36_v10 = vadd.f32 %v53_v2, %v25_v3  ;;  %v37_v11 = vadd.f32 %v53_v2, %v26_v7  ;;  %v38_v12 = vadd.f32 %v53_v2, %v27_v8  ;;  %v39_v13 = vadd.f32 %v53_v2, %v28_v9 }
   0x7   :  { %v40_v14 = vmax.f32 %v36_v10, 0.0  ;;  %v41_v15 = vmax.f32 %v37_v11, 0.0  ;;  %v42_v16 = vmax.f32 %v38_v12, 0.0  ;;  %v43_v17 = vmax.f32 %v39_v13, 0.0 }
   0x9   :  { %44 = vst [vmem:[%s107_s3] sm:$0xff] %v40_v14  ;;  %45 = vst [vmem:[%s107_s3 + $0x8] sm:$0xff] %v41_v15 }
   0xa   :  { %46 = vst [vmem:[%s107_s3 + $0x10] sm:$0xff] %v42_v16  ;;  %47 = vst [vmem:[%s107_s3 + $0x18] sm:$0xff] %v43_v17 }

// kernel: upconvblock3_forward.6
= control target key start
LH: loop header
LB: loop body
LE: loop exit
PB: predicated region body
PF: predicated region fallthrough
CT: control target
= control target key end

     0   :  { %s6014_s30 = smov 0   ;;  %s6016_s10 = smov 0   ;;  %s7424_s0 = inlined_call_operand.vmem [shape: f32[2,10,10,10,4], index: 0, kind: input, shape index: {}, may-alias: {0,1,2}]   ;;  %s7425_s1 = inlined_call_operand.vmem [shape: f32[2,10,10,10,4], index: 1, kind: input, shape index: {}, may-alias: {0,1,2}]   ;;  %s7426_s2 = inlined_call_operand.vmem [shape: f32[2,10,10,10,4], index: 2, kind: input, shape index: {}, may-alias: {0,1,2}]   ;;  %s7427_s3 = inlined_call_operand.vmem [shape: f32[27,4,4], index: 3, kind: input, shape index: {}]   ;;  %s7428_s4 = inlined_call_operand.vmem [shape: f32[1,4], index: 4, kind: input, shape index: {}]   ;;  %s7429_s5 = inlined_call_operand.vmem [shape: f32[1,4], index: 5, kind: input, shape index: {}]   ;;  %s7430_s6 = inlined_call_operand.vmem [shape: f32[1,4], index: 6, kind: input, shape index: {}]   ;;  %s7431_s7 = inlined_call_operand.vmem [shape: f32[2,8,8,8,4], index: 7, kind: output, shape index: {0}]   ;;  %s7432_s8 = inlined_call_operand.vmem [shape: f32[2,8,1,4], index: 8, kind: output, shape index: {1}]   ;;  %s7433_s9 = inlined_call_operand.vmem [shape: f32[2,8,1,4], index: 9, kind: output, shape index: {2}]  }
   0x1   :  { %s6018_s11 = smov 0   ;;  %s6020_s12 = smov 0  }
   0x2   :  { %s6022_s13 = smov 0  }
   0x3 LB: > { %s29_s14 = sadd.s32 1, %s5953_s11  ;;  %s32_s15 = sadd.s32 1, %s5957_s12  ;;  %s5961_s13 = sphi %s6022_s13, %s20_s13   ;;  %s5957_s12 = sphi %s6020_s12, %s7542_s12   ;;  %s5953_s11 = sphi %s6018_s11, %s7541_s11   ;;  %s5949_s10 = sphi %s6016_s10, %s7540_s10   ;;  %s5945_s30 = sphi %s6014_s30, %s7539_s30  }
   0x4   : > { %p30_p0 = scmp.ge.s32.totalorder %s29_s14, 8  ;;  %p4766_p1 = scmp.ge.s32.totalorder %s5961_s13, 1 }
   0x5   : > { %p356_p2 = scmp.lt.s32.totalorder %s5961_s13, 17 }
   0x6   : > { %s7544_s14 = smov (%p30_p0, %s29_s14), 0  ;;  %s7546_s15 = smov (!%p30_p0, %s32_s15), %s5957_s12 }
   0x7   : > { %p357_p3 = pnand %p4766_p1, %p356_p2  ;;  %p34_p4 = scmp.ge.s32.totalorder %s7546_s15, 2 }
   0x9   : > { %s7548_s15 = smov (%p34_p4, %s7546_s15), 0  ;;  %360 = sbr.rel (%p357_p3) target bundleno = 507 (0x1fb), region = 48 }
  0x10   : > { %v4778_v0 = vld [vmem:[%s7427_s3 + $0x4] sm:$0xf]  ;;  %vm695_vm0 = vcmask 1043456   ;;  %vm678_vm1 = vcmask 31744   ;;  %p434_p5 = scmp.lt.s32.totalorder %s5949_s10, 1  ;;  %v488_v1 = vlaneseq  ;;  %v7434_v2 = vmov 0.0  }
  0x11   : > { %5289 = vmatprep.subr.msk.mxu1 %vm695_vm0, %v4778_v0  ;;  %v6051_v3 = vrot.slane %v7434_v2, 1  ;;  %v4905_v4 = vld [vmem:[%s7427_s3 + $0x34] sm:$0xf]  ;;  %p436_p6 = scmp.lt.s32.totalorder %s5945_s30, 9  ;;  %v6070_v6 = vld [vmem:[%s7427_s3] sm:$0xf] }
  0x12   : > { %5290 = vmatpush3.msk.msra.mxu1 %vm695_vm0, %v4778_v0  ;;  %5471 = vmatprep.subr.msk.mxu0 %vm695_vm0, %v4905_v4  ;;  %s7550_s10 = smov (!%p434_p5, %s5949_s10), 1  ;;  %v6061_v5 = vshrl.u32 %v488_v1, 7  ;;  %v6075_v7 = vld [vmem:[%s7427_s3 + $0x38] sm:$0xf]  ;;  %p595_p7 = scmp.ge.s32.totalorder %s5945_s30, 1  ;;  %vm651_vm4 = vcmask 1046528  }
  0x13   : > { %5291 = vmatprep.mubr.msk.f32.mxu1 %vm678_vm1, %v6051_v3  ;;  %s437_s20 = scalar_select %p436_p6, %s5945_s30, 9  ;;  %5472 = vmatpush3.msk.msra.mxu0 %vm695_vm0, %v4905_v4  ;;  %v6100_v9 = vld [vmem:[%s7429_s5] ss:$0 sm:$0xff]  ;;  %v6217_v0 = vld [vmem:[%s7427_s3 + $0x8] sm:$0xf]  ;;  %vm928_vm11 = vcmask 1045504  }
  0x14   : > { %s6078_s25 = smul.u32 200, %s7550_s10  ;;  %5303 = vmatprep.subr.msk.mxu1 %vm695_vm0, %v6070_v6  ;;  %5485 = vmatprep.subr.msk.mxu0 %vm695_vm0, %v6075_v7  ;;  %v6086_v8 = vadd.s32 8, %v6061_v5  ;;  %p596_p8 = scmp.le.s32.totalorder %s5945_s30, 8  ;;  %vm491_vm2 = vcmp.ge.s32.totalorder %v6061_v5, 1  ;;  %v6113_v10 = vld [vmem:[%s7430_s6] ss:$0 sm:$0xff] }
  0x15   : > { %s5877_s26 = smul.u32 20, %s437_s20  ;;  %s6090_s27 = sadd.s32 1, %s5945_s30  ;;  %vm4503_vm15 = vcmask 24576  }
  0x16   : > { %p6093_p9 = pnand %p596_p8, %p595_p7  ;;  %p446_p10 = scmp.lt.s32.totalorder %s6090_s27, 9  ;;  %vm494_vm3 = vcmp.le.s32.totalorder %v6086_v8, 8 }
  0x17   : > { %s440_s28 = sadd.s32 %s6078_s25, %s5877_s26  ;;  %p1904_p11 = scmp.ge.s32.totalorder %s6090_s27, 1 }
  0x18   : > { %s4767_s16 = sshll.u32 %s440_s28, 3  ;;  %p1905_p12 = scmp.le.s32.totalorder %s6090_s27, 8 }
  0x19   : > { %s6106_s21 = scalar_lea.vmem %s7424_s0, %s4767_s16  ;;  %p467_p4 = scmp.lt.s32.totalorder %s5945_s30, 7 }
  0x1a   : > { %v505_v11 = vld [vmem:[%s6106_s21 + $0x10] sm:$0xff]  ;;  %v506_v12 = vld [vmem:[%s6106_s21 + $0x18] sm:$0x3]  ;;  %s4777_s24 = scalar_select %p6093_p9, 0, 1  ;;  %v507_v13 = vld [vmem:[%s6106_s21 + $0x20] sm:$0xff] }
  0x1b   : > { %v531_v14 = vmul.f32 %v6100_v9, %v505_v11  ;;  %v532_v15 = vmul.f32 %v6100_v9, %v506_v12  ;;  %s447_s26 = scalar_select %p446_p10, %s6090_s27, 9  ;;  %v508_v16 = vld [vmem:[%s6106_s21 + $0x28] sm:$0x3]  ;;  %v533_v17 = vmul.f32 %v6100_v9, %v507_v13  ;;  %v509_v18 = vld [vmem:[%s6106_s21 + $0x30] sm:$0xff]  ;;  %v510_v19 = vld [vmem:[%s6106_s21 + $0x38] sm:$0x3] }
  0x1c   : > { %v600_v20 = vstv %s4777_s24  ;;  %v534_v21 = vmul.f32 %v6100_v9, %v508_v16  ;;  %v535_v22 = vmul.f32 %v6100_v9, %v509_v18  ;;  %v536_v23 = vmul.f32 %v6100_v9, %v510_v19  ;;  %v511_v24 = vld [vmem:[%s6106_s21 + $0x40] sm:$0xff]  ;;  %v512_v25 = vld [vmem:[%s6106_s21 + $0x48] sm:$0x3]  ;;  %p6158_p13 = pnand %p1905_p12, %p1904_p11  ;;  %v513_v39 = vld [vmem:[%s6106_s21 + $0x50] sm:$0xff] }
  0x1d   : > { %v557_v26 = vadd.f32 %v6113_v10, %v531_v14  ;;  %v558_v27 = vadd.f32 %v6113_v10, %v532_v15  ;;  %vm601_vm5 = vcmp.eq.s32.totalorder %v600_v20, 1  ;;  %s5879_s28 = smul.u32 20, %s447_s26  ;;  %v559_v28 = vadd.f32 %v6113_v10, %v533_v17  ;;  %v514_v43 = vld [vmem:[%s6106_s21 + $0x58] sm:$0x3] }
  0x1e   : > { %vm6139_vm6 = vmand %vm491_vm2, %vm601_vm5  ;;  %v560_v30 = vadd.f32 %v6113_v10, %v534_v21  ;;  %v561_v31 = vadd.f32 %v6113_v10, %v535_v22  ;;  %v562_v32 = vadd.f32 %v6113_v10, %v536_v23  ;;  %v537_v33 = vmul.f32 %v6100_v9, %v511_v24  ;;  %s4865_s20 = scalar_select %p6158_p13, 0, 1 }
  0x1f   : > { %v577_v34 = vmax.f32 %v557_v26, 0.0  ;;  %v578_v35 = vmax.f32 %v558_v27, 0.0  ;;  %vm6149_vm7 = vmand %vm494_vm3, %vm601_vm5  ;;  %s450_s29 = sadd.s32 %s5879_s28, %s6078_s25  ;;  %v579_v37 = vmax.f32 %v559_v28, 0.0  ;;  %v538_v38 = vmul.f32 %v6100_v9, %v512_v25  ;;  %s6352_s28 = sadd.s32 2, %s5945_s30 }
  0x20   : > { %s4768_s17 = sshll.u32 %s450_s29, 3  ;;  %v580_v40 = vmax.f32 %v560_v30, 0.0  ;;  %v581_v41 = vmax.f32 %v561_v31, 0.0  ;;  %v582_v42 = vmax.f32 %v562_v32, 0.0  ;;  %v6183_v47 = vadd.f32 %v6113_v10, %v537_v33  ;;  %p457_p0 = scmp.lt.s32.totalorder %s6352_s28, 9 }
  0x21   : > { %v6167_v44 = vsel %vm6139_vm6, %v577_v34, 0.0  ;;  %v6171_v45 = vsel %vm6149_vm7, %v578_v35, 0.0  ;;  %s6176_s19 = scalar_lea.vmem %s7425_s1, %s4768_s17  ;;  %v6180_v46 = vsel %vm6139_vm6, %v579_v37, 0.0  ;;  %v6190_v52 = vadd.f32 %v6113_v10, %v538_v38  ;;  %p3226_p1 = scmp.ge.s32.totalorder %s6352_s28, 1 }
  0x22   : > { %v655_v48 = vrot.slane %v6167_v44, 1  ;;  %v656_v49 = vrot.slane %v6171_v45, 1  ;;  %v1825_v50 = vld [vmem:[%s6176_s19 + $0x10] sm:$0xff]  ;;  %v1826_v51 = vld [vmem:[%s6176_s19 + $0x18] sm:$0x3]  ;;  %v6193_v53 = vmul.f32 %v6100_v9, %v513_v39  ;;  %v1827_v56 = vld [vmem:[%s6176_s19 + $0x20] sm:$0xff]  ;;  %v6206_v59 = vmul.f32 %v6100_v9, %v514_v43 }
  0x23   : > { %v1845_v54 = vmul.f32 %v6100_v9, %v1825_v50  ;;  %v1846_v55 = vmul.f32 %v6100_v9, %v1826_v51  ;;  %v1828_v57 = vld [vmem:[%s6176_s19 + $0x28] sm:$0x3]  ;;  %v6203_v58 = vsel %vm6149_vm7, %v580_v40, 0.0  ;;  %v1847_v61 = vmul.f32 %v6100_v9, %v1827_v56  ;;  %v1829_v16 = vld [vmem:[%s6176_s19 + $0x30] sm:$0xff]  ;;  %v1830_v17 = vld [vmem:[%s6176_s19 + $0x38] sm:$0x3] }
  0x24   : > { %v6209_v60 = vsel %vm651_vm4, %v655_v48, %v656_v49  ;;  %v1848_v62 = vmul.f32 %v6100_v9, %v1828_v57  ;;  %v658_v63 = vrot.slane %v6180_v46, 1  ;;  %v1909_v11 = vstv %s4865_s20  ;;  %v1831_v32 = vld [vmem:[%s6176_s19 + $0x40] sm:$0xff]  ;;  %v1832_v38 = vld [vmem:[%s6176_s19 + $0x48] sm:$0x3]  ;;  %s6425_s17 = scalar_select %p457_p0, %s6352_s28, 9 }
  0x25   : > { %5292 = vmatmul.mubr.msk.f32.vlgmr.msra.gmra.mrb[0].mxu1 %vm678_vm1, %v6209_v60  ;;  %v1865_v1 = vadd.f32 %v6113_v10, %v1845_v54  ;;  %v1866_v4 = vadd.f32 %v6113_v10, %v1846_v55  ;;  %v659_v12 = vrot.slane %v6203_v58, 1  ;;  %vm1910_vm8 = vcmp.eq.s32.totalorder %v1909_v11, 1  ;;  %p3227_p2 = scmp.le.s32.totalorder %s6352_s28, 8  ;;  %s7552_s30 = smov (!%p467_p4, %s5945_s30), 7 }
  0x26   : > { %5304 = vmatpush3.msk.msra.mxu1 %vm695_vm0, %v6070_v6  ;;  %v1867_v13 = vadd.f32 %v6113_v10, %v1847_v61  ;;  %v1868_v14 = vadd.f32 %v6113_v10, %v1848_v62  ;;  %v6230_v15 = vsel %vm6139_vm6, %v581_v41, 0.0  ;;  %vm6236_vm9 = vmand %vm491_vm2, %vm1910_vm8  ;;  %v6245_v21 = vsel %vm6149_vm7, %v582_v42, 0.0  ;;  %s5880_s27 = smul.u32 20, %s6425_s17 }
  0x27   : > { %v1885_v18 = vmax.f32 %v1865_v1, 0.0  ;;  %v1886_v19 = vmax.f32 %v1866_v4, 0.0  ;;  %v6241_v6 = vsel %vm651_vm4, %v658_v63, %v659_v12  ;;  %5317 = vmatprep.subr.msk.mxu1 %vm695_vm0, %v6217_v0  ;;  %vm6251_vm10 = vmand %vm494_vm3, %vm1910_vm8  ;;  %v661_v25 = vrot.slane %v6230_v15, 1  ;;  %v6305_v1 = vld [vmem:[%s7427_s3 + $0x3c] sm:$0xf]  ;;  %p6551_p3 = pnand %p3227_p2, %p3226_p1 }
  0x28   : > { %v1887_v23 = vmax.f32 %v1867_v13, 0.0  ;;  %v1888_v24 = vmax.f32 %v1868_v14, 0.0  ;;  %5294 = vmatprep.mubr.msk.f32.mxu1 %vm678_vm1, %v6241_v6  ;;  %v662_v26 = vrot.slane %v6245_v21, 1  ;;  %v1849_v30 = vmul.f32 %v6100_v9, %v1829_v16  ;;  %s6508_s20 = sadd.s32 %s5880_s27, %s6078_s25 }
  0x29   : > { %v6261_v27 = vsel %vm6236_vm9, %v1885_v18, 0.0  ;;  %v6265_v28 = vsel %vm6251_vm10, %v1886_v19, 0.0  ;;  %v1850_v31 = vmul.f32 %v6100_v9, %v1830_v17  ;;  %v1851_v54 = vmul.f32 %v6100_v9, %v1831_v32  ;;  %s4769_s25 = sshll.u32 %s6508_s20, 3  ;;  %s4773_s20 = sshll.u32 %s7550_s10, 3 }
  0x2a   : > { %7483 = vst [vmem:[#allocation2_spill] sm:$0xff] %v6261_v27  ;;  %v2096_v33 = vrot.slane %v6261_v27, 1  ;;  %v2097_v34 = vrot.slane %v6265_v28, 1  ;;  %v2255_v35 = vrot.slane %v6265_v28, 2  ;;  %v6275_v37 = vsel %vm6236_vm9, %v1887_v23, 0.0  ;;  %s6574_s26 = scalar_lea.vmem %s7426_s2, %s4769_s25  ;;  %s479_s25 = sadd.s32 %s4773_s20, %s7552_s30 }
  0x2b   : > { %7484 = vst [vmem:[#allocation3_spill] sm:$0xff] %v6275_v37  ;;  %v1928_v39 = vsel %vm6251_vm10, %v1888_v24, 0.0  ;;  %v2099_v40 = vrot.slane %v6275_v37, 1  ;;  %v6282_v41 = vsel %vm651_vm4, %v661_v25, %v662_v26  ;;  %v1869_v42 = vadd.f32 %v6113_v10, %v1849_v30  ;;  %v515_v26 = vld [vmem:[%s6106_s21 + $0x60] sm:$0xff]  ;;  %s4954_s28 = scalar_select %p6551_p3, 0, 1 }
  0x2c   : > { %v6286_v43 = vsel %vm651_vm4, %v2096_v33, %v2097_v34  ;;  %v2100_v48 = vrot.slane %v1928_v39, 1  ;;  %v2258_v49 = vrot.slane %v1928_v39, 2  ;;  %5295 = vmatmul.mubr.msk.f32.gmra.mrb[2].mxu1 %vm678_vm1, %v6282_v41  ;;  %v1870_v50 = vadd.f32 %v6113_v10, %v1850_v31  ;;  %v517_v33 = vld [vmem:[%s6106_s21 + $0x70] sm:$0xff]  ;;  %s480_s24 = scalar_lea.vmem %s7432_s8, %s479_s25 }
  0x2d   : > { %7485 = vst [vmem:[#allocation4_spill] sm:$0xff] %v6286_v43  ;;  %5473 = vmatprep.mubr.msk.f32.mxu0 %vm678_vm1, %v6286_v43  ;;  %v1889_v51 = vmax.f32 %v1869_v42, 0.0  ;;  %v1852_v55 = vmul.f32 %v6100_v9, %v1832_v38  ;;  %v583_v56 = vmax.f32 %v6183_v47, 0.0  ;;  %v584_v62 = vmax.f32 %v6190_v52, 0.0  ;;  %v518_v42 = vld [vmem:[%s6106_s21 + $0x78] sm:$0x3] }
  0x2e   : > { %v6297_v57 = vsel %vm651_vm4, %v2099_v40, %v2100_v48  ;;  %v1890_v61 = vmax.f32 %v1870_v50, 0.0  ;;  %v565_v63 = vadd.f32 %v6113_v10, %v6193_v53  ;;  %v1871_v4 = vadd.f32 %v6113_v10, %v1851_v54 }
  0x2f   : > { %7486 = vst [vmem:[#allocation5_spill] sm:$0xff] %v6297_v57  ;;  %5474 = vmatmul.mubr.msk.f32.vlgmr.msra.gmra.mrb[0].mxu0 %vm678_vm1, %v6297_v57  ;;  %v6311_v47 = vsel %vm6236_vm9, %v1889_v51, 0.0  ;;  %v1872_v11 = vadd.f32 %v6113_v10, %v1852_v55  ;;  %v6317_v52 = vsel %vm6139_vm6, %v583_v56, 0.0  ;;  %v6326_v13 = vsel %vm6149_vm7, %v584_v62, 0.0 }
  0x30   : > { %7487 = vst [vmem:[#allocation6_spill] sm:$0xff] %v6311_v47  ;;  %5486 = vmatpush3.msk.msra.mxu0 %vm695_vm0, %v6075_v7  ;;  %v1930_v53 = vsel %vm6251_vm10, %v1890_v61, 0.0  ;;  %v2102_v12 = vrot.slane %v6311_v47, 1  ;;  %v664_v14 = vrot.slane %v6317_v52, 1  ;;  %v1891_v17 = vmax.f32 %v1871_v4, 0.0 }
  0x31   : > { %v2103_v16 = vrot.slane %v1930_v53, 1  ;;  %v1892_v18 = vmax.f32 %v1872_v11, 0.0  ;;  %v665_v19 = vrot.slane %v6326_v13, 1  ;;  %5499 = vmatprep.subr.msk.mxu0 %vm695_vm0, %v6305_v1  ;;  %v566_v7 = vadd.f32 %v6113_v10, %v6206_v59  ;;  %v516_v59 = vld [vmem:[%s6106_s21 + $0x68] sm:$0x3]  ;;  %v1833_v11 = vld [vmem:[%s6176_s19 + $0x50] sm:$0xff] }
  0x32   : > { %v585_v23 = vmax.f32 %v565_v63, 0.0  ;;  %v2254_v24 = vrot.slane %v6261_v27, 2  ;;  %v2257_v25 = vrot.slane %v6275_v37, 2  ;;  %v6342_v30 = vsel %vm6236_vm9, %v1891_v17, 0.0  ;;  %v519_v27 = vld [vmem:[%s6106_s21 + $0x80] sm:$0xff] }
  0x33   : > { %v6338_v28 = vsel %vm651_vm4, %v2102_v12, %v2103_v16  ;;  %7488 = vst [vmem:[#allocation7_spill] sm:$0xff] %v6342_v30  ;;  %v1932_v31 = vsel %vm6251_vm10, %v1892_v18, 0.0  ;;  %v6347_v32 = vsel %vm651_vm4, %v664_v14, %v665_v19  ;;  %v2105_v34 = vrot.slane %v6342_v30, 1  ;;  %v1834_v18 = vld [vmem:[%s6176_s19 + $0x58] sm:$0x3] }
  0x34   : > { %7489 = vst [vmem:[#allocation8_spill] sm:$0xff] %v6347_v32  ;;  %5476 = vmatprep.mubr.msk.f32.mxu0 %vm678_vm1, %v6338_v28  ;;  %v2106_v38 = vrot.slane %v1932_v31, 1  ;;  %5297 = vmatprep.mubr.msk.f32.mxu1 %vm678_vm1, %v6347_v32  ;;  %v586_v39 = vmax.f32 %v566_v7, 0.0  ;;  %v6361_v40 = vsel %vm6139_vm6, %v585_v23, 0.0  ;;  %v6366_v50 = vsel %vm928_vm11, %v2254_v24, %v2255_v35 }
  0x35   : > { %v667_v48 = vrot.slane %v6361_v40, 1  ;;  %7490 = vst [vmem:[#allocation9_spill] sm:$0xff] %v6366_v50  ;;  %v6369_v51 = vsel %vm928_vm11, %v2257_v25, %v2258_v49  ;;  %v541_v54 = vmul.f32 %v6100_v9, %v515_v26  ;;  %v542_v61 = vmul.f32 %v6100_v9, %v516_v59 }
  0x36   : > { %v6373_v55 = vsel %vm651_vm4, %v2105_v34, %v2106_v38  ;;  %v6377_v56 = vsel %vm6149_vm7, %v586_v39, 0.0  ;;  %v543_v62 = vmul.f32 %v6100_v9, %v517_v33  ;;  %v544_v63 = vmul.f32 %v6100_v9, %v518_v42  ;;  %v6408_v33 = vld [vmem:[%s7427_s3 + $0x40] sm:$0xf] }
  0x37   : > { %5477 = vmatmul.mubr.msk.f32.gmra.mrb[2].mxu0 %vm678_vm1, %v6373_v55  ;;  %v668_v35 = vrot.slane %v6377_v56, 1  ;;  %v567_v49 = vadd.f32 %v6113_v10, %v541_v54  ;;  %v2260_v4 = vrot.slane %v6311_v47, 2  ;;  %v568_v12 = vadd.f32 %v6113_v10, %v542_v61  ;;  %v1835_v42 = vld [vmem:[%s6176_s19 + $0x60] sm:$0xff] }
  0x38   : > { %5487 = vmatprep.mubr.msk.f32.mxu0 %vm678_vm1, %v6366_v50  ;;  %v569_v14 = vadd.f32 %v6113_v10, %v543_v62  ;;  %v2261_v16 = vrot.slane %v1930_v53, 2  ;;  %v2263_v17 = vrot.slane %v6342_v30, 2  ;;  %v570_v23 = vadd.f32 %v6113_v10, %v544_v63  ;;  %v1838_v63 = vld [vmem:[%s6176_s19 + $0x78] sm:$0x3] }
  0x39   : > { %v6396_v19 = vsel %vm651_vm4, %v667_v48, %v668_v35  ;;  %v587_v7 = vmax.f32 %v567_v49, 0.0  ;;  %v2264_v24 = vrot.slane %v1932_v31, 2  ;;  %v588_v25 = vmax.f32 %v568_v12, 0.0  ;;  %v1836_v48 = vld [vmem:[%s6176_s19 + $0x68] sm:$0x3]  ;;  %v1837_v49 = vld [vmem:[%s6176_s19 + $0x70] sm:$0xff] }
  0x3a   : > { %7491 = vst [vmem:[#allocation10_spill] sm:$0xff] %v6396_v19  ;;  %5298 = vmatmul.mubr.msk.f32.gmra.mrb[4].mxu1 %vm678_vm1, %v6396_v19  ;;  %v589_v26 = vmax.f32 %v569_v14, 0.0  ;;  %v6402_v53 = vsel %vm928_vm11, %v2260_v4, %v2261_v16  ;;  %v1853_v59 = vmul.f32 %v6100_v9, %v1833_v11  ;;  %v590_v34 = vmax.f32 %v570_v23, 0.0  ;;  %v3149_v19 = vld [vmem:[%s6574_s26 + $0x20] sm:$0xff] }
  0x3b   : > { %5488 = vmatmul.mubr.msk.f32.vlgmr.msra.gmra.mrb[0].mxu0 %vm678_vm1, %v6369_v51  ;;  %v6414_v31 = vsel %vm6139_vm6, %v587_v7, 0.0  ;;  %v6417_v38 = vsel %vm928_vm11, %v2263_v17, %v2264_v24  ;;  %v1854_v39 = vmul.f32 %v6100_v9, %v1834_v18  ;;  %v6431_v54 = vsel %vm6149_vm7, %v588_v25, 0.0 }
  0x3c   : > { %7492 = vst [vmem:[#allocation11_spill] sm:$0xff] %v6417_v38  ;;  %5500 = vmatpush3.msk.msra.mxu0 %vm695_vm0, %v6305_v1  ;;  %v670_v61 = vrot.slane %v6414_v31, 1  ;;  %v6436_v62 = vsel %vm6139_vm6, %v589_v26, 0.0  ;;  %5490 = vmatprep.mubr.msk.f32.mxu0 %vm678_vm1, %v6402_v53  ;;  %v1873_v35 = vadd.f32 %v6113_v10, %v1853_v59  ;;  %v671_v1 = vrot.slane %v6431_v54, 1  ;;  %v1839_v26 = vld [vmem:[%s6176_s19 + $0x80] sm:$0xff] }
  0x3d   : > { %v6446_v4 = vsel %vm6149_vm7, %v590_v34, 0.0  ;;  %v673_v11 = vrot.slane %v6436_v62, 1  ;;  %v1874_v12 = vadd.f32 %v6113_v10, %v1854_v39  ;;  %5513 = vmatprep.subr.msk.mxu0 %vm695_vm0, %v6408_v33  ;;  %v1855_v17 = vmul.f32 %v6100_v9, %v1835_v42 }
  0x3e   : > { %v674_v14 = vrot.slane %v6446_v4, 1  ;;  %v1893_v16 = vmax.f32 %v1873_v35, 0.0  ;;  %v1856_v18 = vmul.f32 %v6100_v9, %v1836_v48  ;;  %v6456_v7 = vsel %vm651_vm4, %v670_v61, %v671_v1  ;;  %v1840_v48 = vld [vmem:[%s6176_s19 + $0x88] sm:$0x3] }
  0x3f   : > { %7493 = vst [vmem:[#allocation12_spill] sm:$0xff] %v6456_v7  ;;  %5491 = vmatmul.mubr.msk.f32.gmra.mrb[2].mxu0 %vm678_vm1, %v6417_v38  ;;  %v1894_v23 = vmax.f32 %v1874_v12, 0.0  ;;  %v1857_v24 = vmul.f32 %v6100_v9, %v1837_v49  ;;  %v1858_v25 = vmul.f32 %v6100_v9, %v1838_v63  ;;  %5300 = vmatprep.mubr.msk.f32.mxu1 %vm678_vm1, %v6456_v7  ;;  %v932_v20 = vrot.slane %v6167_v44, 2 }
  0x40   : > { %v6466_v59 = vsel %vm651_vm4, %v673_v11, %v674_v14  ;;  %v6470_v34 = vsel %vm6236_vm9, %v1893_v16, 0.0  ;;  %v1875_v39 = vadd.f32 %v6113_v10, %v1855_v17  ;;  %v1876_v42 = vadd.f32 %v6113_v10, %v1856_v18 }
  0x41   : > { %7494 = vst [vmem:[#allocation13_spill] sm:$0xff] %v6466_v59  ;;  %7495 = vst [vmem:[#allocation14_spill] sm:$0xff] %v6470_v34  ;;  %5301 = vmatmul.mubr.msk.f32.gmra.mrb[6].mxu1 %vm678_vm1, %v6466_v59  ;;  %v6480_v61 = vsel %vm6251_vm10, %v1894_v23, 0.0  ;;  %v2266_v35 = vrot.slane %v6470_v34, 2  ;;  %v1877_v49 = vadd.f32 %v6113_v10, %v1857_v24  ;;  %v1878_v63 = vadd.f32 %v6113_v10, %v1858_v25  ;;  %v520_v59 = vld [vmem:[%s6106_s21 + $0x88] sm:$0x3] }
  0x42   : > { %5305 = vmatprep.mubr.f32.mxu1 %v7434_v2  ;;  %v2267_v1 = vrot.slane %v6480_v61, 2  ;;  %v1895_v11 = vmax.f32 %v1875_v39, 0.0  ;;  %v1896_v12 = vmax.f32 %v1876_v42, 0.0  ;;  %v1859_v14 = vmul.f32 %v6100_v9, %v1839_v26  ;;  %v6505_v26 = vld [vmem:[%s7427_s3 + $0xc] sm:$0xf] }
  0x43   : > { %v1897_v16 = vmax.f32 %v1877_v49, 0.0  ;;  %v1898_v17 = vmax.f32 %v1878_v63, 0.0  ;;  %v1860_v18 = vmul.f32 %v6100_v9, %v1840_v48  ;;  %v947_v2 = vrot.slane %v6414_v31, 2 }
  0x44   : > { %v6491_v23 = vsel %vm928_vm11, %v2266_v35, %v2267_v1  ;;  %v6495_v24 = vsel %vm6236_vm9, %v1895_v11, 0.0  ;;  %v6499_v25 = vsel %vm6251_vm10, %v1896_v12, 0.0  ;;  %v1879_v39 = vadd.f32 %v6113_v10, %v1859_v14 }
  0x45   : > { %7496 = vst [vmem:[#allocation15_spill] sm:$0xff] %v6491_v23  ;;  %5306 = vmatmul.mubr.msk.f32.vlgmr.msra.gmra.mrb[0].mxu1 %vm678_vm1, %v6167_v44  ;;  %5493 = vmatprep.mubr.msk.f32.mxu0 %vm678_vm1, %v6491_v23  ;;  %v2269_v42 = vrot.slane %v6495_v24, 2  ;;  %v2270_v48 = vrot.slane %v6499_v25, 2  ;;  %v6519_v35 = vsel %vm6236_vm9, %v1897_v16, 0.0  ;;  %v6523_v49 = vsel %vm6251_vm10, %v1898_v17, 0.0 }
  0x46   : > { %7497 = vst [vmem:[#allocation16_spill] sm:$0xff] %v6519_v35  ;;  %5318 = vmatpush3.msk.msra.mxu1 %vm695_vm0, %v6217_v0  ;;  %5308 = vmatprep.mubr.msk.f32.mxu1 %vm678_vm1, %v6180_v46  ;;  %v2272_v63 = vrot.slane %v6519_v35, 2  ;;  %v2273_v1 = vrot.slane %v6523_v49, 2  ;;  %v1880_v11 = vadd.f32 %v6113_v10, %v1860_v18  ;;  %v1899_v12 = vmax.f32 %v1879_v39, 0.0 }
  0x47   : > { %v6533_v14 = vsel %vm928_vm11, %v2269_v42, %v2270_v48  ;;  %5331 = vmatprep.subr.msk.mxu1 %vm695_vm0, %v6505_v26  ;;  %v933_v18 = vrot.slane %v6171_v45, 2  ;;  %v935_v45 = vrot.slane %v6180_v46, 2  ;;  %v936_v48 = vrot.slane %v6203_v58, 2 }
  0x48   : > { %7498 = vst [vmem:[#allocation17_spill] sm:$0xff] %v6533_v14  ;;  %5494 = vmatmul.mubr.msk.f32.gmra.mrb[4].mxu0 %vm678_vm1, %v6533_v14  ;;  %v6541_v0 = vsel %vm928_vm11, %v2272_v63, %v2273_v1  ;;  %v1900_v16 = vmax.f32 %v1880_v11, 0.0  ;;  %v6545_v17 = vsel %vm6236_vm9, %v1899_v12, 0.0  ;;  %v938_v63 = vrot.slane %v6230_v15, 2 }
  0x49   : > { %7499 = vst [vmem:[#allocation18_spill] sm:$0xff] %v6541_v0  ;;  %7500 = vst [vmem:[#allocation19_spill] sm:$0xff] %v6545_v17  ;;  %5309 = vmatmul.mubr.msk.f32.gmra.mrb[2].mxu1 %vm678_vm1, %v6230_v15  ;;  %5496 = vmatprep.mubr.msk.f32.mxu0 %vm678_vm1, %v6541_v0  ;;  %v2654_v39 = vrot.slane %v6545_v17, 2  ;;  %v939_v1 = vrot.slane %v6245_v21, 2  ;;  %v941_v11 = vrot.slane %v6317_v52, 2  ;;  %v942_v12 = vrot.slane %v6326_v13, 2 }
  0x4a   : > { %v6564_v42 = vsel %vm6251_vm10, %v1900_v16, 0.0  ;;  %5311 = vmatprep.mubr.msk.f32.mxu1 %vm678_vm1, %v6317_v52  ;;  %v944_v58 = vrot.slane %v6361_v40, 2  ;;  %v945_v16 = vrot.slane %v6377_v56, 2  ;;  %v948_v21 = vrot.slane %v6431_v54, 2  ;;  %v3147_v56 = vld [vmem:[%s6574_s26 + $0x10] sm:$0xff] }
  0x4b   : > { %v2655_v22 = vrot.slane %v6564_v42, 2  ;;  %v950_v43 = vrot.slane %v6436_v62, 2  ;;  %v951_v13 = vrot.slane %v6446_v4, 2  ;;  %v6606_v54 = vsel %vm928_vm11, %v932_v20, %v933_v18  ;;  %v3151_v20 = vld [vmem:[%s6574_s26 + $0x30] sm:$0xff] }
  0x4c   : > { %v6609_v4 = vsel %vm928_vm11, %v935_v45, %v936_v48  ;;  %v6612_v7 = vsel %vm928_vm11, %v938_v63, %v939_v1  ;;  %v6619_v0 = vsel %vm928_vm11, %v944_v58, %v945_v16  ;;  %v545_v32 = vmul.f32 %v6100_v9, %v519_v27  ;;  %v3153_v45 = vld [vmem:[%s6574_s26 + $0x40] sm:$0xff] }
  0x4d   : > { %v6586_v50 = vsel %vm928_vm11, %v2654_v39, %v2655_v22  ;;  %5312 = vmatmul.mubr.msk.f32.gmra.mrb[4].mxu1 %vm678_vm1, %v6361_v40  ;;  %v7503_v39 = vmov 0.0   ;;  %7504 = vst [vmem:[#allocation21_spill] sm:$0xff] %v6609_v4  ;;  %7505 = vst [vmem:[#allocation22_spill] sm:$0xff] %v6612_v7  ;;  %v6623_v18 = vstv %s4954_s28  ;;  %v6632_v48 = vld [vmem:[%s7427_s3 + $0x44] sm:$0xf]  ;;  %v6635_v63 = vsel %vm928_vm11, %v947_v2, %v948_v21  ;;  %s4771_s28 = sshll.u32 %s7550_s10, 6 }
  0x4e   : > { %7502 = vst [vmem:[#allocation20_spill] sm:$0xff] %v6586_v50  ;;  %5497 = vmatmul.mubr.msk.f32.gmra.mrb[6].mxu0 %vm678_vm1, %v6586_v50  ;;  %5314 = vmatprep.mubr.msk.f32.mxu1 %vm678_vm1, %v6414_v31  ;;  %v6600_v22 = vrot.slane %v7503_v39, 2  ;;  %v6615_v50 = vsel %vm928_vm11, %v941_v11, %v942_v12  ;;  %v6638_v27 = vsel %vm928_vm11, %v950_v43, %v951_v13  ;;  %vm3232_vm12 = vcmp.eq.s32.totalorder %v6623_v18, 1  ;;  %v3155_v11 = vld [vmem:[%s6574_s26 + $0x50] sm:$0xff]  ;;  %v3157_v16 = vld [vmem:[%s6574_s26 + $0x60] sm:$0xff] }
  0x4f   : > { %5501 = vmatprep.mubr.msk.f32.mxu0 %vm678_vm1, %v6275_v37  ;;  %7506 = vst [vmem:[#allocation23_spill] sm:$0xff] %v6615_v50  ;;  %v3167_v37 = vmul.f32 %v6100_v9, %v3147_v56  ;;  %v546_v1 = vmul.f32 %v6100_v9, %v520_v59  ;;  %v571_v58 = vadd.f32 %v6113_v10, %v545_v32  ;;  %v2109_v59 = vrot.slane %v6480_v61, 1  ;;  %vm6661_vm13 = vmand %vm491_vm2, %vm3232_vm12  ;;  %v6677_v56 = vld [vmem:[%s7427_s3 + $0x10] sm:$0xf]  ;;  %v4836_v21 = vld [vmem:[%s7427_s3 + $0x18] sm:$0xf] }
  0x50   : > { %v3169_v43 = vmul.f32 %v6100_v9, %v3149_v19  ;;  %v3171_v32 = vmul.f32 %v6100_v9, %v3151_v20  ;;  %v3173_v19 = vmul.f32 %v6100_v9, %v3153_v45  ;;  %v3175_v5 = vmul.f32 %v6100_v9, %v3155_v11  ;;  %vm6761_vm14 = vmand %vm494_vm3, %vm3232_vm12 }
  0x51   : > { %5315 = vmatmul.mubr.msk.f32.gmra.mrb[6].mxu1 %vm678_vm1, %v6436_v62  ;;  %v3187_v2 = vadd.f32 %v6113_v10, %v3167_v37  ;;  %v572_v37 = vadd.f32 %v6113_v10, %v546_v1  ;;  %v2115_v8 = vrot.slane %v6523_v49, 1 }
  0x52   : > { %5502 = vmatmul.mubr.msk.f32.vlgmr.msra.gmra.mrb[0].mxu0 %vm678_vm1, %v6311_v47  ;;  %5319 = vmatprep.mubr.msk.f32.mxu1 %vm678_vm1, %v6600_v22  ;;  %v3189_v13 = vadd.f32 %v6113_v10, %v3169_v43  ;;  %v3191_v45 = vadd.f32 %v6113_v10, %v3171_v32  ;;  %v3193_v1 = vadd.f32 %v6113_v10, %v3173_v19  ;;  %v3159_v32 = vld [vmem:[%s6574_s26 + $0x70] sm:$0xff] }
  0x53   : > { %5514 = vmatpush3.msk.msra.mxu0 %vm695_vm0, %v6408_v33  ;;  %5504 = vmatprep.mubr.msk.f32.mxu0 %vm678_vm1, %v6342_v30  ;;  %v591_v33 = vmax.f32 %v571_v58, 0.0  ;;  %v3207_v61 = vmax.f32 %v3187_v2, 0.0  ;;  %v592_v20 = vmax.f32 %v572_v37, 0.0  ;;  %v3177_v58 = vmul.f32 %v6100_v9, %v3157_v16 }
  0x54   : > { %5527 = vmatprep.subr.msk.mxu0 %vm695_vm0, %v6632_v48  ;;  %v3209_v43 = vmax.f32 %v3189_v13, 0.0  ;;  %v3195_v37 = vadd.f32 %v6113_v10, %v3175_v5  ;;  %v3211_v5 = vmax.f32 %v3191_v45, 0.0  ;;  %v3179_v47 = vmul.f32 %v6100_v9, %v3159_v32 }
  0x55   : > { %5320 = vmatmul.mubr.msk.f32.vlgmr.msra.gmra.mrb[0].mxu1 %vm678_vm1, %v6606_v54  ;;  %v6688_v11 = vsel %vm6139_vm6, %v591_v33, 0.0  ;;  %v6692_v2 = vsel %vm6661_vm13, %v3207_v61, 0.0  ;;  %v3148_v33 = vld [vmem:[%s6574_s26 + $0x18] sm:$0x3]  ;;  %v631_v61 = vsel %vm6149_vm7, %v592_v20, 0.0  ;;  %v3197_v30 = vadd.f32 %v6113_v10, %v3177_v58 }
  0x56   : > { %5505 = vmatmul.mubr.msk.f32.gmra.mrb[2].mxu0 %vm678_vm1, %v6470_v34  ;;  %5332 = vmatpush3.msk.msra.mxu1 %vm695_vm0, %v6505_v26  ;;  %v1209_v16 = vrot.slane %v6688_v11, 1  ;;  %v1332_v19 = vrot.slane %v6688_v11, 2  ;;  %v6711_v13 = vsel %vm6661_vm13, %v3209_v43, 0.0  ;;  %v3213_v26 = vmax.f32 %v3193_v1, 0.0  ;;  %v3152_v58 = vld [vmem:[%s6574_s26 + $0x38] sm:$0x3] }
  0x57   : > { %5507 = vmatprep.mubr.msk.f32.mxu0 %vm678_vm1, %v6495_v24  ;;  %5322 = vmatprep.mubr.msk.f32.mxu1 %vm678_vm1, %v6609_v4  ;;  %v1210_v29 = vrot.slane %v631_v61, 1  ;;  %v3215_v12 = vmax.f32 %v3195_v37, 0.0  ;;  %v3150_v4 = vld [vmem:[%s6574_s26 + $0x28] sm:$0x3]  ;;  %v6724_v36 = vsel %vm6661_vm13, %v3211_v5, 0.0  ;;  %v3168_v45 = vmul.f32 %v6100_v9, %v3148_v33 }
  0x58   : > { %5345 = vmatprep.subr.msk.mxu1 %vm695_vm0, %v6677_v56  ;;  %v6728_v20 = vsel %vm6661_vm13, %v3213_v26, 0.0  ;;  %v1333_v1 = vrot.slane %v631_v61, 2  ;;  %v3217_v32 = vmax.f32 %v3197_v30, 0.0  ;;  %v3199_v5 = vadd.f32 %v6113_v10, %v3179_v47  ;;  %v3154_v26 = vld [vmem:[%s6574_s26 + $0x48] sm:$0x3] }
  0x59   : > { %5323 = vmatmul.mubr.msk.f32.gmra.mrb[2].mxu1 %vm678_vm1, %v6612_v7  ;;  %v6735_v43 = vsel %vm651_vm4, %v1209_v16, %v1210_v29  ;;  %v6739_v37 = vsel %vm6661_vm13, %v3215_v12, 0.0  ;;  %v3188_v33 = vadd.f32 %v6113_v10, %v3168_v45  ;;  %v3170_v7 = vmul.f32 %v6100_v9, %v3150_v4  ;;  %v3156_v29 = vld [vmem:[%s6574_s26 + $0x58] sm:$0x3]  ;;  %v3158_v45 = vld [vmem:[%s6574_s26 + $0x68] sm:$0x3] }
  0x5a   : > { %5508 = vmatmul.mubr.msk.f32.gmra.mrb[4].mxu0 %vm678_vm1, %v6519_v35  ;;  %5325 = vmatprep.mubr.msk.f32.mxu1 %vm678_vm1, %v6615_v50  ;;  %v2114_v50 = vrot.slane %v6519_v35, 1  ;;  %v6746_v61 = vsel %vm928_vm11, %v1332_v19, %v1333_v1  ;;  %v7509_v12 = vrot.slane %v6470_v34, 1  ;;  %v6767_v4 = vsel %vm6661_vm13, %v3217_v32, 0.0  ;;  %v3160_v35 = vld [vmem:[%s6574_s26 + $0x78] sm:$0x3] }
  0x5b   : > { %5510 = vmatprep.mubr.msk.f32.mxu0 %vm678_vm1, %v6545_v17  ;;  %v3219_v16 = vmax.f32 %v3199_v5, 0.0  ;;  %v3172_v19 = vmul.f32 %v6100_v9, %v3152_v58  ;;  %v3208_v18 = vmax.f32 %v3188_v33, 0.0  ;;  %v3174_v1 = vmul.f32 %v6100_v9, %v3154_v26 }
  0x5c   : > { %v6755_v30 = vsel %vm651_vm4, %v7509_v12, %v2109_v59  ;;  %v3190_v59 = vadd.f32 %v6113_v10, %v3170_v7  ;;  %v3418_v32 = vrot.slane %v6692_v2, 1  ;;  %v3176_v12 = vmul.f32 %v6100_v9, %v3156_v29 }
  0x5d   : > { %5326 = vmatmul.mubr.msk.f32.gmra.mrb[4].mxu1 %vm678_vm1, %v6619_v0  ;;  %v6782_v58 = vsel %vm6661_vm13, %v3219_v16, 0.0  ;;  %v3192_v5 = vadd.f32 %v6113_v10, %v3172_v19  ;;  %v3248_v49 = vsel %vm6761_vm14, %v3208_v18, 0.0  ;;  %v3194_v26 = vadd.f32 %v6113_v10, %v3174_v1  ;;  %v4955_v16 = vld [vmem:[%s7427_s3 + $0x48] sm:$0xf] }
  0x5e   : > { %5511 = vmatmul.mubr.f32.gmra.mrb[6].mxu0 %v7503_v39  ;;  %5328 = vmatprep.mubr.msk.f32.mxu1 %vm678_vm1, %v6635_v63  ;;  %v3210_v7 = vmax.f32 %v3190_v59, 0.0  ;;  %v3178_v33 = vmul.f32 %v6100_v9, %v3158_v45  ;;  %v3419_v19 = vrot.slane %v3248_v49, 1  ;;  %v3196_v34 = vadd.f32 %v6113_v10, %v3176_v12 }
  0x5f   : > { %5515 = vmatprep.mubr.msk.f32.mxu0 %vm678_vm1, %v6297_v57  ;;  %v2531_v57 = vrot.slane %v6545_v17, 1  ;;  %v3212_v29 = vmax.f32 %v3192_v5, 0.0  ;;  %v3214_v18 = vmax.f32 %v3194_v26, 0.0  ;;  %v3180_v1 = vmul.f32 %v6100_v9, %v3160_v35  ;;  %v4984_v17 = vld [vmem:[%s7427_s3 + $0x54] sm:$0xf] }
  0x60   : > { %v6804_v45 = vsel %vm6761_vm14, %v3210_v7, 0.0  ;;  %v3198_v59 = vadd.f32 %v6113_v10, %v3178_v33  ;;  %v2532_v5 = vrot.slane %v6564_v42, 1  ;;  %v6814_v12 = vsel %vm651_vm4, %v3418_v32, %v3419_v19 }
  0x61   : > { %5329 = vmatmul.mubr.msk.f32.gmra.mrb[6].mxu1 %vm678_vm1, %v6638_v27  ;;  %v3216_v7 = vmax.f32 %v3196_v34, 0.0  ;;  %v7512_v26 = vrot.slane %v6499_v25, 1  ;;  %v7513_v35 = vrot.slane %v6495_v24, 1  ;;  %v6830_v42 = vsel %vm6761_vm14, %v3214_v18, 0.0  ;;  %v4826_v34 = vld [vmem:[%s7427_s3 + $0x14] sm:$0xf] }
  0x62   : > { %5516 = vmatmul.mubr.msk.f32.vlgmr.msra.gmra.mrb[0].mxu0 %vm678_vm1, %v6338_v28  ;;  %5333 = vmatprep.mubr.msk.f32.mxu1 %vm678_vm1, %v6167_v44  ;;  %v6818_v44 = vsel %vm6761_vm14, %v3212_v29, 0.0  ;;  %v3200_v32 = vadd.f32 %v6113_v10, %v3180_v1  ;;  %v3576_v25 = vrot.slane %v6692_v2, 2  ;;  %v3577_v1 = vrot.slane %v3248_v49, 2 }
  0x63   : > { %5528 = vmatpush3.msk.msra.mxu0 %vm695_vm0, %v6632_v48  ;;  %5518 = vmatprep.mubr.msk.f32.mxu0 %vm678_vm1, %v6373_v55  ;;  %v6825_v33 = vsel %vm651_vm4, %v7513_v35, %v7512_v26  ;;  %v3218_v48 = vmax.f32 %v3198_v59, 0.0  ;;  %v6841_v19 = vsel %vm6761_vm14, %v3216_v7, 0.0  ;;  %v6854_v59 = vsel %vm651_vm4, %v2114_v50, %v2115_v8  ;;  %v3162_v50 = vld [vmem:[%s6574_s26 + $0x88] sm:$0x3] }
  0x64   : > { %5541 = vmatprep.subr.msk.mxu0 %vm695_vm0, %v4955_v16  ;;  %v3220_v18 = vmax.f32 %v3200_v32, 0.0  ;;  %v6859_v7 = vsel %vm651_vm4, %v2531_v57, %v2532_v5  ;;  %v6869_v26 = vsel %vm928_vm11, %v3576_v25, %v3577_v1  ;;  %v3161_v57 = vld [vmem:[%s6574_s26 + $0x80] sm:$0xff]  ;;  %v3182_v49 = vmul.f32 %v6100_v9, %v3162_v50  ;;  %v7515_v50 = vld [vmem:[#allocation8_spill] sm:$0xff]  ;;  %s4770_s26 = sshll.u32 %s7552_s30, 3 }
  0x65   : > { %5334 = vmatmul.mubr.msk.f32.vlgmr.msra.gmra.mrb[0].mxu1 %vm678_vm1, %v6180_v46  ;;  %v6849_v29 = vsel %vm6761_vm14, %v3218_v48, 0.0  ;;  %7514 = vst [vmem:[#allocation24_spill] sm:$0xff] %v6859_v7  ;;  %v3181_v8 = vmul.f32 %v6100_v9, %v3161_v57  ;;  %v4964_v9 = vld [vmem:[%s7427_s3 + $0x4c] sm:$0xf]  ;;  %s471_s21 = sadd.s32 %s4771_s28, %s4770_s26 }
  0x66   : > { %5519 = vmatmul.mubr.msk.f32.gmra.mrb[2].mxu0 %vm678_vm1, %v6755_v30  ;;  %5346 = vmatpush3.msk.msra.mxu1 %vm695_vm0, %v6677_v56  ;;  %v6864_v56 = vsel %vm6761_vm14, %v3220_v18, 0.0  ;;  %v3202_v35 = vadd.f32 %v6113_v10, %v3182_v49  ;;  %v7518_v49 = vld [vmem:[#allocation20_spill] sm:$0xff]  ;;  %s4772_s29 = sshll.u32 %s471_s21, 3  ;;  %s487_s21 = scalar_lea.vmem %s7433_s9, %s479_s25 }
  0x67   : > { %5521 = vmatprep.mubr.msk.f32.mxu0 %vm678_vm1, %v6825_v33  ;;  %5336 = vmatprep.mubr.msk.f32.mxu1 %vm678_vm1, %v6230_v15  ;;  %v3201_v5 = vadd.f32 %v6113_v10, %v3181_v8  ;;  %v7516_v8 = vld [vmem:[#allocation18_spill] sm:$0xff]  ;;  %s7367_s19 = scalar_lea.vmem %s7431_s7, %s4772_s29 }
  0x68   : > { %5359 = vmatprep.subr.msk.mxu1 %vm695_vm0, %v4826_v34  ;;  %v3222_v32 = vmax.f32 %v3202_v35, 0.0  ;;  %v7520_v35 = vld [vmem:[#allocation13_spill] sm:$0xff] }
  0x69   : > { %5337 = vmatmul.mubr.msk.f32.gmra.mrb[2].mxu1 %vm678_vm1, %v6317_v52  ;;  %v3221_v48 = vmax.f32 %v3201_v5, 0.0  ;;  %v7519_v5 = vld [vmem:[#allocation12_spill] sm:$0xff] }
  0x6a   : > { %5522 = vmatmul.mubr.msk.f32.gmra.mrb[4].mxu0 %vm678_vm1, %v6854_v59  ;;  %5339 = vmatprep.mubr.msk.f32.mxu1 %vm678_vm1, %v6361_v40  ;;  %v3262_v25 = vsel %vm6761_vm14, %v3222_v32, 0.0  ;;  %v7521_v32 = vld [vmem:[#allocation21_spill] sm:$0xff] }
  0x6b   : > { %5524 = vmatprep.mubr.msk.f32.mxu0 %vm678_vm1, %v6859_v7  ;;  %v6905_v10 = vsel %vm6661_vm13, %v3221_v48, 0.0  ;;  %v3854_v57 = vrot.slane %v3262_v25, 1  ;;  %v4974_v48 = vld [vmem:[%s7427_s3 + $0x50] sm:$0xf]  ;;  %v3428_v7 = vrot.slane %v6830_v42, 1 }
  0x6c   : > { %v3853_v18 = vrot.slane %v6905_v10, 1  ;;  %v3976_v1 = vrot.slane %v6905_v10, 2 }
  0x6d   : > { %5340 = vmatmul.mubr.msk.f32.gmra.mrb[4].mxu1 %vm678_vm1, %v6414_v31 }
  0x6e   : > { %5525 = vmatmul.mubr.msk.f32.gmra.mrb[6].mxu0 %vm678_vm1, %v6051_v3  ;;  %5342 = vmatprep.mubr.msk.f32.mxu1 %vm678_vm1, %v6436_v62  ;;  %v6921_v47 = vsel %vm651_vm4, %v3853_v18, %v3854_v57  ;;  %v3421_v18 = vrot.slane %v6711_v13, 1  ;;  %v3424_v57 = vrot.slane %v6724_v36, 1 }
  0x6f   : > { %5529 = vmatprep.mubr.msk.f32.mxu0 %vm678_vm1, %v6369_v51 }
  0x71   : > { %5343 = vmatmul.mubr.msk.f32.gmra.mrb[6].mxu1 %vm678_vm1, %v6688_v11 }
  0x72   : > { %5530 = vmatmul.mubr.msk.f32.vlgmr.msra.gmra.mrb[0].mxu0 %vm678_vm1, %v6402_v53  ;;  %5347 = vmatprep.mubr.msk.f32.mxu1 %vm678_vm1, %v6209_v60  ;;  %v3977_v60 = vrot.slane %v3262_v25, 2  ;;  %v4845_v25 = vld [vmem:[%s7427_s3 + $0x1c] sm:$0xf] }
  0x73   : > { %5542 = vmatpush3.msk.msra.mxu0 %vm695_vm0, %v4955_v16  ;;  %5532 = vmatprep.mubr.msk.f32.mxu0 %vm678_vm1, %v6417_v38  ;;  %v3434_v38 = vrot.slane %v6849_v29, 1 }
  0x74   : > { %5555 = vmatprep.subr.msk.mxu0 %vm695_vm0, %v4964_v9  ;;  %v6924_v16 = vsel %vm928_vm11, %v3976_v1, %v3977_v60  ;;  %v3422_v1 = vrot.slane %v6804_v45, 1  ;;  %v3425_v60 = vrot.slane %v6818_v44, 1 }
  0x75   : > { %5348 = vmatmul.mubr.msk.f32.vlgmr.msra.gmra.mrb[0].mxu1 %vm678_vm1, %v6241_v6 }
  0x76   : > { %5533 = vmatmul.mubr.msk.f32.gmra.mrb[2].mxu0 %vm678_vm1, %v6491_v23  ;;  %5360 = vmatpush3.msk.msra.mxu1 %vm695_vm0, %v4826_v34  ;;  %v7517_v34 = vld [vmem:[#allocation10_spill] sm:$0xff]  ;;  %v3433_v23 = vrot.slane %v6767_v4, 1 }
  0x77   : > { %5535 = vmatprep.mubr.msk.f32.mxu0 %vm678_vm1, %v6533_v14  ;;  %5350 = vmatprep.mubr.msk.f32.mxu1 %vm678_vm1, %v6282_v41 }
  0x78   : > { %5373 = vmatprep.subr.msk.mxu1 %vm695_vm0, %v4836_v21 }
  0x79   : > { %5351 = vmatmul.mubr.msk.f32.gmra.mrb[2].mxu1 %vm678_vm1, %v7515_v50 }
  0x7a   : > { %5536 = vmatmul.mubr.msk.f32.gmra.mrb[4].mxu0 %vm678_vm1, %v7516_v8  ;;  %5353 = vmatprep.mubr.msk.f32.mxu1 %vm678_vm1, %v7517_v34  ;;  %v3431_v8 = vrot.slane %v6841_v19, 1 }
  0x7b   : > { %5538 = vmatprep.mubr.msk.f32.mxu0 %vm678_vm1, %v7518_v49  ;;  %v3427_v49 = vrot.slane %v6728_v20, 1 }
  0x7d   : > { %5354 = vmatmul.mubr.msk.f32.gmra.mrb[4].mxu1 %vm678_vm1, %v7519_v5  ;;  %v7015_v14 = vsel %vm651_vm4, %v3427_v49, %v3428_v7  ;;  %v3591_v49 = vrot.slane %v6767_v4, 2 }
  0x7e   : > { %5539 = vmatmul.mubr.msk.f32.gmra.mrb[6].mxu0 %vm678_vm1, %v6600_v22  ;;  %5356 = vmatprep.mubr.msk.f32.mxu1 %vm678_vm1, %v7520_v35 }
  0x7f   : > { %5543 = vmatprep.mubr.f32.mxu0 %v7503_v39 }
  0x81   : > { %5357 = vmatmul.mubr.msk.f32.gmra.mrb[6].mxu1 %vm678_vm1, %v6735_v43 }
  0x82   : > { %5544 = vmatmul.mubr.msk.f32.vlgmr.msra.gmra.mrb[0].mxu0 %vm678_vm1, %v6692_v2  ;;  %5361 = vmatprep.mubr.msk.f32.mxu1 %vm678_vm1, %v6606_v54  ;;  %v7522_v54 = vld [vmem:[#allocation22_spill] sm:$0xff] }
  0x83   : > { %5556 = vmatpush3.msk.msra.mxu0 %vm695_vm0, %v4964_v9  ;;  %5546 = vmatprep.mubr.msk.f32.mxu0 %vm678_vm1, %v6711_v13  ;;  %v7523_v9 = vld [vmem:[#allocation23_spill] sm:$0xff] }
  0x84   : > { %5569 = vmatprep.subr.msk.mxu0 %vm695_vm0, %v4974_v48 }
  0x85   : > { %5362 = vmatmul.mubr.msk.f32.vlgmr.msra.gmra.mrb[0].mxu1 %vm678_vm1, %v7521_v32 }
  0x86   : > { %5547 = vmatmul.mubr.msk.f32.gmra.mrb[2].mxu0 %vm678_vm1, %v6724_v36  ;;  %5374 = vmatpush3.msk.msra.mxu1 %vm695_vm0, %v4836_v21  ;;  %v6993_v21 = vsel %vm651_vm4, %v3421_v18, %v3422_v1  ;;  %v7010_v18 = vsel %vm651_vm4, %v3424_v57, %v3425_v60  ;;  %v3430_v1 = vrot.slane %v6739_v37, 1  ;;  %v7038_v57 = vsel %vm651_vm4, %v3433_v23, %v3434_v38 }
  0x87   : > { %5549 = vmatprep.mubr.msk.f32.mxu0 %vm678_vm1, %v6728_v20  ;;  %5364 = vmatprep.mubr.msk.f32.mxu1 %vm678_vm1, %v7522_v54  ;;  %v3579_v38 = vrot.slane %v6711_v13, 2  ;;  %v3580_v23 = vrot.slane %v6804_v45, 2  ;;  %v3585_v45 = vrot.slane %v6728_v20, 2 }
  0x88   : > { %5387 = vmatprep.subr.msk.mxu1 %vm695_vm0, %v4845_v25  ;;  %v7031_v7 = vsel %vm651_vm4, %v3430_v1, %v3431_v8  ;;  %v3592_v1 = vrot.slane %v6849_v29, 2 }
  0x89   : > { %5365 = vmatmul.mubr.msk.f32.gmra.mrb[2].mxu1 %vm678_vm1, %v7523_v9  ;;  %v7065_v8 = vsel %vm928_vm11, %v3579_v38, %v3580_v23 }
  0x8a   : > { %5550 = vmatmul.mubr.msk.f32.gmra.mrb[4].mxu0 %vm678_vm1, %v6739_v37  ;;  %5367 = vmatprep.mubr.msk.f32.mxu1 %vm678_vm1, %v6619_v0  ;;  %v7109_v29 = vsel %vm928_vm11, %v3591_v49, %v3592_v1 }
  0x8b   : > { %5552 = vmatprep.mubr.msk.f32.mxu0 %vm678_vm1, %v6767_v4 }
  0x8d   : > { %5368 = vmatmul.mubr.msk.f32.gmra.mrb[4].mxu1 %vm678_vm1, %v6635_v63 }
  0x8e   : > { %5553 = vmatmul.mubr.msk.f32.gmra.mrb[6].mxu0 %vm678_vm1, %v6782_v58  ;;  %5370 = vmatprep.mubr.msk.f32.mxu1 %vm678_vm1, %v6638_v27 }
  0x8f   : > { %5557 = vmatprep.mubr.msk.f32.mxu0 %vm678_vm1, %v6051_v3 }
  0x91   : > { %5371 = vmatmul.mubr.msk.f32.gmra.mrb[6].mxu1 %vm678_vm1, %v6746_v61 }
  0x92   : > { %5558 = vmatmul.mubr.msk.f32.vlgmr.msra.gmra.mrb[0].mxu0 %vm678_vm1, %v6814_v12  ;;  %5375 = vmatprep.mubr.msk.f32.mxu1 %vm678_vm1, %v6180_v46  ;;  %v4855_v46 = vld [vmem:[%s7427_s3 + $0x20] sm:$0xf] }
  0x93   : > { %5570 = vmatpush3.msk.msra.mxu0 %vm695_vm0, %v4974_v48  ;;  %5560 = vmatprep.mubr.msk.f32.mxu0 %vm678_vm1, %v6993_v21  ;;  %v3437_v48 = vrot.slane %v6864_v56, 1 }
  0x94   : > { %5583 = vmatprep.subr.msk.mxu0 %vm695_vm0, %v4984_v17 }
  0x95   : > { %5376 = vmatmul.mubr.msk.f32.vlgmr.msra.gmra.mrb[0].mxu1 %vm678_vm1, %v6230_v15  ;;  %v3436_v15 = vrot.slane %v6782_v58, 1 }
  0x96   : > { %5561 = vmatmul.mubr.msk.f32.gmra.mrb[2].mxu0 %vm678_vm1, %v7010_v18  ;;  %5388 = vmatpush3.msk.msra.mxu1 %vm695_vm0, %v4845_v25  ;;  %v3589_v25 = vrot.slane %v6841_v19, 2  ;;  %v3595_v19 = vrot.slane %v6864_v56, 2  ;;  %v5004_v56 = vld [vmem:[%s7427_s3 + $0x5c] sm:$0xf] }
  0x97   : > { %5563 = vmatprep.mubr.msk.f32.mxu0 %vm678_vm1, %v7015_v14  ;;  %5378 = vmatprep.mubr.msk.f32.mxu1 %vm678_vm1, %v6317_v52  ;;  %v7050_v52 = vsel %vm651_vm4, %v3436_v15, %v3437_v48 }
  0x98   : > { %5401 = vmatprep.subr.msk.mxu1 %vm695_vm0, %v4855_v46 }
  0x99   : > { %5379 = vmatmul.mubr.msk.f32.gmra.mrb[2].mxu1 %vm678_vm1, %v6361_v40  ;;  %v3582_v40 = vrot.slane %v6724_v36, 2 }
  0x9a   : > { %5564 = vmatmul.mubr.msk.f32.gmra.mrb[4].mxu0 %vm678_vm1, %v7031_v7  ;;  %5381 = vmatprep.mubr.msk.f32.mxu1 %vm678_vm1, %v6414_v31  ;;  %v3583_v31 = vrot.slane %v6818_v44, 2 }
  0x9b   : > { %5566 = vmatprep.mubr.msk.f32.mxu0 %vm678_vm1, %v7038_v57 }
  0x9c   : > { %v7081_v44 = vsel %vm928_vm11, %v3582_v40, %v3583_v31 }
  0x9d   : > { %5382 = vmatmul.mubr.msk.f32.gmra.mrb[4].mxu1 %vm678_vm1, %v6436_v62  ;;  %v3586_v62 = vrot.slane %v6830_v42, 2  ;;  %v3588_v42 = vrot.slane %v6739_v37, 2 }
  0x9e   : > { %5567 = vmatmul.mubr.msk.f32.gmra.mrb[6].mxu0 %vm678_vm1, %v7050_v52  ;;  %5384 = vmatprep.mubr.msk.f32.mxu1 %vm678_vm1, %v6688_v11  ;;  %v4994_v11 = vld [vmem:[%s7427_s3 + $0x58] sm:$0xf] }
  0x9f   : > { %5571 = vmatprep.mubr.msk.f32.mxu0 %vm678_vm1, %v6600_v22  ;;  %v7086_v60 = vsel %vm928_vm11, %v3585_v45, %v3586_v62 }
  0xa1   : > { %5385 = vmatmul.mubr.f32.gmra.mrb[6].mxu1 %v7503_v39 }
  0xa2   : > { %5572 = vmatmul.mubr.msk.f32.vlgmr.msra.gmra.mrb[0].mxu0 %vm678_vm1, %v6869_v26  ;;  %5389 = vmatprep.mubr.msk.f32.mxu1 %vm678_vm1, %v6241_v6  ;;  %v4866_v6 = vld [vmem:[%s7427_s3 + $0x24] sm:$0xf] }
  0xa3   : > { %5584 = vmatpush3.msk.msra.mxu0 %vm695_vm0, %v4984_v17  ;;  %5574 = vmatprep.mubr.msk.f32.mxu0 %vm678_vm1, %v7065_v8  ;;  %v7102_v17 = vsel %vm928_vm11, %v3588_v42, %v3589_v25 }
  0xa4   : > { %5597 = vmatprep.subr.msk.mxu0 %vm695_vm0, %v4994_v11 }
  0xa5   : > { %5390 = vmatmul.mubr.msk.f32.vlgmr.msra.gmra.mrb[0].mxu1 %vm678_vm1, %v6282_v41  ;;  %v3594_v41 = vrot.slane %v6782_v58, 2 }
  0xa6   : > { %5575 = vmatmul.mubr.msk.f32.gmra.mrb[2].mxu0 %vm678_vm1, %v7081_v44  ;;  %5402 = vmatpush3.msk.msra.mxu1 %vm695_vm0, %v4855_v46 }
  0xa7   : > { %5577 = vmatprep.mubr.msk.f32.mxu0 %vm678_vm1, %v7086_v60  ;;  %5392 = vmatprep.mubr.msk.f32.mxu1 %vm678_vm1, %v7515_v50  ;;  %v7121_v50 = vsel %vm928_vm11, %v3594_v41, %v3595_v19 }
  0xa8   : > { %5415 = vmatprep.subr.msk.mxu1 %vm695_vm0, %v4866_v6 }
  0xa9   : > { %5393 = vmatmul.mubr.msk.f32.gmra.mrb[2].mxu1 %vm678_vm1, %v7517_v34  ;;  %v7528_v34 = vld [vmem:[#allocation14_spill] sm:$0xff] }
  0xaa   : > { %5578 = vmatmul.mubr.msk.f32.gmra.mrb[4].mxu0 %vm678_vm1, %v7102_v17  ;;  %5395 = vmatprep.mubr.msk.f32.mxu1 %vm678_vm1, %v7519_v5  ;;  %v7529_v5 = vld [vmem:[#allocation16_spill] sm:$0xff] }
  0xab   : > { %5580 = vmatprep.mubr.msk.f32.mxu0 %vm678_vm1, %v7109_v29 }
  0xad   : > { %5396 = vmatmul.mubr.msk.f32.gmra.mrb[4].mxu1 %vm678_vm1, %v7520_v35  ;;  %v5023_v35 = vld [vmem:[%s7427_s3 + $0x64] sm:$0xf] }
  0xae   : > { %5581 = vmatmul.mubr.msk.f32.gmra.mrb[6].mxu0 %vm678_vm1, %v7121_v50  ;;  %5398 = vmatprep.mubr.msk.f32.mxu1 %vm678_vm1, %v6735_v43  ;;  %v7525_v43 = vld [vmem:[#allocation3_spill] sm:$0xff] }
  0xaf   : > { %5585 = vmatprep.mubr.msk.f32.mxu0 %vm678_vm1, %v6692_v2  ;;  %v4875_v2 = vld [vmem:[%s7427_s3 + $0x28] sm:$0xf] }
  0xb1   : > { %5399 = vmatmul.mubr.msk.f32.gmra.mrb[6].mxu1 %vm678_vm1, %v6051_v3 }
  0xb2   : > { %5586 = vmatmul.mubr.msk.f32.vlgmr.msra.gmra.mrb[0].mxu0 %vm678_vm1, %v6711_v13  ;;  %5403 = vmatprep.mubr.msk.f32.mxu1 %vm678_vm1, %v7521_v32  ;;  %v4895_v32 = vld [vmem:[%s7427_s3 + $0x30] sm:$0xf] }
  0xb3   : > { %5598 = vmatpush3.msk.msra.mxu0 %vm695_vm0, %v4994_v11  ;;  %5588 = vmatprep.mubr.msk.f32.mxu0 %vm678_vm1, %v6724_v36 }
  0xb4   : > { %5611 = vmatprep.subr.msk.mxu0 %vm695_vm0, %v5004_v56 }
  0xb5   : > { %5404 = vmatmul.mubr.msk.f32.vlgmr.msra.gmra.mrb[0].mxu1 %vm678_vm1, %v7522_v54  ;;  %v7531_v54 = vld [vmem:[#allocation5_spill] sm:$0xff] }
  0xb6   : > { %5589 = vmatmul.mubr.msk.f32.gmra.mrb[2].mxu0 %vm678_vm1, %v6728_v20  ;;  %5416 = vmatpush3.msk.msra.mxu1 %vm695_vm0, %v4866_v6 }
  0xb7   : > { %5591 = vmatprep.mubr.msk.f32.mxu0 %vm678_vm1, %v6739_v37  ;;  %5406 = vmatprep.mubr.msk.f32.mxu1 %vm678_vm1, %v7523_v9 }
  0xb8   : > { %5429 = vmatprep.subr.msk.mxu1 %vm695_vm0, %v4875_v2 }
  0xb9   : > { %5407 = vmatmul.mubr.msk.f32.gmra.mrb[2].mxu1 %vm678_vm1, %v6619_v0  ;;  %v5014_v0 = vld [vmem:[%s7427_s3 + $0x60] sm:$0xf] }
  0xba   : > { %5592 = vmatmul.mubr.msk.f32.gmra.mrb[4].mxu0 %vm678_vm1, %v6767_v4  ;;  %5409 = vmatprep.mubr.msk.f32.mxu1 %vm678_vm1, %v6635_v63  ;;  %v7524_v63 = vld [vmem:[#allocation2_spill] sm:$0xff] }
  0xbb   : > { %5594 = vmatprep.mubr.msk.f32.mxu0 %vm678_vm1, %v6782_v58 }
  0xbd   : > { %5410 = vmatmul.mubr.msk.f32.gmra.mrb[4].mxu1 %vm678_vm1, %v6638_v27  ;;  %v4885_v27 = vld [vmem:[%s7427_s3 + $0x2c] sm:$0xf] }
  0xbe   : > { %5595 = vmatmul.mubr.msk.f32.gmra.mrb[6].mxu0 %vm678_vm1, %v6905_v10  ;;  %5412 = vmatprep.mubr.msk.f32.mxu1 %vm678_vm1, %v6746_v61  ;;  %v7526_v61 = vld [vmem:[#allocation6_spill] sm:$0xff] }
  0xbf   : > { %5599 = vmatprep.mubr.msk.f32.mxu0 %vm678_vm1, %v6814_v12  ;;  %v7527_v12 = vld [vmem:[#allocation7_spill] sm:$0xff] }
  0xc1   : > { %5413 = vmatmul.mubr.msk.f32.gmra.mrb[6].mxu1 %vm678_vm1, %v6600_v22 }
  0xc2   : > { %5600 = vmatmul.mubr.msk.f32.vlgmr.msra.gmra.mrb[0].mxu0 %vm678_vm1, %v6993_v21  ;;  %5417 = vmatprep.mubr.f32.mxu1 %v7503_v39 }
  0xc3   : > { %5612 = vmatpush3.msk.msra.mxu0 %vm695_vm0, %v5004_v56  ;;  %5602 = vmatprep.mubr.msk.f32.mxu0 %vm678_vm1, %v7010_v18 }
  0xc4   : > { %5625 = vmatprep.subr.msk.mxu0 %vm695_vm0, %v5014_v0 }
  0xc5   : > { %5418 = vmatmul.mubr.msk.f32.vlgmr.msra.gmra.mrb[0].mxu1 %vm678_vm1, %v7524_v63 }
  0xc6   : > { %5603 = vmatmul.mubr.msk.f32.gmra.mrb[2].mxu0 %vm678_vm1, %v7015_v14  ;;  %5430 = vmatpush3.msk.msra.mxu1 %vm695_vm0, %v4875_v2 }
  0xc7   : > { %5605 = vmatprep.mubr.msk.f32.mxu0 %vm678_vm1, %v7031_v7  ;;  %5420 = vmatprep.mubr.msk.f32.mxu1 %vm678_vm1, %v7525_v43 }
  0xc8   : > { %5443 = vmatprep.subr.msk.mxu1 %vm695_vm0, %v4885_v27 }
  0xc9   : > { %5421 = vmatmul.mubr.msk.f32.gmra.mrb[2].mxu1 %vm678_vm1, %v7526_v61 }
  0xca   : > { %5606 = vmatmul.mubr.msk.f32.gmra.mrb[4].mxu0 %vm678_vm1, %v7038_v57  ;;  %5423 = vmatprep.mubr.msk.f32.mxu1 %vm678_vm1, %v7527_v12 }
  0xcb   : > { %5608 = vmatprep.mubr.msk.f32.mxu0 %vm678_vm1, %v7050_v52 }
  0xcd   : > { %5424 = vmatmul.mubr.msk.f32.gmra.mrb[4].mxu1 %vm678_vm1, %v7528_v34 }
  0xce   : > { %5609 = vmatmul.mubr.msk.f32.gmra.mrb[6].mxu0 %vm678_vm1, %v6921_v47  ;;  %5426 = vmatprep.mubr.msk.f32.mxu1 %vm678_vm1, %v6495_v24 }
  0xcf   : > { %5613 = vmatprep.mubr.msk.f32.mxu0 %vm678_vm1, %v6869_v26  ;;  %v7530_v26 = vld [vmem:[#allocation4_spill] sm:$0xff] }
  0xd1   : > { %5427 = vmatmul.mubr.msk.f32.gmra.mrb[6].mxu1 %vm678_vm1, %v7529_v5 }
  0xd2   : > { %5614 = vmatmul.mubr.msk.f32.vlgmr.msra.gmra.mrb[0].mxu0 %vm678_vm1, %v7065_v8  ;;  %5431 = vmatprep.mubr.msk.f32.mxu1 %vm678_vm1, %v6051_v3 }
  0xd3   : > { %5626 = vmatpush3.msk.msra.mxu0 %vm695_vm0, %v5014_v0  ;;  %5616 = vmatprep.mubr.msk.f32.mxu0 %vm678_vm1, %v7081_v44 }
  0xd4   : > { %5639 = vmatprep.subr.msk.mxu0 %vm695_vm0, %v5023_v35 }
  0xd5   : > { %5432 = vmatmul.mubr.msk.f32.vlgmr.msra.gmra.mrb[0].mxu1 %vm678_vm1, %v7530_v26 }
  0xd6   : > { %5617 = vmatmul.mubr.msk.f32.gmra.mrb[2].mxu0 %vm678_vm1, %v7086_v60  ;;  %5444 = vmatpush3.msk.msra.mxu1 %vm695_vm0, %v4885_v27 }
  0xd7   : > { %5619 = vmatprep.mubr.msk.f32.mxu0 %vm678_vm1, %v7102_v17  ;;  %5434 = vmatprep.mubr.msk.f32.mxu1 %vm678_vm1, %v7531_v54 }
  0xd8   : > { %5457 = vmatprep.subr.msk.mxu1 %vm695_vm0, %v4895_v32 }
  0xd9   : > { %5435 = vmatmul.mubr.msk.f32.gmra.mrb[2].mxu1 %vm678_vm1, %v6338_v28  ;;  %v5033_v28 = vld [vmem:[%s7427_s3 + $0x68] sm:$0xf] }
  0xda   : > { %5620 = vmatmul.mubr.msk.f32.gmra.mrb[4].mxu0 %vm678_vm1, %v7109_v29  ;;  %5437 = vmatprep.mubr.msk.f32.mxu1 %vm678_vm1, %v6373_v55  ;;  %v7532_v55 = vld [vmem:[#allocation9_spill] sm:$0xff] }
  0xdb   : > { %5622 = vmatprep.mubr.msk.f32.mxu0 %vm678_vm1, %v7121_v50 }
  0xdd   : > { %5438 = vmatmul.mubr.msk.f32.gmra.mrb[4].mxu1 %vm678_vm1, %v6755_v30 }
  0xde   : > { %5623 = vmatmul.mubr.msk.f32.gmra.mrb[6].mxu0 %vm678_vm1, %v6924_v16  ;;  %5440 = vmatprep.mubr.msk.f32.mxu1 %vm678_vm1, %v6825_v33 }
  0xdf   : > { %5627 = vmatprep.mubr.msk.f32.mxu0 %vm678_vm1, %v6711_v13  ;;  %v5922_v13 = vld [vmem:[%s7427_s3 + $0x34] sm:$0xf] }
  0xe1   : > { %5441 = vmatmul.mubr.msk.f32.gmra.mrb[6].mxu1 %vm678_vm1, %v6854_v59 }
  0xe2   : > { %5628 = vmatmul.mubr.msk.f32.vlgmr.msra.gmra.mrb[0].mxu0 %vm678_vm1, %v6724_v36  ;;  %5445 = vmatprep.mubr.msk.f32.mxu1 %vm678_vm1, %v6600_v22  ;;  %v7533_v36 = vld [vmem:[#allocation11_spill] sm:$0xff] }
  0xe3   : > { %5640 = vmatpush3.msk.msra.mxu0 %vm695_vm0, %v5023_v35  ;;  %5630 = vmatprep.mubr.msk.f32.mxu0 %vm678_vm1, %v6728_v20  ;;  %v7534_v20 = vld [vmem:[#allocation15_spill] sm:$0xff] }
  0xe4   : > { %5653 = vmatprep.subr.msk.mxu0 %vm695_vm0, %v5033_v28 }
  0xe5   : > { %5446 = vmatmul.mubr.msk.f32.vlgmr.msra.gmra.mrb[0].mxu1 %vm678_vm1, %v7532_v55 }
  0xe6   : > { %5631 = vmatmul.mubr.msk.f32.gmra.mrb[2].mxu0 %vm678_vm1, %v6739_v37  ;;  %5458 = vmatpush3.msk.msra.mxu1 %vm695_vm0, %v4895_v32 }
  0xe7   : > { %5633 = vmatprep.mubr.msk.f32.mxu0 %vm678_vm1, %v6767_v4  ;;  %5448 = vmatprep.mubr.msk.f32.mxu1 %vm678_vm1, %v6369_v51  ;;  %v7535_v51 = vld [vmem:[#allocation17_spill] sm:$0xff] }
  0xe8   : > { %5667 = vmatprep.subr.msk.mxu1 %vm695_vm0, %v5922_v13 }
  0xe9   : > { %5449 = vmatmul.mubr.msk.f32.gmra.mrb[2].mxu1 %vm678_vm1, %v6402_v53  ;;  %v7536_v53 = vld [vmem:[#allocation18_spill] sm:$0xff] }
  0xea   : > { %5634 = vmatmul.mubr.msk.f32.gmra.mrb[4].mxu0 %vm678_vm1, %v6782_v58  ;;  %5451 = vmatprep.mubr.msk.f32.mxu1 %vm678_vm1, %v7533_v36  ;;  %v5043_v58 = vld [vmem:[%s7428_s4] ss:$0 sm:$0xff] }
  0xeb   : > { %5636 = vmatprep.mubr.msk.f32.mxu0 %vm678_vm1, %v6905_v10 }
  0xed   : > { %5452 = vmatmul.mubr.msk.f32.gmra.mrb[4].mxu1 %vm678_vm1, %v7534_v20 }
  0xee   : > { %5637 = vmatmul.mubr.f32.gmra.mrb[6].mxu0 %v7503_v39  ;;  %5454 = vmatprep.mubr.msk.f32.mxu1 %vm678_vm1, %v7535_v51 }
  0xef   : > { %5641 = vmatprep.mubr.msk.f32.mxu0 %vm678_vm1, %v6993_v21 }
  0xf1   : > { %5455 = vmatmul.mubr.msk.f32.gmra.mrb[6].mxu1 %vm678_vm1, %v7536_v53 }
  0xf2   : > { %5642 = vmatmul.mubr.msk.f32.vlgmr.msra.gmra.mrb[0].mxu0 %vm678_vm1, %v7010_v18  ;;  %5459 = vmatprep.mubr.msk.f32.mxu1 %vm678_vm1, %v7524_v63 }
  0xf3   : > { %5654 = vmatpush3.msk.msra.mxu0 %vm695_vm0, %v5033_v28  ;;  %5644 = vmatprep.mubr.msk.f32.mxu0 %vm678_vm1, %v7015_v14  ;;  %v7537_v14 = vld [vmem:[#allocation19_spill] sm:$0xff] }
  0xf5   : > { %5460 = vmatmul.mubr.msk.f32.vlgmr.msra.gmra.mrb[0].mxu1 %vm678_vm1, %v7525_v43 }
  0xf6   : > { %5645 = vmatmul.mubr.msk.f32.gmra.mrb[2].mxu0 %vm678_vm1, %v7031_v7  ;;  %5668 = vmatpush3.msk.msra.mxu1 %vm695_vm0, %v5922_v13 }
  0xf7   : > { %5647 = vmatprep.mubr.msk.f32.mxu0 %vm678_vm1, %v7038_v57  ;;  %5462 = vmatprep.mubr.msk.f32.mxu1 %vm678_vm1, %v7526_v61 }
  0xf9   : > { %5463 = vmatmul.mubr.msk.f32.gmra.mrb[2].mxu1 %vm678_vm1, %v7527_v12 }
  0xfa   : > { %5648 = vmatmul.mubr.msk.f32.gmra.mrb[4].mxu0 %vm678_vm1, %v7050_v52  ;;  %5465 = vmatprep.mubr.msk.f32.mxu1 %vm678_vm1, %v7528_v34 }
  0xfb   : > { %5650 = vmatprep.mubr.msk.f32.mxu0 %vm678_vm1, %v6921_v47 }
  0xfd   : > { %5466 = vmatmul.mubr.msk.f32.gmra.mrb[4].mxu1 %vm678_vm1, %v6495_v24 }
  0xfe   : > { %5651 = vmatmul.mubr.msk.f32.gmra.mrb[6].mxu0 %vm678_vm1, %v6051_v3  ;;  %5468 = vmatprep.mubr.msk.f32.mxu1 %vm678_vm1, %v7529_v5  ;;  %v7538_v3 = vld [vmem:[#allocation24_spill] sm:$0xff] }
  0xff   : > { %5655 = vmatprep.mubr.msk.f32.mxu0 %vm678_vm1, %v7065_v8 }
 0x101   : > { %5469 = vmatmul.mubr.msk.f32.gmra.mrb[6].mxu1 %vm678_vm1, %v7537_v14 }
 0x102   : > { %5656 = vmatmul.mubr.msk.f32.vlgmr.msra.gmra.mrb[0].mxu0 %vm678_vm1, %v7081_v44  ;;  %5479 = vmatprep.mubr.msk.f32.mxu1 %vm678_vm1, %v6755_v30 }
 0x103   : > { %5658 = vmatprep.mubr.msk.f32.mxu0 %vm678_vm1, %v7086_v60 }
 0x105   : > { %5480 = vmatmul.mubr.msk.f32.vlgmr.msra.gmra.mrb[4].mxu1 %vm678_vm1, %v6825_v33 }
 0x106   : > { %5659 = vmatmul.mubr.msk.f32.gmra.mrb[2].mxu0 %vm678_vm1, %v7102_v17  ;;  %5482 = vmatprep.mubr.msk.f32.mxu1 %vm678_vm1, %v6854_v59 }
 0x107   : > { %5661 = vmatprep.mubr.msk.f32.mxu0 %vm678_vm1, %v7109_v29 }
 0x109   : > { %5483 = vmatmul.mubr.msk.f32.gmra.mrb[6].mxu1 %vm678_vm1, %v7538_v3 }
 0x10a   : > { %5662 = vmatmul.mubr.msk.f32.gmra.mrb[4].mxu0 %vm678_vm1, %v7121_v50 }
 0x10b   : > { %5664 = vmatprep.mubr.msk.f32.mxu0 %vm678_vm1, %v6924_v16 }
 0x10e   : > { %5665 = vmatmul.mubr.msk.f32.gmra.mrb[6].mxu0 %vm678_vm1, %v6600_v22 }
 0x1c8   : > { %v5461_v24 = vpop.f32.mrb[0].mxu1 }
 0x1c9   : > { %v2483_v39 = vpop.f32.mrb[1].mxu1 }
 0x1cc   : > { %v5464_v37 = vpop.f32.mrb[2].mxu1 }
 0x1cd   : > { %v2493_v30 = vpop.f32.mrb[3].mxu1 }
 0x1d5   : > { %v5657_v4 = vpop.f32.mrb[0].mxu0 }
 0x1d6   : > { %v5669_v33 = vadd.f32 %v5657_v4, %v5461_v24  ;;  %v4420_v59 = vpop.f32.mrb[1].mxu0 }
 0x1d7   : > { %v5670_v22 = vadd.f32 %v4420_v59, %v2483_v39 }
 0x1d8   : > { %v4475_v10 = vadd.f32 %v5669_v33, %v5043_v58  ;;  %v5481_v47 = vpop.f32.mrb[4].mxu1 }
 0x1d9   : > { %v4474_v16 = vadd.f32 %v5670_v22, %v5043_v58  ;;  %v5660_v9 = vpop.f32.mrb[2].mxu0  ;;  %v2627_v21 = vpop.f32.mrb[5].mxu1 }
 0x1da   : > { %v4483_v18 = vsel %vm678_vm1, %v4475_v10, 0.0  ;;  %v4506_v46 = vmul.f32 %v4475_v10, %v4475_v10  ;;  %4536 = vst.msk [vmem:[%s7367_s19 + $0x8] sm:$0xff] %vm678_vm1, %v4475_v10  ;;  %v5671_v7 = vadd.f32 %v5660_v9, %v5464_v37  ;;  %v4430_v15 = vpop.f32.mrb[3].mxu0 }
 0x1db   : > { %v4482_v48 = vsel %vm678_vm1, %v4474_v16, 0.0  ;;  %v4505_v57 = vmul.f32 %v4474_v16, %v4474_v16  ;;  %4535 = vst.msk [vmem:[%s7367_s19] sm:$0xff] %vm678_vm1, %v4474_v16  ;;  %v5672_v52 = vadd.f32 %v4430_v15, %v2493_v30 }
 0x1dc   : > { %v4514_v38 = vsel %vm678_vm1, %v4506_v46, 0.0  ;;  %v4484_v23 = vadd.f32 %v4483_v18, %v4482_v48  ;;  %v4477_v40 = vadd.f32 %v5671_v7, %v5043_v58  ;;  %v5484_v31 = vpop.f32.mrb[6].mxu1 }
 0x1dd   : > { %v4513_v8 = vsel %vm678_vm1, %v4505_v57, 0.0  ;;  %v4476_v45 = vadd.f32 %v5672_v52, %v5043_v58  ;;  %v5663_v62 = vpop.f32.mrb[4].mxu0  ;;  %v2637_v11 = vpop.f32.mrb[7].mxu1 }
 0x1de   : > { %v4515_v44 = vadd.f32 %v4514_v38, %v4513_v8  ;;  %v4508_v42 = vmul.f32 %v4477_v40, %v4477_v40  ;;  %4538 = vst.msk [vmem:[%s7367_s19 + $0x18] sm:$0xff] %vm678_vm1, %v4477_v40  ;;  %v5673_v25 = vadd.f32 %v5663_v62, %v5481_v47  ;;  %v4440_v60 = vpop.f32.mrb[5].mxu0  ;;  %v4487_v19 = vsel %vm678_vm1, %v4477_v40, 0.0 }
 0x1df   : > { %v4485_v49 = vsel %vm678_vm1, %v4476_v45, 0.0  ;;  %v4507_v1 = vmul.f32 %v4476_v45, %v4476_v45  ;;  %4537 = vst.msk [vmem:[%s7367_s19 + $0x10] sm:$0xff] %vm678_vm1, %v4476_v45  ;;  %v5674_v6 = vadd.f32 %v4440_v60, %v2627_v21 }
 0x1e0   : > { %v4486_v17 = vadd.f32 %v4485_v49, %v4484_v23  ;;  %v4479_v41 = vadd.f32 %v5673_v25, %v5043_v58  ;;  %v4518_v2 = vsel %vm678_vm1, %v4508_v42, 0.0 }
 0x1e1   : > { %v4516_v29 = vsel %vm678_vm1, %v4507_v1, 0.0  ;;  %v4478_v50 = vadd.f32 %v5674_v6, %v5043_v58  ;;  %v5666_v56 = vpop.f32.mrb[6].mxu0 }
 0x1e2   : > { %v4517_v0 = vadd.f32 %v4516_v29, %v4515_v44  ;;  %v4510_v63 = vmul.f32 %v4479_v41, %v4479_v41  ;;  %4540 = vst.msk [vmem:[%s7367_s19 + $0x28] sm:$0xff] %vm678_vm1, %v4479_v41  ;;  %v4488_v27 = vadd.f32 %v4487_v19, %v4486_v17  ;;  %v4450_v43 = vpop.f32.mrb[7].mxu0  ;;  %v5675_v34 = vadd.f32 %v5666_v56, %v5484_v31 }
 0x1e3   : > { %v4489_v61 = vsel %vm678_vm1, %v4478_v50, 0.0  ;;  %v4509_v12 = vmul.f32 %v4478_v50, %v4478_v50  ;;  %4539 = vst.msk [vmem:[%s7367_s19 + $0x20] sm:$0xff] %vm678_vm1, %v4478_v50  ;;  %v5676_v5 = vadd.f32 %v4450_v43, %v2637_v11  ;;  %v4491_v32 = vsel %vm678_vm1, %v4479_v41, 0.0 }
 0x1e4   : > { %v4490_v35 = vadd.f32 %v4489_v61, %v4488_v27  ;;  %v4519_v26 = vadd.f32 %v4518_v2, %v4517_v0  ;;  %v4481_v28 = vadd.f32 %v5675_v34, %v5043_v58  ;;  %v4522_v20 = vsel %vm678_vm1, %v4510_v63, 0.0 }
 0x1e5   : > { %v4520_v54 = vsel %vm678_vm1, %v4509_v12, 0.0  ;;  %v4480_v55 = vadd.f32 %v5676_v5, %v5043_v58 }
 0x1e6   : > { %v4521_v13 = vadd.f32 %v4520_v54, %v4519_v26  ;;  %v4492_v36 = vadd.f32 %v4491_v32, %v4490_v35  ;;  %v4512_v51 = vmul.f32 %v4481_v28, %v4481_v28  ;;  %4542 = vst.msk [vmem:[%s7367_s19 + $0x38] sm:$0xff] %vm678_vm1, %v4481_v28  ;;  %v4495_v39 = vsel %vm678_vm1, %v4481_v28, 0.0 }
 0x1e7   : > { %v4493_v53 = vsel %vm678_vm1, %v4480_v55, 0.0  ;;  %v4511_v14 = vmul.f32 %v4480_v55, %v4480_v55  ;;  %4541 = vst.msk [vmem:[%s7367_s19 + $0x30] sm:$0xff] %vm678_vm1, %v4480_v55 }
 0x1e8   : > { %v4494_v3 = vadd.f32 %v4493_v53, %v4492_v36  ;;  %v4523_v24 = vadd.f32 %v4522_v20, %v4521_v13  ;;  %v4526_v58 = vsel %vm678_vm1, %v4512_v51, 0.0 }
 0x1e9   : > { %v4524_v37 = vsel %vm678_vm1, %v4511_v14, 0.0 }
 0x1ea   : > { %v4496_v30 = vadd.f32 %v4495_v39, %v4494_v3  ;;  %v4525_v4 = vadd.f32 %v4524_v37, %v4523_v24 }
 0x1ec   : > { %v4497_v33 = vrot.slane %v4496_v30, 4  ;;  %v4527_v59 = vadd.f32 %v4526_v58, %v4525_v4 }
 0x1ee   : > { %v4498_v22 = vadd.f32 %v4497_v33, %v4496_v30  ;;  %v4528_v10 = vrot.slane %v4527_v59, 4 }
 0x1f0   : > { %v4499_v47 = vrot.slane %v4498_v22, 2  ;;  %v4529_v16 = vadd.f32 %v4528_v10, %v4527_v59 }
 0x1f2   : > { %v4500_v9 = vadd.f32 %v4499_v47, %v4498_v22  ;;  %v4530_v21 = vrot.slane %v4529_v16, 2 }
 0x1f4   : > { %v4501_v18 = vrot.slane %v4500_v9, 1  ;;  %v4531_v46 = vadd.f32 %v4530_v21, %v4529_v16 }
 0x1f6   : > { %v4502_v7 = vadd.f32 %v4501_v18, %v4500_v9  ;;  %v4532_v15 = vrot.slane %v4531_v46, 1 }
 0x1f8   : > { %4504 = vst.msk [vmem:[%s480_s24] sm:$0x1] %vm4503_vm15, %v4502_v7  ;;  %v4533_v48 = vadd.f32 %v4532_v15, %v4531_v46 }
 0x1fa   : > { %4534 = vst.msk [vmem:[%s487_s21] sm:$0x1] %vm4503_vm15, %v4533_v48 }
 0x1fb PF: > { %s20_s13 = sadd.s32 1, %s5961_s13   ;;  %s7539_s30 = smov %s5953_s11 }
 0x1fc   : > { %p17_p5 = scmp.ge.s32.totalorder %s20_s13, 18   ;;  %s7540_s10 = smov %s5957_s12 }
 0x1fd   : > { %s7541_s11 = smov %s7544_s14  ;;  %s7542_s12 = smov %s7548_s15 }
 0x1fe   :  { %19 = sbr.rel (!%p17_p5) target bundleno = 3 (0x3), region = 134 }

</bundles_post_ra>
